<compile_context>
chip_gen: v6e
topology: v6e:2x2x1
jax: 0.10.0
libtpu: 0.0.40
codegen_flags: <defaults>
</compile_context>

<pallas_src>
import functools
import math

import jax
import jax.numpy as jnp
from jax.experimental import pallas as pl
from jax.experimental.pallas import tpu as pltpu


def _round_up(x, m):
    return ((x + m - 1) // m) * m


def _gru_recurrent_kernel(gi_ref, whh_ref, bhn_ref, out_ref, h_ref, *, group):
    """One (batch-chunk, time-block) grid step of the GRU recurrence.

    gi_ref:  (bb, tt, 3H)  precomputed x@W_ih^T + b_ih (+ b_hh[r,z] folded in)
    whh_ref: (H, 3H)       hidden->hidden weights (transposed), gate order [r|z|n]
    bhn_ref: (1, H)        hidden bias of the n gate (must stay inside r*(...))
    out_ref: (bb, tt*H)    lane-dense per-timestep hidden states
    h_ref:   (bb, H)       VMEM scratch carrying h_{t-1} across time blocks
    """
    # New batch chunk -> reset the carried hidden state to h0 = 0.
    @pl.when(pl.program_id(1) == 0)
    def _():
        h_ref[...] = jnp.zeros_like(h_ref)

    TT = gi_ref.shape[1]
    H = h_ref.shape[1]
    whh = whh_ref[...]            # resident (constant index_map -> single DMA)
    bhn = bhn_ref[...]            # (1, H) f32

    h = h_ref[...]                # (bb, H) f32
    # Static loop with grouped, lane-dense output flushes: `group` consecutive
    # steps are packed into one (bb, group*H) store (group*H == 128 for H<128),
    # so the output stores are unmasked and the live vreg set is bounded by
    # `group` hidden-state copies instead of TT.
    for g0 in range(0, TT, group):
        hs = []
        for i in range(g0, min(g0 + group, TT)):
            gi = gi_ref[:, i, :].astype(jnp.float32)          # (bb, 3H)
            gh = jnp.dot(h.astype(whh.dtype), whh,
                         preferred_element_type=jnp.float32)  # (bb, 3H), MXU
            r = jax.nn.sigmoid(gi[:, 0:H] + gh[:, 0:H])
            z = jax.nn.sigmoid(gi[:, H:2 * H] + gh[:, H:2 * H])
            n = jnp.tanh(gi[:, 2 * H:] + r * (gh[:, 2 * H:] + bhn))
            h = (1.0 - z) * n + z * h
            hs.append(h.astype(out_ref.dtype))
        slab = hs[0] if len(hs) == 1 else jnp.concatenate(hs, axis=-1)
        out_ref[:, g0 * H:(g0 + len(hs)) * H] = slab          # lane-dense store
    h_ref[...] = h


def gru_forward(x, w_ih, w_hh, b_ih, b_hh, *, tt=None, bb=None,
                use_bf16_weights=False):
    """GRU forward over a full sequence, h0 = zeros (matches nn.GRU default).

    x:          (B, T, H) batch_first input.
    w_ih, w_hh: (3H, H) PyTorch weight_ih_l0 / weight_hh_l0, gate order [r;z;n].
    b_ih, b_hh: (3H,)   PyTorch bias_ih_l0 / bias_hh_l0.
    tt:         timesteps per grid step (None -> derived from a VMEM budget).
    bb:         batch rows per grid step (None -> MXU-filling default).
    Returns (B, T, H): hidden state at every timestep.
    """
    B, T, H = x.shape
    assert w_ih.shape == (3 * H, H) and w_hh.shape == (3 * H, H)

    cdt = jnp.bfloat16 if use_bf16_weights else jnp.float32    # matmul operands
    gidt = jnp.bfloat16 if use_bf16_weights else jnp.float32   # gi storage
    row_align = 16 if use_bf16_weights else 8                  # MXU LHS sublane pack

    # ---- batch chunking: fill the MXU M dimension (pad B if needed) --------
    if bb is None:
        bb = min(_round_up(B, row_align), 256)
    bb = int(bb)
    B_pad = _round_up(B, bb)
    nb = B_pad // bb

    # ---- lane-dense output packing factor -----------------------------------
    group = max(1, 128 // H) if H < 128 else 1

    # ---- time blocking sized from a conservative VMEM budget ----------------
    gi_isz = jnp.dtype(gidt).itemsize
    out_isz = jnp.dtype(x.dtype).itemsize
    if tt is None:
        budget = 8 * 1024 * 1024                      # per buffer (x2 double-buffer)
        per_step = bb * (3 * H * gi_isz + H * out_isz)
        tt = max(group, budget // max(per_step, 1))
        tt = min(tt, _round_up(T, group))             # don't over-pad short seqs
        tt = max(group, (tt // group) * group)
    tt = int(tt)
    nt = pl.cdiv(T, tt)
    t_pad = nt * tt

    # ---- hoisted, fully-parallel input projection (plain XLA) ---------------
    wih_t = jnp.transpose(w_ih).astype(cdt)           # (H, 3H)
    whh_t = jnp.transpose(w_hh).astype(cdt)           # (H, 3H)
    # Fold b_ih and the r/z parts of b_hh into gi; b_hn must stay in the loop
    # because PyTorch computes n = tanh(gi_n + r * (W_hn h + b_hn)).
    bias = jnp.concatenate([
        (b_ih[:2 * H] + b_hh[:2 * H]).astype(jnp.float32),
        b_ih[2 * H:].astype(jnp.float32)])
    gi = jnp.einsum("bth,hg->btg", x.astype(cdt), wih_t,
                    preferred_element_type=jnp.float32) + bias
    gi = gi.astype(gidt)                               # (B, T, 3H)

    if B_pad != B or t_pad != T:
        gi = jnp.pad(gi, ((0, B_pad - B), (0, t_pad - T), (0, 0)))
    gi = gi.reshape(B_pad, nt, tt, 3 * H)              # free row-major reshape

    bhn = b_hh[2 * H:].reshape(1, H).astype(jnp.float32)

    # ---- explicit VMEM budget (double-buffered blocks + resident weights) ---
    vmem_needed = (2 * bb * tt * 3 * H * gi_isz                 # gi blocks
                   + 2 * bb * tt * H * out_isz                  # out blocks
                   + 2 * H * 3 * H * jnp.dtype(cdt).itemsize    # W_hh^T
                   + bb * H * 4 + 4 * H * 4)
    vmem_limit = int(min(64 * 1024 * 1024,
                         max(32 * 1024 * 1024, vmem_needed * 3 // 2)))

    kernel = functools.partial(_gru_recurrent_kernel, group=group)
    out = pl.pallas_call(
        kernel,
        out_shape=jax.ShapeDtypeStruct((B_pad, nt, tt * H), x.dtype),
        grid_spec=pltpu.PrefetchScalarGridSpec(
            num_scalar_prefetch=0,
            grid=(nb, nt),                 # batch chunks (parallel) x time (serial)
            in_specs=[
                pl.BlockSpec((bb, None, tt, 3 * H), lambda b, t: (b, t, 0, 0)),
                pl.BlockSpec((H, 3 * H), lambda b, t: (0, 0)),   # W_hh^T (resident)
                pl.BlockSpec((1, H), lambda b, t: (0, 0)),       # b_hn   (resident)
            ],
            out_specs=pl.BlockSpec((bb, None, tt * H), lambda b, t: (b, t, 0)),
            scratch_shapes=[pltpu.VMEM((bb, H), jnp.float32)],   # carried hidden
        ),
        compiler_params=pltpu.CompilerParams(
            dimension_semantics=("parallel", "arbitrary"),
            vmem_limit_bytes=vmem_limit,
        ),
    )(gi, whh_t, bhn)

    out = out.reshape(B_pad, t_pad, H)     # free reshape back to batch_first
    return out[:B, :T, :]


def _reference_gru(x, w_ih, w_hh, b_ih, b_hh):
    """Plain-JAX reference matching torch.nn.GRU semantics."""
    B, T, H = x.shape

    def step(h, x_t):
        gi = x_t @ w_ih.T + b_ih
        gh = h @ w_hh.T + b_hh
        r = jax.nn.sigmoid(gi[:, :H] + gh[:, :H])
        z = jax.nn.sigmoid(gi[:, H:2 * H] + gh[:, H:2 * H])
        n = jnp.tanh(gi[:, 2 * H:] + r * gh[:, 2 * H:])
        h_new = (1.0 - z) * n + z * h
        return h_new, h_new

    h0 = jnp.zeros((B, H), jnp.float32)
    _, hs = jax.lax.scan(step, h0, jnp.transpose(x, (1, 0, 2)))
    return jnp.transpose(hs, (1, 0, 2))


if __name__ == "__main__":
    B, T, H = 2, 8, 32   # batch=2, seq=8, dim_hidden=32 (matches the module)

    key = jax.random.PRNGKey(0)
    kx, k1, k2, k3, k4 = jax.random.split(key, 5)
    bound = 1.0 / math.sqrt(H)   # PyTorch nn.GRU init range

    x = jax.random.normal(kx, (B, T, H), dtype=jnp.float32)
    w_ih = jax.random.uniform(k1, (3 * H, H), jnp.float32, -bound, bound)
    w_hh = jax.random.uniform(k2, (3 * H, H), jnp.float32, -bound, bound)
    b_ih = jax.random.uniform(k3, (3 * H,), jnp.float32, -bound, bound)
    b_hh = jax.random.uniform(k4, (3 * H,), jnp.float32, -bound, bound)

    h_ref = _reference_gru(x, w_ih, w_hh, b_ih, b_hh)

    # f32, auto tiling (bb padded to MXU-friendly 8, tt derived from VMEM).
    h1 = gru_forward(x, w_ih, w_hh, b_ih, b_hh)
    jax.block_until_ready(h1)
    assert h1.shape == (B, T, H)
    assert jnp.max(jnp.abs(h1 - h_ref)) < 1e-5

    # f32; tt=4 -> two time-blocks (carried hidden state across grid steps);
    # bb=1 -> two batch chunks (exercises the "parallel" axis, nb >= 2).
    h2 = gru_forward(x, w_ih, w_hh, b_ih, b_hh, tt=4, bb=1)
    jax.block_until_ready(h2)
    assert jnp.max(jnp.abs(h2 - h_ref)) < 1e-5

    # f32; non-divisor time block (T-padding path + partial last store group).
    h3 = gru_forward(x, w_ih, w_hh, b_ih, b_hh, tt=5)
    jax.block_until_ready(h3)
    assert jnp.max(jnp.abs(h3 - h_ref)) < 1e-5

    # bf16 weights + bf16 gi (v6e/v7x MXU path); f32 hidden state / gate math.
    h4 = gru_forward(x, w_ih, w_hh, b_ih, b_hh, tt=8, use_bf16_weights=True)
    jax.block_until_ready(h4)
    assert jnp.max(jnp.abs(h4 - h_ref)) < 3e-2

    print("KERNEL_OK")
</pallas_src>

<mosaic_0001>
module attributes {stable_mosaic.version = 11 : i64} {
  func.func @_gru_recurrent_kernel(%arg0: i32, %arg1: i32, %arg2: memref<8x1x8x96xf32, #tpu.memory_space<vmem>>, %arg3: memref<32x96xf32, #tpu.memory_space<vmem>>, %arg4: memref<1x32xf32, #tpu.memory_space<vmem>>, %arg5: memref<8x1x256xf32, #tpu.memory_space<vmem>>, %arg6: memref<8x32xf32, #tpu.memory_space<vmem>>) attributes {dimension_semantics = [#tpu.dimension_semantics<parallel>, #tpu.dimension_semantics<arbitrary>], iteration_bounds = array<i64: 1, 1>, scalar_prefetch = 0 : i64, scratch_operands = 1 : i64, tpu.core_type = #tpu.core_type<tc>, window_params = [{transform_indices = @transform_0, window_bounds = array<i64: 8, 1, 8, 96>}, {pipeline_mode = #tpu.pipeline_mode<synchronous>, transform_indices = @transform_1, window_bounds = array<i64: 32, 96>}, {pipeline_mode = #tpu.pipeline_mode<synchronous>, transform_indices = @transform_2, window_bounds = array<i64: 1, 32>}, {transform_indices = @transform_3, window_bounds = array<i64: 8, 1, 256>}]} {
    %c0_i32 = arith.constant 0 : i32
    %0 = arith.cmpi eq, %arg1, %c0_i32 : i32
    %1 = arith.extui %0 : i1 to i32
    %c0_i32_0 = arith.constant 0 : i32
    %2 = arith.cmpi ne, %1, %c0_i32_0 : i32
    scf.if %2 {
      %cst_69 = arith.constant 0.000000e+00 : f32
      %263 = vector.broadcast %cst_69 : f32 to vector<8x32xf32>
      %c0_70 = arith.constant 0 : index
      %c0_71 = arith.constant 0 : index
      %264 = vector.load %arg6[%c0_70, %c0_71] : memref<8x32xf32, #tpu.memory_space<vmem>>, vector<8x32xf32>
      tpu.vector_store %arg6[%c0_70, %c0_71], %263 {strides = array<i32>} : memref<8x32xf32, #tpu.memory_space<vmem>>, vector<8x32xf32>,
    } else {
    }
    %c0 = arith.constant 0 : index
    %c0_1 = arith.constant 0 : index
    %3 = vector.load %arg3[%c0, %c0_1] : memref<32x96xf32, #tpu.memory_space<vmem>>, vector<32x96xf32>
    %c0_2 = arith.constant 0 : index
    %c0_3 = arith.constant 0 : index
    %4 = vector.load %arg4[%c0_2, %c0_3] : memref<1x32xf32, #tpu.memory_space<vmem>>, vector<1x32xf32>
    %c0_4 = arith.constant 0 : index
    %c0_5 = arith.constant 0 : index
    %5 = vector.load %arg6[%c0_4, %c0_5] : memref<8x32xf32, #tpu.memory_space<vmem>>, vector<8x32xf32>
    %c0_6 = arith.constant 0 : index
    %c0_7 = arith.constant 0 : index
    %c0_8 = arith.constant 0 : index
    %c0_9 = arith.constant 0 : index
    %6 = vector.load %arg2[%c0_6, %c0_7, %c0_8, %c0_9] : memref<8x1x8x96xf32, #tpu.memory_space<vmem>>, vector<8x1x1x96xf32>
    %7 = vector.shape_cast %6 : vector<8x1x1x96xf32> to vector<8x96xf32>
    %cst = arith.constant dense<0.000000e+00> : vector<8x96xf32>
    %8 = tpu.matmul %5, %3, %cst {dimension_numbers = #tpu.dot_dimension_numbers<[1], [0], [0], [1], [0, 0, 1, 1], [], []>} : vector<8x32xf32>, vector<32x96xf32>, vector<8x96xf32> -> vector<8x96xf32>
    %9 = vector.extract_strided_slice %7 {offsets = [0, 0], sizes = [8, 32], strides = [1, 1]} : vector<8x96xf32> to vector<8x32xf32>
    %10 = vector.extract_strided_slice %8 {offsets = [0, 0], sizes = [8, 32], strides = [1, 1]} : vector<8x96xf32> to vector<8x32xf32>
    %11 = arith.addf %9, %10 : vector<8x32xf32>
    %12 = arith.negf %11 : vector<8x32xf32>
    %13 = math.exp %12 : vector<8x32xf32>
    %cst_10 = arith.constant 1.000000e+00 : f32
    %14 = vector.broadcast %cst_10 : f32 to vector<8x32xf32>
    %15 = arith.addf %14, %13 : vector<8x32xf32>
    %16 = arith.divf %14, %15 : vector<8x32xf32>
    %17 = vector.extract_strided_slice %7 {offsets = [0, 32], sizes = [8, 32], strides = [1, 1]} : vector<8x96xf32> to vector<8x32xf32>
    %18 = vector.extract_strided_slice %8 {offsets = [0, 32], sizes = [8, 32], strides = [1, 1]} : vector<8x96xf32> to vector<8x32xf32>
    %19 = arith.addf %17, %18 : vector<8x32xf32>
    %20 = arith.negf %19 : vector<8x32xf32>
    %21 = math.exp %20 : vector<8x32xf32>
    %cst_11 = arith.constant 1.000000e+00 : f32
    %22 = vector.broadcast %cst_11 : f32 to vector<8x32xf32>
    %23 = arith.addf %22, %21 : vector<8x32xf32>
    %24 = arith.divf %22, %23 : vector<8x32xf32>
    %25 = vector.extract_strided_slice %7 {offsets = [0, 64], sizes = [8, 32], strides = [1, 1]} : vector<8x96xf32> to vector<8x32xf32>
    %26 = vector.extract_strided_slice %8 {offsets = [0, 64], sizes = [8, 32], strides = [1, 1]} : vector<8x96xf32> to vector<8x32xf32>
    %27 = vector.broadcast %4 : vector<1x32xf32> to vector<8x32xf32>
    %28 = arith.addf %26, %27 : vector<8x32xf32>
    %29 = arith.mulf %16, %28 : vector<8x32xf32>
    %30 = arith.addf %25, %29 : vector<8x32xf32>
    %31 = math.tanh %30 : vector<8x32xf32>
    %cst_12 = arith.constant 1.000000e+00 : f32
    %32 = vector.broadcast %cst_12 : f32 to vector<8x32xf32>
    %33 = arith.subf %32, %24 : vector<8x32xf32>
    %34 = arith.mulf %33, %31 : vector<8x32xf32>
    %35 = arith.mulf %24, %5 : vector<8x32xf32>
    %36 = arith.addf %34, %35 : vector<8x32xf32>
    %c0_13 = arith.constant 0 : index
    %c0_14 = arith.constant 0 : index
    %c1 = arith.constant 1 : index
    %c0_15 = arith.constant 0 : index
    %37 = vector.load %arg2[%c0_13, %c0_14, %c1, %c0_15] : memref<8x1x8x96xf32, #tpu.memory_space<vmem>>, vector<8x1x1x96xf32>
    %38 = vector.shape_cast %37 : vector<8x1x1x96xf32> to vector<8x96xf32>
    %cst_16 = arith.constant dense<0.000000e+00> : vector<8x96xf32>
    %39 = tpu.matmul %36, %3, %cst_16 {dimension_numbers = #tpu.dot_dimension_numbers<[1], [0], [0], [1], [0, 0, 1, 1], [], []>} : vector<8x32xf32>, vector<32x96xf32>, vector<8x96xf32> -> vector<8x96xf32>
    %40 = vector.extract_strided_slice %38 {offsets = [0, 0], sizes = [8, 32], strides = [1, 1]} : vector<8x96xf32> to vector<8x32xf32>
    %41 = vector.extract_strided_slice %39 {offsets = [0, 0], sizes = [8, 32], strides = [1, 1]} : vector<8x96xf32> to vector<8x32xf32>
    %42 = arith.addf %40, %41 : vector<8x32xf32>
    %43 = arith.negf %42 : vector<8x32xf32>
    %44 = math.exp %43 : vector<8x32xf32>
    %cst_17 = arith.constant 1.000000e+00 : f32
    %45 = vector.broadcast %cst_17 : f32 to vector<8x32xf32>
    %46 = arith.addf %45, %44 : vector<8x32xf32>
    %47 = arith.divf %45, %46 : vector<8x32xf32>
    %48 = vector.extract_strided_slice %38 {offsets = [0, 32], sizes = [8, 32], strides = [1, 1]} : vector<8x96xf32> to vector<8x32xf32>
    %49 = vector.extract_strided_slice %39 {offsets = [0, 32], sizes = [8, 32], strides = [1, 1]} : vector<8x96xf32> to vector<8x32xf32>
    %50 = arith.addf %48, %49 : vector<8x32xf32>
    %51 = arith.negf %50 : vector<8x32xf32>
    %52 = math.exp %51 : vector<8x32xf32>
    %cst_18 = arith.constant 1.000000e+00 : f32
    %53 = vector.broadcast %cst_18 : f32 to vector<8x32xf32>
    %54 = arith.addf %53, %52 : vector<8x32xf32>
    %55 = arith.divf %53, %54 : vector<8x32xf32>
    %56 = vector.extract_strided_slice %38 {offsets = [0, 64], sizes = [8, 32], strides = [1, 1]} : vector<8x96xf32> to vector<8x32xf32>
    %57 = vector.extract_strided_slice %39 {offsets = [0, 64], sizes = [8, 32], strides = [1, 1]} : vector<8x96xf32> to vector<8x32xf32>
    %58 = vector.broadcast %4 : vector<1x32xf32> to vector<8x32xf32>
    %59 = arith.addf %57, %58 : vector<8x32xf32>
    %60 = arith.mulf %47, %59 : vector<8x32xf32>
    %61 = arith.addf %56, %60 : vector<8x32xf32>
    %62 = math.tanh %61 : vector<8x32xf32>
    %cst_19 = arith.constant 1.000000e+00 : f32
    %63 = vector.broadcast %cst_19 : f32 to vector<8x32xf32>
    %64 = arith.subf %63, %55 : vector<8x32xf32>
    %65 = arith.mulf %64, %62 : vector<8x32xf32>
    %66 = arith.mulf %55, %36 : vector<8x32xf32>
    %67 = arith.addf %65, %66 : vector<8x32xf32>
    %c0_20 = arith.constant 0 : index
    %c0_21 = arith.constant 0 : index
    %c2 = arith.constant 2 : index
    %c0_22 = arith.constant 0 : index
    %68 = vector.load %arg2[%c0_20, %c0_21, %c2, %c0_22] : memref<8x1x8x96xf32, #tpu.memory_space<vmem>>, vector<8x1x1x96xf32>
    %69 = vector.shape_cast %68 : vector<8x1x1x96xf32> to vector<8x96xf32>
    %cst_23 = arith.constant dense<0.000000e+00> : vector<8x96xf32>
    %70 = tpu.matmul %67, %3, %cst_23 {dimension_numbers = #tpu.dot_dimension_numbers<[1], [0], [0], [1], [0, 0, 1, 1], [], []>} : vector<8x32xf32>, vector<32x96xf32>, vector<8x96xf32> -> vector<8x96xf32>
    %71 = vector.extract_strided_slice %69 {offsets = [0, 0], sizes = [8, 32], strides = [1, 1]} : vector<8x96xf32> to vector<8x32xf32>
    %72 = vector.extract_strided_slice %70 {offsets = [0, 0], sizes = [8, 32], strides = [1, 1]} : vector<8x96xf32> to vector<8x32xf32>
    %73 = arith.addf %71, %72 : vector<8x32xf32>
    %74 = arith.negf %73 : vector<8x32xf32>
    %75 = math.exp %74 : vector<8x32xf32>
    %cst_24 = arith.constant 1.000000e+00 : f32
    %76 = vector.broadcast %cst_24 : f32 to vector<8x32xf32>
    %77 = arith.addf %76, %75 : vector<8x32xf32>
    %78 = arith.divf %76, %77 : vector<8x32xf32>
    %79 = vector.extract_strided_slice %69 {offsets = [0, 32], sizes = [8, 32], strides = [1, 1]} : vector<8x96xf32> to vector<8x32xf32>
    %80 = vector.extract_strided_slice %70 {offsets = [0, 32], sizes = [8, 32], strides = [1, 1]} : vector<8x96xf32> to vector<8x32xf32>
    %81 = arith.addf %79, %80 : vector<8x32xf32>
    %82 = arith.negf %81 : vector<8x32xf32>
    %83 = math.exp %82 : vector<8x32xf32>
    %cst_25 = arith.constant 1.000000e+00 : f32
    %84 = vector.broadcast %cst_25 : f32 to vector<8x32xf32>
    %85 = arith.addf %84, %83 : vector<8x32xf32>
    %86 = arith.divf %84, %85 : vector<8x32xf32>
    %87 = vector.extract_strided_slice %69 {offsets = [0, 64], sizes = [8, 32], strides = [1, 1]} : vector<8x96xf32> to vector<8x32xf32>
    %88 = vector.extract_strided_slice %70 {offsets = [0, 64], sizes = [8, 32], strides = [1, 1]} : vector<8x96xf32> to vector<8x32xf32>
    %89 = vector.broadcast %4 : vector<1x32xf32> to vector<8x32xf32>
    %90 = arith.addf %88, %89 : vector<8x32xf32>
    %91 = arith.mulf %78, %90 : vector<8x32xf32>
    %92 = arith.addf %87, %91 : vector<8x32xf32>
    %93 = math.tanh %92 : vector<8x32xf32>
    %cst_26 = arith.constant 1.000000e+00 : f32
    %94 = vector.broadcast %cst_26 : f32 to vector<8x32xf32>
    %95 = arith.subf %94, %86 : vector<8x32xf32>
    %96 = arith.mulf %95, %93 : vector<8x32xf32>
    %97 = arith.mulf %86, %67 : vector<8x32xf32>
    %98 = arith.addf %96, %97 : vector<8x32xf32>
    %c0_27 = arith.constant 0 : index
    %c0_28 = arith.constant 0 : index
    %c3 = arith.constant 3 : index
    %c0_29 = arith.constant 0 : index
    %99 = vector.load %arg2[%c0_27, %c0_28, %c3, %c0_29] : memref<8x1x8x96xf32, #tpu.memory_space<vmem>>, vector<8x1x1x96xf32>
    %100 = vector.shape_cast %99 : vector<8x1x1x96xf32> to vector<8x96xf32>
    %cst_30 = arith.constant dense<0.000000e+00> : vector<8x96xf32>
    %101 = tpu.matmul %98, %3, %cst_30 {dimension_numbers = #tpu.dot_dimension_numbers<[1], [0], [0], [1], [0, 0, 1, 1], [], []>} : vector<8x32xf32>, vector<32x96xf32>, vector<8x96xf32> -> vector<8x96xf32>
    %102 = vector.extract_strided_slice %100 {offsets = [0, 0], sizes = [8, 32], strides = [1, 1]} : vector<8x96xf32> to vector<8x32xf32>
    %103 = vector.extract_strided_slice %101 {offsets = [0, 0], sizes = [8, 32], strides = [1, 1]} : vector<8x96xf32> to vector<8x32xf32>
    %104 = arith.addf %102, %103 : vector<8x32xf32>
    %105 = arith.negf %104 : vector<8x32xf32>
    %106 = math.exp %105 : vector<8x32xf32>
    %cst_31 = arith.constant 1.000000e+00 : f32
    %107 = vector.broadcast %cst_31 : f32 to vector<8x32xf32>
    %108 = arith.addf %107, %106 : vector<8x32xf32>
    %109 = arith.divf %107, %108 : vector<8x32xf32>
    %110 = vector.extract_strided_slice %100 {offsets = [0, 32], sizes = [8, 32], strides = [1, 1]} : vector<8x96xf32> to vector<8x32xf32>
    %111 = vector.extract_strided_slice %101 {offsets = [0, 32], sizes = [8, 32], strides = [1, 1]} : vector<8x96xf32> to vector<8x32xf32>
    %112 = arith.addf %110, %111 : vector<8x32xf32>
    %113 = arith.negf %112 : vector<8x32xf32>
    %114 = math.exp %113 : vector<8x32xf32>
    %cst_32 = arith.constant 1.000000e+00 : f32
    %115 = vector.broadcast %cst_32 : f32 to vector<8x32xf32>
    %116 = arith.addf %115, %114 : vector<8x32xf32>
    %117 = arith.divf %115, %116 : vector<8x32xf32>
    %118 = vector.extract_strided_slice %100 {offsets = [0, 64], sizes = [8, 32], strides = [1, 1]} : vector<8x96xf32> to vector<8x32xf32>
    %119 = vector.extract_strided_slice %101 {offsets = [0, 64], sizes = [8, 32], strides = [1, 1]} : vector<8x96xf32> to vector<8x32xf32>
    %120 = vector.broadcast %4 : vector<1x32xf32> to vector<8x32xf32>
    %121 = arith.addf %119, %120 : vector<8x32xf32>
    %122 = arith.mulf %109, %121 : vector<8x32xf32>
    %123 = arith.addf %118, %122 : vector<8x32xf32>
    %124 = math.tanh %123 : vector<8x32xf32>
    %cst_33 = arith.constant 1.000000e+00 : f32
    %125 = vector.broadcast %cst_33 : f32 to vector<8x32xf32>
    %126 = arith.subf %125, %117 : vector<8x32xf32>
    %127 = arith.mulf %126, %124 : vector<8x32xf32>
    %128 = arith.mulf %117, %98 : vector<8x32xf32>
    %129 = arith.addf %127, %128 : vector<8x32xf32>
    %130 = tpu.concatenate %36, %67, %98, %129 in 1 : vector<8x32xf32>, vector<8x32xf32>, vector<8x32xf32>, vector<8x32xf32> -> vector<8x128xf32>
    %c0_34 = arith.constant 0 : index
    %c0_35 = arith.constant 0 : index
    %c0_36 = arith.constant 0 : index
    %131 = vector.load %arg5[%c0_34, %c0_35, %c0_36] : memref<8x1x256xf32, #tpu.memory_space<vmem>>, vector<8x1x128xf32>
    %132 = vector.shape_cast %131 : vector<8x1x128xf32> to vector<8x128xf32>
    %133 = vector.shape_cast %130 : vector<8x128xf32> to vector<8x1x128xf32>
    tpu.vector_store %arg5[%c0_34, %c0_35, %c0_36], %133 {strides = array<i32>} : memref<8x1x256xf32, #tpu.memory_space<vmem>>, vector<8x1x128xf32>,
    %c0_37 = arith.constant 0 : index
    %c0_38 = arith.constant 0 : index
    %c4 = arith.constant 4 : index
    %c0_39 = arith.constant 0 : index
    %134 = vector.load %arg2[%c0_37, %c0_38, %c4, %c0_39] : memref<8x1x8x96xf32, #tpu.memory_space<vmem>>, vector<8x1x1x96xf32>
    %135 = vector.shape_cast %134 : vector<8x1x1x96xf32> to vector<8x96xf32>
    %cst_40 = arith.constant dense<0.000000e+00> : vector<8x96xf32>
    %136 = tpu.matmul %129, %3, %cst_40 {dimension_numbers = #tpu.dot_dimension_numbers<[1], [0], [0], [1], [0, 0, 1, 1], [], []>} : vector<8x32xf32>, vector<32x96xf32>, vector<8x96xf32> -> vector<8x96xf32>
    %137 = vector.extract_strided_slice %135 {offsets = [0, 0], sizes = [8, 32], strides = [1, 1]} : vector<8x96xf32> to vector<8x32xf32>
    %138 = vector.extract_strided_slice %136 {offsets = [0, 0], sizes = [8, 32], strides = [1, 1]} : vector<8x96xf32> to vector<8x32xf32>
    %139 = arith.addf %137, %138 : vector<8x32xf32>
    %140 = arith.negf %139 : vector<8x32xf32>
    %141 = math.exp %140 : vector<8x32xf32>
    %cst_41 = arith.constant 1.000000e+00 : f32
    %142 = vector.broadcast %cst_41 : f32 to vector<8x32xf32>
    %143 = arith.addf %142, %141 : vector<8x32xf32>
    %144 = arith.divf %142, %143 : vector<8x32xf32>
    %145 = vector.extract_strided_slice %135 {offsets = [0, 32], sizes = [8, 32], strides = [1, 1]} : vector<8x96xf32> to vector<8x32xf32>
    %146 = vector.extract_strided_slice %136 {offsets = [0, 32], sizes = [8, 32], strides = [1, 1]} : vector<8x96xf32> to vector<8x32xf32>
    %147 = arith.addf %145, %146 : vector<8x32xf32>
    %148 = arith.negf %147 : vector<8x32xf32>
    %149 = math.exp %148 : vector<8x32xf32>
    %cst_42 = arith.constant 1.000000e+00 : f32
    %150 = vector.broadcast %cst_42 : f32 to vector<8x32xf32>
    %151 = arith.addf %150, %149 : vector<8x32xf32>
    %152 = arith.divf %150, %151 : vector<8x32xf32>
    %153 = vector.extract_strided_slice %135 {offsets = [0, 64], sizes = [8, 32], strides = [1, 1]} : vector<8x96xf32> to vector<8x32xf32>
    %154 = vector.extract_strided_slice %136 {offsets = [0, 64], sizes = [8, 32], strides = [1, 1]} : vector<8x96xf32> to vector<8x32xf32>
    %155 = vector.broadcast %4 : vector<1x32xf32> to vector<8x32xf32>
    %156 = arith.addf %154, %155 : vector<8x32xf32>
    %157 = arith.mulf %144, %156 : vector<8x32xf32>
    %158 = arith.addf %153, %157 : vector<8x32xf32>
    %159 = math.tanh %158 : vector<8x32xf32>
    %cst_43 = arith.constant 1.000000e+00 : f32
    %160 = vector.broadcast %cst_43 : f32 to vector<8x32xf32>
    %161 = arith.subf %160, %152 : vector<8x32xf32>
    %162 = arith.mulf %161, %159 : vector<8x32xf32>
    %163 = arith.mulf %152, %129 : vector<8x32xf32>
    %164 = arith.addf %162, %163 : vector<8x32xf32>
    %c0_44 = arith.constant 0 : index
    %c0_45 = arith.constant 0 : index
    %c5 = arith.constant 5 : index
    %c0_46 = arith.constant 0 : index
    %165 = vector.load %arg2[%c0_44, %c0_45, %c5, %c0_46] : memref<8x1x8x96xf32, #tpu.memory_space<vmem>>, vector<8x1x1x96xf32>
    %166 = vector.shape_cast %165 : vector<8x1x1x96xf32> to vector<8x96xf32>
    %cst_47 = arith.constant dense<0.000000e+00> : vector<8x96xf32>
    %167 = tpu.matmul %164, %3, %cst_47 {dimension_numbers = #tpu.dot_dimension_numbers<[1], [0], [0], [1], [0, 0, 1, 1], [], []>} : vector<8x32xf32>, vector<32x96xf32>, vector<8x96xf32> -> vector<8x96xf32>
    %168 = vector.extract_strided_slice %166 {offsets = [0, 0], sizes = [8, 32], strides = [1, 1]} : vector<8x96xf32> to vector<8x32xf32>
    %169 = vector.extract_strided_slice %167 {offsets = [0, 0], sizes = [8, 32], strides = [1, 1]} : vector<8x96xf32> to vector<8x32xf32>
    %170 = arith.addf %168, %169 : vector<8x32xf32>
    %171 = arith.negf %170 : vector<8x32xf32>
    %172 = math.exp %171 : vector<8x32xf32>
    %cst_48 = arith.constant 1.000000e+00 : f32
    %173 = vector.broadcast %cst_48 : f32 to vector<8x32xf32>
    %174 = arith.addf %173, %172 : vector<8x32xf32>
    %175 = arith.divf %173, %174 : vector<8x32xf32>
    %176 = vector.extract_strided_slice %166 {offsets = [0, 32], sizes = [8, 32], strides = [1, 1]} : vector<8x96xf32> to vector<8x32xf32>
    %177 = vector.extract_strided_slice %167 {offsets = [0, 32], sizes = [8, 32], strides = [1, 1]} : vector<8x96xf32> to vector<8x32xf32>
    %178 = arith.addf %176, %177 : vector<8x32xf32>
    %179 = arith.negf %178 : vector<8x32xf32>
    %180 = math.exp %179 : vector<8x32xf32>
    %cst_49 = arith.constant 1.000000e+00 : f32
    %181 = vector.broadcast %cst_49 : f32 to vector<8x32xf32>
    %182 = arith.addf %181, %180 : vector<8x32xf32>
    %183 = arith.divf %181, %182 : vector<8x32xf32>
    %184 = vector.extract_strided_slice %166 {offsets = [0, 64], sizes = [8, 32], strides = [1, 1]} : vector<8x96xf32> to vector<8x32xf32>
    %185 = vector.extract_strided_slice %167 {offsets = [0, 64], sizes = [8, 32], strides = [1, 1]} : vector<8x96xf32> to vector<8x32xf32>
    %186 = vector.broadcast %4 : vector<1x32xf32> to vector<8x32xf32>
    %187 = arith.addf %185, %186 : vector<8x32xf32>
    %188 = arith.mulf %175, %187 : vector<8x32xf32>
    %189 = arith.addf %184, %188 : vector<8x32xf32>
    %190 = math.tanh %189 : vector<8x32xf32>
    %cst_50 = arith.constant 1.000000e+00 : f32
    %191 = vector.broadcast %cst_50 : f32 to vector<8x32xf32>
    %192 = arith.subf %191, %183 : vector<8x32xf32>
    %193 = arith.mulf %192, %190 : vector<8x32xf32>
    %194 = arith.mulf %183, %164 : vector<8x32xf32>
    %195 = arith.addf %193, %194 : vector<8x32xf32>
    %c0_51 = arith.constant 0 : index
    %c0_52 = arith.constant 0 : index
    %c6 = arith.constant 6 : index
    %c0_53 = arith.constant 0 : index
    %196 = vector.load %arg2[%c0_51, %c0_52, %c6, %c0_53] : memref<8x1x8x96xf32, #tpu.memory_space<vmem>>, vector<8x1x1x96xf32>
    %197 = vector.shape_cast %196 : vector<8x1x1x96xf32> to vector<8x96xf32>
    %cst_54 = arith.constant dense<0.000000e+00> : vector<8x96xf32>
    %198 = tpu.matmul %195, %3, %cst_54 {dimension_numbers = #tpu.dot_dimension_numbers<[1], [0], [0], [1], [0, 0, 1, 1], [], []>} : vector<8x32xf32>, vector<32x96xf32>, vector<8x96xf32> -> vector<8x96xf32>
    %199 = vector.extract_strided_slice %197 {offsets = [0, 0], sizes = [8, 32], strides = [1, 1]} : vector<8x96xf32> to vector<8x32xf32>
    %200 = vector.extract_strided_slice %198 {offsets = [0, 0], sizes = [8, 32], strides = [1, 1]} : vector<8x96xf32> to vector<8x32xf32>
    %201 = arith.addf %199, %200 : vector<8x32xf32>
    %202 = arith.negf %201 : vector<8x32xf32>
    %203 = math.exp %202 : vector<8x32xf32>
    %cst_55 = arith.constant 1.000000e+00 : f32
    %204 = vector.broadcast %cst_55 : f32 to vector<8x32xf32>
    %205 = arith.addf %204, %203 : vector<8x32xf32>
    %206 = arith.divf %204, %205 : vector<8x32xf32>
    %207 = vector.extract_strided_slice %197 {offsets = [0, 32], sizes = [8, 32], strides = [1, 1]} : vector<8x96xf32> to vector<8x32xf32>
    %208 = vector.extract_strided_slice %198 {offsets = [0, 32], sizes = [8, 32], strides = [1, 1]} : vector<8x96xf32> to vector<8x32xf32>
    %209 = arith.addf %207, %208 : vector<8x32xf32>
    %210 = arith.negf %209 : vector<8x32xf32>
    %211 = math.exp %210 : vector<8x32xf32>
    %cst_56 = arith.constant 1.000000e+00 : f32
    %212 = vector.broadcast %cst_56 : f32 to vector<8x32xf32>
    %213 = arith.addf %212, %211 : vector<8x32xf32>
    %214 = arith.divf %212, %213 : vector<8x32xf32>
    %215 = vector.extract_strided_slice %197 {offsets = [0, 64], sizes = [8, 32], strides = [1, 1]} : vector<8x96xf32> to vector<8x32xf32>
    %216 = vector.extract_strided_slice %198 {offsets = [0, 64], sizes = [8, 32], strides = [1, 1]} : vector<8x96xf32> to vector<8x32xf32>
    %217 = vector.broadcast %4 : vector<1x32xf32> to vector<8x32xf32>
    %218 = arith.addf %216, %217 : vector<8x32xf32>
    %219 = arith.mulf %206, %218 : vector<8x32xf32>
    %220 = arith.addf %215, %219 : vector<8x32xf32>
    %221 = math.tanh %220 : vector<8x32xf32>
    %cst_57 = arith.constant 1.000000e+00 : f32
    %222 = vector.broadcast %cst_57 : f32 to vector<8x32xf32>
    %223 = arith.subf %222, %214 : vector<8x32xf32>
    %224 = arith.mulf %223, %221 : vector<8x32xf32>
    %225 = arith.mulf %214, %195 : vector<8x32xf32>
    %226 = arith.addf %224, %225 : vector<8x32xf32>
    %c0_58 = arith.constant 0 : index
    %c0_59 = arith.constant 0 : index
    %c7 = arith.constant 7 : index
    %c0_60 = arith.constant 0 : index
    %227 = vector.load %arg2[%c0_58, %c0_59, %c7, %c0_60] : memref<8x1x8x96xf32, #tpu.memory_space<vmem>>, vector<8x1x1x96xf32>
    %228 = vector.shape_cast %227 : vector<8x1x1x96xf32> to vector<8x96xf32>
    %cst_61 = arith.constant dense<0.000000e+00> : vector<8x96xf32>
    %229 = tpu.matmul %226, %3, %cst_61 {dimension_numbers = #tpu.dot_dimension_numbers<[1], [0], [0], [1], [0, 0, 1, 1], [], []>} : vector<8x32xf32>, vector<32x96xf32>, vector<8x96xf32> -> vector<8x96xf32>
    %230 = vector.extract_strided_slice %228 {offsets = [0, 0], sizes = [8, 32], strides = [1, 1]} : vector<8x96xf32> to vector<8x32xf32>
    %231 = vector.extract_strided_slice %229 {offsets = [0, 0], sizes = [8, 32], strides = [1, 1]} : vector<8x96xf32> to vector<8x32xf32>
    %232 = arith.addf %230, %231 : vector<8x32xf32>
    %233 = arith.negf %232 : vector<8x32xf32>
    %234 = math.exp %233 : vector<8x32xf32>
    %cst_62 = arith.constant 1.000000e+00 : f32
    %235 = vector.broadcast %cst_62 : f32 to vector<8x32xf32>
    %236 = arith.addf %235, %234 : vector<8x32xf32>
    %237 = arith.divf %235, %236 : vector<8x32xf32>
    %238 = vector.extract_strided_slice %228 {offsets = [0, 32], sizes = [8, 32], strides = [1, 1]} : vector<8x96xf32> to vector<8x32xf32>
    %239 = vector.extract_strided_slice %229 {offsets = [0, 32], sizes = [8, 32], strides = [1, 1]} : vector<8x96xf32> to vector<8x32xf32>
    %240 = arith.addf %238, %239 : vector<8x32xf32>
    %241 = arith.negf %240 : vector<8x32xf32>
    %242 = math.exp %241 : vector<8x32xf32>
    %cst_63 = arith.constant 1.000000e+00 : f32
    %243 = vector.broadcast %cst_63 : f32 to vector<8x32xf32>
    %244 = arith.addf %243, %242 : vector<8x32xf32>
    %245 = arith.divf %243, %244 : vector<8x32xf32>
    %246 = vector.extract_strided_slice %228 {offsets = [0, 64], sizes = [8, 32], strides = [1, 1]} : vector<8x96xf32> to vector<8x32xf32>
    %247 = vector.extract_strided_slice %229 {offsets = [0, 64], sizes = [8, 32], strides = [1, 1]} : vector<8x96xf32> to vector<8x32xf32>
    %248 = vector.broadcast %4 : vector<1x32xf32> to vector<8x32xf32>
    %249 = arith.addf %247, %248 : vector<8x32xf32>
    %250 = arith.mulf %237, %249 : vector<8x32xf32>
    %251 = arith.addf %246, %250 : vector<8x32xf32>
    %252 = math.tanh %251 : vector<8x32xf32>
    %cst_64 = arith.constant 1.000000e+00 : f32
    %253 = vector.broadcast %cst_64 : f32 to vector<8x32xf32>
    %254 = arith.subf %253, %245 : vector<8x32xf32>
    %255 = arith.mulf %254, %252 : vector<8x32xf32>
    %256 = arith.mulf %245, %226 : vector<8x32xf32>
    %257 = arith.addf %255, %256 : vector<8x32xf32>
    %258 = tpu.concatenate %164, %195, %226, %257 in 1 : vector<8x32xf32>, vector<8x32xf32>, vector<8x32xf32>, vector<8x32xf32> -> vector<8x128xf32>
    %c0_65 = arith.constant 0 : index
    %c0_66 = arith.constant 0 : index
    %c128 = arith.constant 128 : index
    %259 = vector.load %arg5[%c0_65, %c0_66, %c128] : memref<8x1x256xf32, #tpu.memory_space<vmem>>, vector<8x1x128xf32>
    %260 = vector.shape_cast %259 : vector<8x1x128xf32> to vector<8x128xf32>
    %261 = vector.shape_cast %258 : vector<8x128xf32> to vector<8x1x128xf32>
    tpu.vector_store %arg5[%c0_65, %c0_66, %c128], %261 {strides = array<i32>} : memref<8x1x256xf32, #tpu.memory_space<vmem>>, vector<8x1x128xf32>,
    %c0_67 = arith.constant 0 : index
    %c0_68 = arith.constant 0 : index
    %262 = vector.load %arg6[%c0_67, %c0_68] : memref<8x32xf32, #tpu.memory_space<vmem>>, vector<8x32xf32>
    tpu.vector_store %arg6[%c0_67, %c0_68], %257 {strides = array<i32>} : memref<8x32xf32, #tpu.memory_space<vmem>>, vector<8x32xf32>,
    return
  }
  func.func @transform_0(%arg0: i32, %arg1: i32) -> (i32, i32, i32, i32) {
    %c0_i32 = arith.constant 0 : i32
    %c0_i32_0 = arith.constant 0 : i32
    %c0_i32_1 = arith.constant 0 : i32
    return %arg0, %arg1, %c0_i32, %c0_i32_0 : i32, i32, i32, i32
  }
  func.func @transform_1(%arg0: i32, %arg1: i32) -> (i32, i32) {
    %c0_i32 = arith.constant 0 : i32
    %c0_i32_0 = arith.constant 0 : i32
    %c0_i32_1 = arith.constant 0 : i32
    return %c0_i32, %c0_i32_0 : i32, i32
  }
  func.func @transform_2(%arg0: i32, %arg1: i32) -> (i32, i32) {
    %c0_i32 = arith.constant 0 : i32
    %c0_i32_0 = arith.constant 0 : i32
    %c0_i32_1 = arith.constant 0 : i32
    return %c0_i32, %c0_i32_0 : i32, i32
  }
  func.func @transform_3(%arg0: i32, %arg1: i32) -> (i32, i32, i32) {
    %c0_i32 = arith.constant 0 : i32
    %c0_i32_0 = arith.constant 0 : i32
    return %arg0, %arg1, %c0_i32 : i32, i32, i32
  }
}

</mosaic_0001>

<bundles_post_ra>
// kernel: tpu_custom_call.1
= control target key start
LH: loop header
LB: loop body
LE: loop exit
PB: predicated region body
PF: predicated region fallthrough
CT: control target
= control target key end

     0   :  { %8 = vsyncpa [#allocation4], 0  ;;  %s4893_s0 = inlined_call_operand.hbm [shape: f32[8,1,8,96], index: 0, kind: input, shape index: {}]   ;;  %s4894_s1 = inlined_call_operand.hbm [shape: f32[32,96], index: 1, kind: input, shape index: {}]   ;;  %s4895_s2 = inlined_call_operand.vmem [shape: f32[1,32], index: 2, kind: input, shape index: {}]   ;;  %s4896_s3 = inlined_call_operand.hbm [shape: f32[8,1,256], index: 3, kind: output, shape index: {}]  }
   0x1   :  { %9 = vsyncpa [#allocation7], 0 }
   0x2   :  { %10 = vsyncpa [#allocation5], 0  ;;  %s3582_s12 = smov [#allocation3]  }
   0x3   :  { %s16_s13 = sshll.u32 %s3582_s12, 4  ;;  %s17_s13 = int_to_ptr.vmem [resolvable:$true] %s16_s13 }
   0x4   :  { %s3524_s14 = scalar_lea.vmem %s17_s13, 1024  ;;  %p3529_p1 = scmp.lt.s32.totalorder %s17_s13, %s17_s13 }
   0x5   :  { %p3525_p0 = scmp.ne.s32.totalorder %s17_s13, %s3524_s14  ;;  %p3530_p2 = scmp.lt.s32.totalorder %s3524_s14, %s3524_s14 }
   0x7   :  { %p3531_p3 = por %p3530_p2, %p3529_p1 }
   0x9   :  { %p3532_p4 = pnand %p3531_p3, %p3525_p0 }
   0xb   :  { %3535 = shalt.err (!%p3532_p4)
}
   0xc   :  { %s3583_s15 = smov 128   ;;  %s3584_s16 = smov 8  }
   0xd   :  { %22 = dma.hbm_to_vmem [thread:$0]  %s4893_s0, 1024, %s17_s13, [#allocation4], %s3583_s15, %s3583_s15, %s3584_s16  }
   0xe   :  { %s3585_s19 = smov [#allocation6]  }
   0xf   :  { %s28_s20 = sshll.u32 %s3585_s19, 4  ;;  %s29_s20 = int_to_ptr.vmem [resolvable:$true] %s28_s20 }
  0x10   :  { %s3544_s21 = scalar_lea.vmem %s29_s20, 512  ;;  %p3549_p6 = scmp.lt.s32.totalorder %s29_s20, %s29_s20 }
  0x11   :  { %p3545_p5 = scmp.ne.s32.totalorder %s29_s20, %s3544_s21  ;;  %p3550_p7 = scmp.lt.s32.totalorder %s3544_s21, %s3544_s21 }
  0x13   :  { %p3551_p8 = por %p3550_p7, %p3549_p6 }
  0x15   :  { %p3552_p9 = pnand %p3551_p8, %p3545_p5 }
  0x17   :  { %3555 = shalt.err (!%p3552_p9)
}
  0x18   :  { %34 = dma.hbm_to_vmem [thread:$0]  %s4894_s1, 512, %s29_s20, [#allocation7], %s3583_s15, %s3583_s15, %s3584_s16  }
  0x19   :  { %3576 = dma.done.wait [#allocation4], 1024  }
  0x1a   :  { %3577 = vsyncadd [#allocation4], 4294966272 }
  0x1b   :  { %3578 = dma.done.wait [#allocation7], 512  }
  0x1c   :  { %3579 = vsyncadd [#allocation7], 4294966784  ;;  %vm47_vm0 = vcmask 261120   ;;  %v3586_v0 = vmov 0.0   ;;  %vm3587_vm1 = vmmov 0   ;;  %v3628_v1 = vld [vmem:[#allocation6 + $0x18] sm:$0xff] }
  0x1d   :  { %3028 = vmatprep.subr.mxu0 %v3586_v0  ;;  %3036 = vmatprep.mubr.msk.f32.mxu0 %vm3587_vm1, %v3586_v0  ;;  %48 = vst.msk [vmem:[#allocation2] sm:$0xff] %vm47_vm0, %v3586_v0  ;;  %v3630_v2 = vld [vmem:[#allocation6 + $0x10] sm:$0xff]  ;;  %v2924_v3 = vld [vmem:[%s4895_s2] ss:$0 sm:$0xff]  ;;  %v3638_v4 = vld [vmem:[#allocation6 + $0x8] sm:$0xff]  ;;  %s3588_s24 = smov 64  }
  0x1e   :  { %3039 = vmatprep.subr.mxu1 %v3586_v0  ;;  %3047 = vmatprep.mubr.msk.f32.mxu1 %vm3587_vm1, %v3586_v0  ;;  %v3644_v5 = vld [vmem:[#allocation6] sm:$0xff]  ;;  %v3683_v20 = vld [vmem:[#allocation3 + $0x8] sm:$0x1]  ;;  %v3686_v23 = vld [vmem:[#allocation3 + $0x10] sm:$0x1]  ;;  %s3589_s2 = smov 32  }
  0x1f   :  { %3029 = vmatpush3.msra.mxu0 %v3628_v1  ;;  %3040 = vmatpush3.msra.mxu1 %v3628_v1  ;;  %v3681_v18 = vld [vmem:[#allocation3] sm:$0x1]  ;;  %v3689_v26 = vld [vmem:[#allocation3 + $0x18] sm:$0x1]  ;;  %v3695_v34 = vld [vmem:[#allocation3 + $0x28] sm:$0x1] }
  0x20   :  { %3030 = vmatprep.subr.mxu0 %v3586_v0  ;;  %214 = vrot.lane.b32.xlu0 %v2924_v3, %s3588_s24  ;;  %v3692_v30 = vld [vmem:[#allocation3 + $0x20] sm:$0x1]  ;;  %v3698_v38 = vld [vmem:[#allocation3 + $0x30] sm:$0x1]  ;;  %v3702_v44 = vld [vmem:[#allocation3 + $0x38] sm:$0x1] }
  0x21   :  { %3031 = vmatpush3.msra.mxu0 %v3630_v2  ;;  %3041 = vmatprep.subr.mxu1 %v3586_v0  ;;  %s3590_s25 = smov 96   ;;  %vm418_vm2 = vcmask 1041409   ;;  %vm421_vm3 = vcmask 1042434   ;;  %vm424_vm4 = vcmask 1043459   ;;  %vm427_vm5 = vcmask 1044484   ;;  %s3592_s26 = smov [#allocation8]  }
  0x22   :  { %3032 = vmatprep.subr.mxu0 %v3586_v0  ;;  %3042 = vmatpush3.msra.mxu1 %v3630_v2  ;;  %vm430_vm6 = vcmask 1045509   ;;  %vm433_vm7 = vcmask 1046534   ;;  %vm436_vm8 = vcmask 1047559   ;;  %vm1426_vm9 = vcmask 523264   ;;  %s2902_s27 = sshll.u32 %s3592_s26, 4  ;;  %s2903_s27 = int_to_ptr.vmem [resolvable:$true] %s2902_s27 }
  0x23   :  { %3033 = vmatpush3.msra.mxu0 %v3638_v4  ;;  %3043 = vmatprep.subr.mxu1 %v3586_v0  ;;  %vm1428_vm10 = vcmask 785408   ;;  %s3556_s28 = scalar_lea.vmem %s2903_s27, 256  ;;  %p3561_p11 = scmp.lt.s32.totalorder %s2903_s27, %s2903_s27 }
  0x24   :  { %v3648_v6 = vld [vmem:[#allocation2] sm:$0xff]  ;;  %3034 = vmatprep.subr.mxu0 %v3586_v0  ;;  %3044 = vmatpush3.msra.mxu1 %v3638_v4  ;;  %p3557_p10 = scmp.ne.s32.totalorder %s2903_s27, %s3556_s28  ;;  %p3562_p12 = scmp.lt.s32.totalorder %s3556_s28, %s3556_s28 }
  0x25   :  { %3035 = vmatpush3.msra.mxu0 %v3644_v5  ;;  %3045 = vmatprep.subr.mxu1 %v3586_v0 }
  0x26   :  { %3037 = vmatmul.mubr.msk.f32.vlgmr.msra.gmra.mxu0 %vm47_vm0, %v3648_v6  ;;  %3046 = vmatpush3.msra.mxu1 %v3644_v5  ;;  %p3563_p13 = por %p3562_p12, %p3561_p11 }
  0x27   :  { %3050 = vmatprep.subr.mxu0 %v3586_v0  ;;  %3058 = vmatprep.mubr.msk.f32.mxu0 %vm3587_vm1, %v3586_v0 }
  0x28   :  { %3051 = vmatpush3.msra.mxu0 %v3628_v1  ;;  %3061 = vmatprep.subr.mxu1 %v3586_v0  ;;  %p3564_p0 = pnand %p3563_p13, %p3557_p10 }
  0x29   :  { %3052 = vmatprep.subr.mxu0 %v3586_v0 }
  0x2a   :  { %3053 = vmatpush3.msra.mxu0 %v3630_v2 }
  0x2b   :  { %3054 = vmatprep.subr.mxu0 %v3586_v0 }
  0x2c   :  { %3055 = vmatpush3.msra.mxu0 %v3638_v4 }
  0x2d   :  { %3056 = vmatprep.subr.mxu0 %v3586_v0 }
  0x2e   :  { %3057 = vmatpush3.msra.mxu0 %v3644_v5 }
  0x2f   :  { %3072 = vmatprep.subr.mxu0 %v3586_v0 }
  0x92   :  { %v3670_v8 = vpop.permute.xlu0 %214 }
  0xe6   :  { %v133_v7 = vpop.f32.mrf.mxu0 }
  0xe7   :  { %v217_v10 = vadd.f32 %v3670_v8, %v133_v7  ;;  %v138_v19 = vrot.slane %v133_v7, 1  ;;  %v139_v21 = vrot.slane %v133_v7, 2  ;;  %v153_v22 = vadd.f32 %v133_v7, %v3681_v18 }
  0xe8   :  { %v3038_v9 = vpop.f32.mrf.mxu0  ;;  %v140_v24 = vrot.slane %v133_v7, 3  ;;  %v141_v27 = vrot.slane %v133_v7, 4  ;;  %v142_v31 = vrot.slane %v133_v7, 5  ;;  %v143_v35 = vrot.slane %v133_v7, 6 }
  0xe9   :  { %226 = vrot.lane.b32.xlu1 %v217_v10, %s3588_s24  ;;  %v219_v11 = vrot.slane %v217_v10, 1  ;;  %v220_v12 = vrot.slane %v217_v10, 2  ;;  %v221_v13 = vrot.slane %v217_v10, 3  ;;  %v222_v14 = vrot.slane %v217_v10, 4 }
  0xea   :  { %v223_v15 = vrot.slane %v217_v10, 5  ;;  %v224_v16 = vrot.slane %v217_v10, 6  ;;  %v225_v17 = vrot.slane %v217_v10, 7  ;;  %v154_v25 = vadd.f32 %v138_v19, %v3683_v20 }
  0xeb   :  { %228 = vrot.lane.b32.xlu0 %v219_v11, %s3588_s24  ;;  %v155_v28 = vadd.f32 %v139_v21, %v3686_v23  ;;  %v2916_v29 = vmul.f32 -1.442695, %v153_v22  ;;  %v156_v32 = vadd.f32 %v140_v24, %v3689_v26  ;;  %v157_v36 = vadd.f32 %v141_v27, %v3692_v30 }
  0xec   :  { %v2917_v33 = vmul.f32 -1.442695, %v154_v25  ;;  %v158_v39 = vadd.f32 %v142_v31, %v3695_v34  ;;  %v144_v41 = vrot.slane %v133_v7, 7  ;;  %v159_v42 = vadd.f32 %v143_v35, %v3698_v38 }
  0xed   :  { %230 = vrot.lane.b32.xlu1 %v220_v12, %s3588_s24  ;;  %3128 = vpow2.f32 %v2916_v29  ;;  %v2918_v37 = vmul.f32 -1.442695, %v155_v28  ;;  %v2919_v40 = vmul.f32 -1.442695, %v156_v32  ;;  %v2920_v43 = vmul.f32 -1.442695, %v157_v36 }
  0xee   :  { %3130 = vpow2.f32 %v2917_v33  ;;  %v2921_v45 = vmul.f32 -1.442695, %v158_v39  ;;  %v160_v46 = vadd.f32 %v144_v41, %v3702_v44  ;;  %v2922_v47 = vmul.f32 -1.442695, %v159_v42 }
  0xef   :  { %232 = vrot.lane.b32.xlu0 %v221_v13, %s3588_s24  ;;  %3132 = vpow2.f32 %v2918_v37  ;;  %v354_v39 = vrot.slane %v3648_v6, 1  ;;  %v356_v41 = vrot.slane %v3648_v6, 3  ;;  %v357_v42 = vrot.slane %v3648_v6, 4 }
  0xf0   :  { %3134 = vpow2.f32 %v2919_v40  ;;  %v2923_v48 = vmul.f32 -1.442695, %v160_v46  ;;  %v355_v40 = vrot.slane %v3648_v6, 2 }
  0xf1   :  { %234 = vrot.lane.b32.xlu1 %v222_v14, %s3588_s24  ;;  %3136 = vpow2.f32 %v2920_v43  ;;  %v358_v43 = vrot.slane %v3648_v6, 5 }
  0xf2   :  { %3138 = vpow2.f32 %v2921_v45  ;;  %v359_v45 = vrot.slane %v3648_v6, 6 }
  0xf3   :  { %236 = vrot.lane.b32.xlu0 %v223_v15, %s3588_s24  ;;  %3140 = vpow2.f32 %v2922_v47 }
  0xf4   :  { %3142 = vpow2.f32 %v2923_v48 }
  0xf5   :  { %238 = vrot.lane.b32.xlu1 %v224_v16, %s3588_s24 }
  0xf7   :  { %240 = vrot.lane.b32.xlu0 %v225_v17, %s3588_s24 }
  0xfa   :  { %v3129_v49 = vpop.eup %3128 }
  0xfb   :  { %v3131_v50 = vpop.eup %3130  ;;  %v185_v51 = vadd.f32 1.0, %v3129_v49 }
  0xfc   :  { %v3133_v52 = vpop.eup %3132  ;;  %v186_v53 = vadd.f32 1.0, %v3131_v50 }
  0xfd   :  { %v3135_v54 = vpop.eup %3134  ;;  %v187_v55 = vadd.f32 1.0, %v3133_v52  ;;  %3144 = vrcp.f32 %v185_v51 }
  0xfe   :  { %v3137_v56 = vpop.eup %3136  ;;  %v188_v57 = vadd.f32 1.0, %v3135_v54  ;;  %3146 = vrcp.f32 %v186_v53 }
  0xff   :  { %v3139_v58 = vpop.eup %3138  ;;  %v189_v59 = vadd.f32 1.0, %v3137_v56  ;;  %3148 = vrcp.f32 %v187_v55 }
 0x100   :  { %v3141_v60 = vpop.eup %3140  ;;  %v190_v61 = vadd.f32 1.0, %v3139_v58  ;;  %3150 = vrcp.f32 %v188_v57 }
 0x101   :  { %v191_v62 = vadd.f32 1.0, %v3141_v60  ;;  %3152 = vrcp.f32 %v189_v59  ;;  %v3143_v63 = vpop.eup %3142 }
 0x102   :  { %3154 = vrcp.f32 %v190_v61  ;;  %v192_v3 = vadd.f32 1.0, %v3143_v63 }
 0x103   :  { %3156 = vrcp.f32 %v191_v62 }
 0x104   :  { %3158 = vrcp.f32 %v192_v3 }
 0x10a   :  { %v3705_v7 = vpop.eup %3144 }
 0x10b   :  { %v3708_v12 = vpop.eup %3146 }
 0x10c   :  { %v3711_v13 = vpop.eup %3148 }
 0x10d   :  { %v3715_v19 = vpop.eup %3150 }
 0x10e   :  { %v3719_v21 = vpop.eup %3152 }
 0x10f   :  { %v3723_v28 = vpop.eup %3154 }
 0x110   :  { %v3727_v29 = vpop.eup %3156 }
 0x111   :  { %v3733_v36 = vpop.eup %3158 }
 0x15b   :  { %v227_v9 = vpop.permute.xlu1 %226 }
 0x15c   :  { %v250_v10 = vmul.f32 %v3705_v7, %v227_v9 }
 0x15d   :  { %v229_v11 = vpop.permute.xlu0 %228 }
 0x15e   :  { %266 = vrot.lane.b32.xlu1 %v250_v10, %s3588_s24  ;;  %v251_v15 = vmul.f32 %v3708_v12, %v229_v11 }
 0x15f   :  { %v231_v14 = vpop.permute.xlu1 %230 }
 0x160   :  { %v252_v16 = vmul.f32 %v3711_v13, %v231_v14 }
 0x161   :  { %v233_v17 = vpop.permute.xlu0 %232 }
 0x162   :  { %270 = vrot.lane.b32.xlu0 %v252_v16, %s3588_s24  ;;  %268 = vrot.lane.b32.xlu1 %v251_v15, %s3588_s24  ;;  %v253_v24 = vmul.f32 %v3715_v19, %v233_v17 }
 0x163   :  { %v235_v22 = vpop.permute.xlu1 %234 }
 0x164   :  { %v254_v25 = vmul.f32 %v3719_v21, %v235_v22  ;;  %v307_v22 = vsub.f32 1.0, %v3708_v12 }
 0x165   :  { %v237_v27 = vpop.permute.xlu0 %236 }
 0x166   :  { %272 = vrot.lane.b32.xlu0 %v253_v24, %s3588_s24  ;;  %274 = vrot.lane.b32.xlu1 %v254_v25, %s3588_s24  ;;  %v255_v32 = vmul.f32 %v3723_v28, %v237_v27  ;;  %v308_v24 = vsub.f32 1.0, %v3711_v13 }
 0x167   :  { %v239_v31 = vpop.permute.xlu1 %238 }
 0x168   :  { %v256_v33 = vmul.f32 %v3727_v29, %v239_v31 }
 0x169   :  { %v241_v35 = vpop.permute.xlu0 %240 }
 0x16a   :  { %276 = vrot.lane.b32.xlu0 %v255_v32, %s3588_s24  ;;  %278 = vrot.lane.b32.xlu1 %v256_v33, %s3588_s24  ;;  %v257_v37 = vmul.f32 %v3733_v36, %v241_v35  ;;  %v309_v35 = vsub.f32 1.0, %v3715_v19 }
 0x16e   :  { %280 = vrot.lane.b32.xlu0 %v257_v37, %s3588_s24  ;;  %361 = vrot.lane.b32.xlu1 %v3648_v6, %s3589_s2 }
 0x172   :  { %363 = vrot.lane.b32.xlu0 %v354_v39, %s3589_s2  ;;  %v310_v39 = vsub.f32 1.0, %v3719_v21 }
 0x176   :  { %365 = vrot.lane.b32.xlu0 %v355_v40, %s3589_s2  ;;  %v306_v40 = vsub.f32 1.0, %v3705_v7 }
 0x17a   :  { %367 = vrot.lane.b32.xlu0 %v356_v41, %s3589_s2 }
 0x17e   :  { %369 = vrot.lane.b32.xlu0 %v357_v42, %s3589_s2 }
 0x182   :  { %371 = vrot.lane.b32.xlu0 %v358_v43, %s3589_s2  ;;  %v311_v43 = vsub.f32 1.0, %v3723_v28 }
 0x186   :  { %373 = vrot.lane.b32.xlu0 %v359_v45, %s3589_s2 }
 0x1d0   :  { %v267_v46 = vpop.permute.xlu1 %266 }
 0x1d1   :  { %v290_v47 = vadd.f32 %v267_v46, %v3681_v18 }
 0x1d3   :  { %3160 = vtanh.f32 %v290_v47 }
 0x1d4   :  { %v271_v48 = vpop.permute.xlu0 %270  ;;  %v269_v49 = vpop.permute.xlu1 %268 }
 0x1d5   :  { %v291_v50 = vadd.f32 %v269_v49, %v3683_v20  ;;  %v292_v51 = vadd.f32 %v271_v48, %v3686_v23 }
 0x1d7   :  { %3162 = vtanh.f32 %v291_v50 }
 0x1d8   :  { %v273_v52 = vpop.permute.xlu0 %272  ;;  %v275_v54 = vpop.permute.xlu1 %274 }
 0x1d9   :  { %v293_v53 = vadd.f32 %v273_v52, %v3689_v26  ;;  %v294_v55 = vadd.f32 %v275_v54, %v3692_v30 }
 0x1db   :  { %3164 = vtanh.f32 %v293_v53 }
 0x1dc   :  { %3166 = vtanh.f32 %v292_v51  ;;  %v277_v56 = vpop.permute.xlu0 %276  ;;  %v279_v58 = vpop.permute.xlu1 %278 }
 0x1dd   :  { %3168 = vtanh.f32 %v294_v55  ;;  %v295_v18 = vadd.f32 %v277_v56, %v3695_v34  ;;  %v296_v20 = vadd.f32 %v279_v58, %v3698_v38  ;;  %v360_v34 = vrot.slane %v3648_v6, 7 }
 0x1df   :  { %3170 = vtanh.f32 %v295_v18 }
 0x1e0   :  { %v3161_v57 = vpop.eup %3160  ;;  %v281_v59 = vpop.permute.xlu0 %280  ;;  %3172 = vtanh.f32 %v296_v20 }
 0x1e1   :  { %322 = vrot.lane.b32.xlu1 %v3161_v57, %s3590_s25  ;;  %v297_v30 = vadd.f32 %v281_v59, %v3702_v44  ;;  %v362_v9 = vpop.permute.xlu1 %361  ;;  %v313_v59 = vsub.f32 1.0, %v3733_v36 }
 0x1e2   :  { %v385_v51 = vmul.f32 %v3705_v7, %v362_v9 }
 0x1e3   :  { %3174 = vtanh.f32 %v297_v30 }
 0x1e4   :  { %v3163_v23 = vpop.eup %3162  ;;  %v364_v63 = vpop.permute.xlu0 %363 }
 0x1e5   :  { %324 = vrot.lane.b32.xlu1 %v3163_v23, %s3590_s25  ;;  %v386_v33 = vmul.f32 %v3708_v12, %v364_v63 }
 0x1e8   :  { %v3165_v26 = vpop.eup %3164  ;;  %v366_v3 = vpop.permute.xlu0 %365 }
 0x1e9   :  { %v3167_v60 = vpop.eup %3166  ;;  %328 = vrot.lane.b32.xlu0 %v3165_v26, %s3590_s25  ;;  %v387_v37 = vmul.f32 %v3711_v13, %v366_v3  ;;  %v312_v13 = vsub.f32 1.0, %v3727_v29 }
 0x1ea   :  { %326 = vrot.lane.b32.xlu1 %v3167_v60, %s3590_s25  ;;  %v3169_v61 = vpop.eup %3168 }
 0x1ec   :  { %v3171_v38 = vpop.eup %3170  ;;  %v368_v6 = vpop.permute.xlu0 %367 }
 0x1ed   :  { %375 = vrot.lane.b32.xlu0 %v360_v34, %s3589_s2  ;;  %v3173_v62 = vpop.eup %3172  ;;  %v388_v48 = vmul.f32 %v3715_v19, %v368_v6 }
 0x1ee   :  { %330 = vrot.lane.b32.xlu1 %v3169_v61, %s3590_s25 }
 0x1f0   :  { %v3175_v44 = vpop.eup %3174  ;;  %v370_v10 = vpop.permute.xlu0 %369 }
 0x1f1   :  { %v389_v50 = vmul.f32 %v3719_v21, %v370_v10 }
 0x1f2   :  { %332 = vrot.lane.b32.xlu1 %v3171_v38, %s3590_s25 }
 0x1f4   :  { %v372_v14 = vpop.permute.xlu0 %371 }
 0x1f5   :  { %v390_v52 = vmul.f32 %v3723_v28, %v372_v14 }
 0x1f6   :  { %334 = vrot.lane.b32.xlu1 %v3173_v62, %s3590_s25 }
 0x1f8   :  { %v374_v16 = vpop.permute.xlu0 %373 }
 0x1f9   :  { %v391_v57 = vmul.f32 %v3727_v29, %v374_v16 }
 0x1fa   :  { %336 = vrot.lane.b32.xlu1 %v3175_v44, %s3590_s25 }
 0x253   :  { %v323_v11 = vpop.permute.xlu1 %322 }
 0x254   :  { %v346_v12 = vmul.f32 %v323_v11, %v306_v40  ;;  %v3845_v40 = vld [vmem:[#allocation3 + $0x9] sm:$0x1] }
 0x256   :  { %v3793_v21 = vadd.f32 %v385_v51, %v346_v12 }
 0x257   :  { %v325_v15 = vpop.permute.xlu1 %324 }
 0x258   :  { %v347_v25 = vmul.f32 %v325_v15, %v307_v22 }
 0x25a   :  { %v3776_v41 = vadd.f32 %v386_v33, %v347_v25 }
 0x25b   :  { %v329_v27 = vpop.permute.xlu0 %328 }
 0x25c   :  { %v327_v17 = vpop.permute.xlu1 %326  ;;  %v349_v42 = vmul.f32 %v329_v27, %v309_v35  ;;  %v417_v53 = vrot.slane %v3776_v41, 7  ;;  %v3842_v35 = vld [vmem:[#allocation3 + $0x11] sm:$0x1] }
 0x25d   :  { %v348_v31 = vmul.f32 %v327_v17, %v308_v24 }
 0x25e   :  { %v3787_v54 = vadd.f32 %v388_v48, %v349_v42  ;;  %v419_v28 = vsel %vm418_vm2, %v417_v53, %v3793_v21 }
 0x25f   :  { %v3779_v45 = vadd.f32 %v387_v37, %v348_v31  ;;  %v376_v58 = vpop.permute.xlu0 %375 }
 0x260   :  { %v331_v32 = vpop.permute.xlu1 %330  ;;  %v423_v20 = vrot.slane %v3787_v54, 5  ;;  %v392_v60 = vmul.f32 %v3733_v36, %v376_v58 }
 0x261   :  { %v350_v46 = vmul.f32 %v331_v32, %v310_v39  ;;  %v420_v55 = vrot.slane %v3779_v45, 6  ;;  %v3840_v32 = vld [vmem:[#allocation3 + $0x1] sm:$0x1] }
 0x263   :  { %v3790_v56 = vadd.f32 %v389_v50, %v350_v46  ;;  %v422_v26 = vsel %vm421_vm3, %v420_v55, %v419_v28  ;;  %v3848_v46 = vld [vmem:[#allocation3 + $0x19] sm:$0x1] }
 0x264   :  { %v333_v47 = vpop.permute.xlu1 %332  ;;  %v425_v44 = vsel %vm424_vm4, %v423_v20, %v422_v26  ;;  %v3860_v20 = vld [vmem:[#allocation3 + $0x39] sm:$0x1] }
 0x265   :  { %v351_v49 = vmul.f32 %v333_v47, %v311_v43  ;;  %v426_v30 = vrot.slane %v3790_v56, 4 }
 0x267   :  { %v3795_v18 = vadd.f32 %v390_v52, %v351_v49  ;;  %v428_v63 = vsel %vm427_vm5, %v426_v30, %v425_v44  ;;  %v3851_v49 = vld [vmem:[#allocation3 + $0x21] sm:$0x1]  ;;  %v3854_v52 = vld [vmem:[#allocation3 + $0x29] sm:$0x1] }
 0x268   :  { %v335_v19 = vpop.permute.xlu1 %334 }
 0x269   :  { %v352_v7 = vmul.f32 %v335_v19, %v312_v13  ;;  %v429_v34 = vrot.slane %v3795_v18, 3 }
 0x26b   :  { %v3800_v23 = vadd.f32 %v391_v57, %v352_v7  ;;  %v431_v6 = vsel %vm430_vm6, %v429_v34, %v428_v63  ;;  %v3857_v57 = vld [vmem:[#allocation3 + $0x31] sm:$0x1] }
 0x26c   :  { %v337_v29 = vpop.permute.xlu1 %336 }
 0x26d   :  { %v353_v61 = vmul.f32 %v337_v29, %v313_v59  ;;  %v432_v38 = vrot.slane %v3800_v23, 2 }
 0x26f   :  { %v3808_v62 = vadd.f32 %v392_v60, %v353_v61  ;;  %v434_v36 = vsel %vm433_vm7, %v432_v38, %v431_v6 }
 0x271   :  { %v435_v3 = vrot.slane %v3808_v62, 1 }
 0x273   :  { %v437_v9 = vsel %vm436_vm8, %v435_v3, %v434_v36 }
 0x274   :  { %438 = vrot.lane.b32.xlu1 %v437_v9, %s3590_s25 }
 0x2e6   :  { %v3817_v10 = vpop.permute.xlu1 %438 }
 0x2e7   :  { %3048 = vmatmul.mubr.msk.f32.vlgmr.msra.gmra.mxu1 %vm47_vm0, %v3817_v10 }
 0x2e8   :  { %3062 = vmatpush3.msra.mxu1 %v3628_v1  ;;  %3069 = vmatprep.mubr.msk.f32.mxu1 %vm3587_vm1, %v3586_v0 }
 0x2e9   :  { %3063 = vmatprep.subr.mxu1 %v3586_v0 }
 0x2ea   :  { %3064 = vmatpush3.msra.mxu1 %v3630_v2 }
 0x2eb   :  { %3065 = vmatprep.subr.mxu1 %v3586_v0 }
 0x2ec   :  { %3066 = vmatpush3.msra.mxu1 %v3638_v4 }
 0x2ed   :  { %3067 = vmatprep.subr.mxu1 %v3586_v0 }
 0x2ee   :  { %3068 = vmatpush3.msra.mxu1 %v3644_v5 }
 0x2ef   :  { %3083 = vmatprep.subr.mxu1 %v3586_v0 }
 0x3a7   :  { %v508_v11 = vpop.f32.mrf.mxu1 }
 0x3a8   :  { %v584_v15 = vadd.f32 %v508_v11, %v3670_v8  ;;  %v514_v33 = vrot.slane %v508_v11, 2  ;;  %v513_v37 = vrot.slane %v508_v11, 1  ;;  %v528_v39 = vadd.f32 %v508_v11, %v3840_v32 }
 0x3a9   :  { %v3049_v14 = vpop.f32.mrf.mxu1  ;;  %v515_v42 = vrot.slane %v508_v11, 3  ;;  %v516_v47 = vrot.slane %v508_v11, 4  ;;  %v517_v50 = vrot.slane %v508_v11, 5  ;;  %v518_v53 = vrot.slane %v508_v11, 6 }
 0x3aa   :  { %593 = vrot.lane.b32.xlu0 %v584_v15, %s3588_s24  ;;  %v587_v16 = vrot.slane %v584_v15, 2  ;;  %v586_v17 = vrot.slane %v584_v15, 1  ;;  %v588_v22 = vrot.slane %v584_v15, 3  ;;  %v589_v24 = vrot.slane %v584_v15, 4 }
 0x3ab   :  { %v590_v25 = vrot.slane %v584_v15, 5  ;;  %v591_v27 = vrot.slane %v584_v15, 6  ;;  %v592_v31 = vrot.slane %v584_v15, 7  ;;  %v530_v43 = vadd.f32 %v514_v33, %v3842_v35 }
 0x3ac   :  { %597 = vrot.lane.b32.xlu1 %v587_v16, %s3588_s24  ;;  %v529_v48 = vadd.f32 %v513_v37, %v3845_v40  ;;  %v2926_v12 = vmul.f32 -1.442695, %v528_v39  ;;  %v531_v13 = vadd.f32 %v515_v42, %v3848_v46  ;;  %v532_v55 = vadd.f32 %v516_v47, %v3851_v49 }
 0x3ad   :  { %v2928_v51 = vmul.f32 -1.442695, %v530_v43  ;;  %v519_v7 = vrot.slane %v508_v11, 7  ;;  %v533_v58 = vadd.f32 %v517_v50, %v3854_v52  ;;  %v534_v59 = vadd.f32 %v518_v53, %v3857_v57 }
 0x3ae   :  { %595 = vrot.lane.b32.xlu0 %v586_v17, %s3588_s24  ;;  %3176 = vpow2.f32 %v2926_v12  ;;  %v2927_v19 = vmul.f32 -1.442695, %v529_v48  ;;  %v2929_v28 = vmul.f32 -1.442695, %v531_v13  ;;  %v2930_v26 = vmul.f32 -1.442695, %v532_v55 }
 0x3af   :  { %3178 = vpow2.f32 %v2928_v51  ;;  %v535_v30 = vadd.f32 %v519_v7, %v3860_v20  ;;  %v2931_v29 = vmul.f32 -1.442695, %v533_v58  ;;  %v2932_v60 = vmul.f32 -1.442695, %v534_v59 }
 0x3b0   :  { %599 = vrot.lane.b32.xlu1 %v588_v22, %s3588_s24  ;;  %3180 = vpow2.f32 %v2927_v19 }
 0x3b1   :  { %3182 = vpow2.f32 %v2929_v28  ;;  %v2933_v34 = vmul.f32 -1.442695, %v535_v30 }
 0x3b2   :  { %601 = vrot.lane.b32.xlu0 %v589_v24, %s3588_s24  ;;  %3184 = vpow2.f32 %v2930_v26 }
 0x3b3   :  { %3186 = vpow2.f32 %v2931_v29 }
 0x3b4   :  { %603 = vrot.lane.b32.xlu1 %v590_v25, %s3588_s24  ;;  %3188 = vpow2.f32 %v2932_v60 }
 0x3b5   :  { %3190 = vpow2.f32 %v2933_v34 }
 0x3b6   :  { %605 = vrot.lane.b32.xlu0 %v591_v27, %s3588_s24 }
 0x3b8   :  { %607 = vrot.lane.b32.xlu1 %v592_v31, %s3588_s24 }
 0x3bb   :  { %v3177_v61 = vpop.eup %3176 }
 0x3bc   :  { %v3179_v38 = vpop.eup %3178  ;;  %v560_v44 = vadd.f32 1.0, %v3177_v61 }
 0x3bd   :  { %v3181_v63 = vpop.eup %3180  ;;  %v562_v3 = vadd.f32 1.0, %v3179_v38 }
 0x3be   :  { %v3183_v6 = vpop.eup %3182  ;;  %v561_v36 = vadd.f32 1.0, %v3181_v63  ;;  %3192 = vrcp.f32 %v560_v44 }
 0x3bf   :  { %v3185_v9 = vpop.eup %3184  ;;  %v563_v11 = vadd.f32 1.0, %v3183_v6  ;;  %3194 = vrcp.f32 %v562_v3 }
 0x3c0   :  { %v3187_v14 = vpop.eup %3186  ;;  %v564_v15 = vadd.f32 1.0, %v3185_v9  ;;  %3196 = vrcp.f32 %v561_v36 }
 0x3c1   :  { %v3189_v16 = vpop.eup %3188  ;;  %v565_v17 = vadd.f32 1.0, %v3187_v14  ;;  %3198 = vrcp.f32 %v563_v11 }
 0x3c2   :  { %v3191_v22 = vpop.eup %3190  ;;  %v566_v24 = vadd.f32 1.0, %v3189_v16  ;;  %3200 = vrcp.f32 %v564_v15 }
 0x3c3   :  { %v567_v25 = vadd.f32 1.0, %v3191_v22  ;;  %3202 = vrcp.f32 %v565_v17 }
 0x3c4   :  { %3204 = vrcp.f32 %v566_v24 }
 0x3c5   :  { %3206 = vrcp.f32 %v567_v25 }
 0x3cb   :  { %v3864_v27 = vpop.eup %3192 }
 0x3cc   :  { %v3867_v37 = vpop.eup %3194 }
 0x3cd   :  { %v3871_v43 = vpop.eup %3196 }
 0x3ce   :  { %v3875_v12 = vpop.eup %3198 }
 0x3cf   :  { %v3879_v51 = vpop.eup %3200 }
 0x3d0   :  { %v3883_v19 = vpop.eup %3202 }
 0x3d1   :  { %v3887_v28 = vpop.eup %3204 }
 0x3d2   :  { %v3891_v30 = vpop.eup %3206 }
 0x41c   :  { %v594_v31 = vpop.permute.xlu0 %593 }
 0x41d   :  { %v617_v33 = vmul.f32 %v3864_v27, %v594_v31  ;;  %v675_v31 = vsub.f32 1.0, %v3867_v37 }
 0x41e   :  { %v598_v39 = vpop.permute.xlu1 %597 }
 0x41f   :  { %v619_v42 = vmul.f32 %v3867_v37, %v598_v39  ;;  %633 = vrot.lane.b32.xlu0 %v617_v33, %s3588_s24  ;;  %v673_v39 = vsub.f32 1.0, %v3864_v27 }
 0x420   :  { %v596_v47 = vpop.permute.xlu0 %595 }
 0x421   :  { %v618_v48 = vmul.f32 %v3871_v43, %v596_v47  ;;  %637 = vrot.lane.b32.xlu1 %v619_v42, %s3588_s24  ;;  %v674_v47 = vsub.f32 1.0, %v3871_v43 }
 0x422   :  { %v600_v50 = vpop.permute.xlu1 %599 }
 0x423   :  { %v620_v13 = vmul.f32 %v3875_v12, %v600_v50  ;;  %635 = vrot.lane.b32.xlu0 %v618_v48, %s3588_s24  ;;  %v723_v48 = vmul.f32 %v3867_v37, %v3779_v45  ;;  %v677_v37 = vsub.f32 1.0, %v3879_v51 }
 0x424   :  { %v602_v53 = vpop.permute.xlu0 %601 }
 0x425   :  { %v621_v55 = vmul.f32 %v3879_v51, %v602_v53  ;;  %639 = vrot.lane.b32.xlu1 %v620_v13, %s3588_s24  ;;  %v722_v53 = vmul.f32 %v3871_v43, %v3776_v41  ;;  %v725_v41 = vmul.f32 %v3879_v51, %v3790_v56 }
 0x426   :  { %v604_v7 = vpop.permute.xlu1 %603 }
 0x427   :  { %v622_v58 = vmul.f32 %v3883_v19, %v604_v7  ;;  %641 = vrot.lane.b32.xlu0 %v621_v55, %s3588_s24  ;;  %v676_v7 = vsub.f32 1.0, %v3875_v12 }
 0x428   :  { %v606_v59 = vpop.permute.xlu0 %605 }
 0x429   :  { %v623_v26 = vmul.f32 %v3887_v28, %v606_v59  ;;  %643 = vrot.lane.b32.xlu1 %v622_v58, %s3588_s24  ;;  %v721_v58 = vmul.f32 %v3864_v27, %v3793_v21 }
 0x42a   :  { %v608_v29 = vpop.permute.xlu1 %607 }
 0x42b   :  { %v624_v60 = vmul.f32 %v3891_v30, %v608_v29  ;;  %645 = vrot.lane.b32.xlu0 %v623_v26, %s3588_s24 }
 0x42d   :  { %647 = vrot.lane.b32.xlu1 %v624_v60, %s3588_s24  ;;  %v724_v60 = vmul.f32 %v3875_v12, %v3787_v54  ;;  %v726_v54 = vmul.f32 %v3883_v19, %v3795_v18 }
 0x491   :  { %v634_v34 = vpop.permute.xlu0 %633 }
 0x492   :  { %v657_v61 = vadd.f32 %v634_v34, %v3840_v32  ;;  %v678_v34 = vsub.f32 1.0, %v3883_v19 }
 0x493   :  { %v638_v38 = vpop.permute.xlu1 %637 }
 0x494   :  { %3208 = vtanh.f32 %v657_v61  ;;  %v659_v44 = vadd.f32 %v638_v38, %v3842_v35 }
 0x495   :  { %v636_v63 = vpop.permute.xlu0 %635 }
 0x496   :  { %3210 = vtanh.f32 %v659_v44  ;;  %v658_v3 = vadd.f32 %v636_v63, %v3845_v40  ;;  %v679_v63 = vsub.f32 1.0, %v3887_v28 }
 0x497   :  { %v640_v6 = vpop.permute.xlu1 %639 }
 0x498   :  { %3212 = vtanh.f32 %v658_v3  ;;  %v660_v36 = vadd.f32 %v640_v6, %v3848_v46 }
 0x499   :  { %v642_v9 = vpop.permute.xlu0 %641 }
 0x49a   :  { %3214 = vtanh.f32 %v660_v36  ;;  %v661_v11 = vadd.f32 %v642_v9, %v3851_v49  ;;  %v727_v9 = vmul.f32 %v3887_v28, %v3800_v23 }
 0x49b   :  { %v644_v14 = vpop.permute.xlu1 %643 }
 0x49c   :  { %3216 = vtanh.f32 %v661_v11  ;;  %v662_v32 = vadd.f32 %v644_v14, %v3854_v52  ;;  %v680_v14 = vsub.f32 1.0, %v3891_v30 }
 0x49d   :  { %v646_v15 = vpop.permute.xlu0 %645 }
 0x49e   :  { %3218 = vtanh.f32 %v662_v32  ;;  %v663_v35 = vadd.f32 %v646_v15, %v3857_v57 }
 0x49f   :  { %v648_v16 = vpop.permute.xlu1 %647 }
 0x4a0   :  { %3220 = vtanh.f32 %v663_v35  ;;  %v664_v40 = vadd.f32 %v648_v16, %v3860_v20  ;;  %v728_v35 = vmul.f32 %v3891_v30, %v3808_v62 }
 0x4a1   :  { %v3209_v17 = vpop.eup %3208 }
 0x4a2   :  { %3222 = vtanh.f32 %v664_v40  ;;  %689 = vrot.lane.b32.xlu0 %v3209_v17, %s3590_s25 }
 0x4a3   :  { %v3211_v46 = vpop.eup %3210 }
 0x4a4   :  { %693 = vrot.lane.b32.xlu1 %v3211_v46, %s3590_s25 }
 0x4a5   :  { %v3213_v49 = vpop.eup %3212 }
 0x4a6   :  { %691 = vrot.lane.b32.xlu0 %v3213_v49, %s3590_s25 }
 0x4a7   :  { %v3215_v22 = vpop.eup %3214 }
 0x4a8   :  { %695 = vrot.lane.b32.xlu1 %v3215_v22, %s3590_s25 }
 0x4a9   :  { %v3217_v52 = vpop.eup %3216 }
 0x4aa   :  { %697 = vrot.lane.b32.xlu0 %v3217_v52, %s3590_s25 }
 0x4ab   :  { %v3219_v57 = vpop.eup %3218 }
 0x4ac   :  { %699 = vrot.lane.b32.xlu1 %v3219_v57, %s3590_s25 }
 0x4ad   :  { %v3221_v20 = vpop.eup %3220 }
 0x4ae   :  { %701 = vrot.lane.b32.xlu0 %v3221_v20, %s3590_s25 }
 0x4af   :  { %v3223_v24 = vpop.eup %3222 }
 0x4b0   :  { %703 = vrot.lane.b32.xlu1 %v3223_v24, %s3590_s25 }
 0x514   :  { %v690_v25 = vpop.permute.xlu0 %689 }
 0x515   :  { %v713_v13 = vmul.f32 %v690_v25, %v673_v39 }
 0x516   :  { %v694_v33 = vpop.permute.xlu1 %693 }
 0x517   :  { %v715_v42 = vmul.f32 %v694_v33, %v675_v31  ;;  %v3932_v61 = vadd.f32 %v721_v58, %v713_v13  ;;  %v3999_v58 = vld [vmem:[#allocation3 + $0x1a] sm:$0x1] }
 0x518   :  { %v692_v50 = vpop.permute.xlu0 %691 }
 0x519   :  { %v714_v55 = vmul.f32 %v692_v50, %v674_v47  ;;  %v3922_v59 = vadd.f32 %v723_v48, %v715_v42  ;;  %v3991_v42 = vld [vmem:[#allocation3 + $0x2] sm:$0x1]  ;;  %v3993_v48 = vld [vmem:[#allocation3 + $0x12] sm:$0x1] }
 0x51a   :  { %v696_v26 = vpop.permute.xlu1 %695 }
 0x51b   :  { %v3924_v29 = vadd.f32 %v722_v53, %v714_v55  ;;  %v716_v45 = vmul.f32 %v696_v26, %v676_v7  ;;  %v755_v44 = vrot.slane %v3922_v59, 6  ;;  %v3996_v53 = vld [vmem:[#allocation3 + $0xa] sm:$0x1] }
 0x51c   :  { %v698_v43 = vpop.permute.xlu0 %697 }
 0x51d   :  { %v753_v21 = vrot.slane %v3924_v29, 7  ;;  %v3935_v27 = vadd.f32 %v724_v60, %v716_v45  ;;  %v717_v38 = vmul.f32 %v698_v43, %v677_v37  ;;  %v4002_v37 = vld [vmem:[#allocation3 + $0x22] sm:$0x1] }
 0x51e   :  { %v700_v12 = vpop.permute.xlu1 %699 }
 0x51f   :  { %v754_v56 = vsel %vm418_vm2, %v753_v21, %v3932_v61  ;;  %v757_v51 = vrot.slane %v3935_v27, 5  ;;  %v3944_v3 = vadd.f32 %v725_v41, %v717_v38  ;;  %v718_v6 = vmul.f32 %v700_v12, %v678_v34  ;;  %v4005_v21 = vld [vmem:[#allocation3 + $0x2a] sm:$0x1]  ;;  %v4008_v12 = vld [vmem:[#allocation3 + $0x32] sm:$0x1] }
 0x520   :  { %v756_v36 = vsel %vm421_vm3, %v755_v44, %v754_v56  ;;  %v702_v11 = vpop.permute.xlu0 %701 }
 0x521   :  { %v758_v18 = vsel %vm424_vm4, %v757_v51, %v756_v36  ;;  %v759_v19 = vrot.slane %v3944_v3, 4  ;;  %v3952_v32 = vadd.f32 %v726_v54, %v718_v6  ;;  %v719_v15 = vmul.f32 %v702_v11, %v679_v63  ;;  %v4011_v6 = vld [vmem:[#allocation3 + $0x3a] sm:$0x1] }
 0x522   :  { %v704_v16 = vpop.permute.xlu1 %703 }
 0x523   :  { %v761_v40 = vrot.slane %v3952_v32, 3  ;;  %v3957_v17 = vadd.f32 %v727_v9, %v719_v15  ;;  %v720_v46 = vmul.f32 %v704_v16, %v680_v14  ;;  %v760_v23 = vsel %vm427_vm5, %v759_v19, %v758_v18 }
 0x525   :  { %v763_v28 = vrot.slane %v3957_v17, 2  ;;  %v3961_v49 = vadd.f32 %v728_v35, %v720_v46  ;;  %v762_v22 = vsel %vm430_vm6, %v761_v40, %v760_v23 }
 0x527   :  { %v765_v52 = vrot.slane %v3961_v49, 1  ;;  %v764_v57 = vsel %vm433_vm7, %v763_v28, %v762_v22 }
 0x529   :  { %v3967_v62 = vsel %vm436_vm8, %v765_v52, %v764_v57 }
 0x52a   :  { %767 = vrot.lane.b32.xlu0 %v3967_v62, %s3590_s25 }
 0x59c   :  { %v768_v30 = vpop.permute.xlu0 %767 }
 0x59d   :  { %3059 = vmatmul.mubr.msk.f32.vlgmr.msra.gmra.mxu0 %vm47_vm0, %v768_v30 }
 0x59e   :  { %3073 = vmatpush3.msra.mxu0 %v3628_v1  ;;  %3080 = vmatprep.mubr.msk.f32.mxu0 %vm3587_vm1, %v3586_v0 }
 0x59f   :  { %3074 = vmatprep.subr.mxu0 %v3586_v0 }
 0x5a0   :  { %3075 = vmatpush3.msra.mxu0 %v3630_v2 }
 0x5a1   :  { %3076 = vmatprep.subr.mxu0 %v3586_v0 }
 0x5a2   :  { %3077 = vmatpush3.msra.mxu0 %v3638_v4 }
 0x5a3   :  { %3078 = vmatprep.subr.mxu0 %v3586_v0 }
 0x5a4   :  { %3079 = vmatpush3.msra.mxu0 %v3644_v5 }
 0x5a5   :  { %3094 = vmatprep.subr.mxu0 %v3586_v0 }
 0x65d   :  { %v837_v20 = vpop.f32.mrf.mxu0 }
 0x65e   :  { %v913_v1 = vadd.f32 %v837_v20, %v3670_v8  ;;  %v843_v47 = vrot.slane %v837_v20, 2  ;;  %v842_v50 = vrot.slane %v837_v20, 1  ;;  %v857_v13 = vadd.f32 %v837_v20, %v3991_v42 }
 0x65f   :  { %v3060_v24 = vpop.f32.mrf.mxu0  ;;  %v844_v55 = vrot.slane %v837_v20, 3  ;;  %v845_v26 = vrot.slane %v837_v20, 4  ;;  %v846_v41 = vrot.slane %v837_v20, 5  ;;  %v847_v38 = vrot.slane %v837_v20, 6 }
 0x660   :  { %922 = vrot.lane.b32.xlu1 %v913_v1, %s3588_s24  ;;  %v916_v25 = vrot.slane %v913_v1, 2  ;;  %v915_v2 = vrot.slane %v913_v1, 1  ;;  %v917_v31 = vrot.slane %v913_v1, 3  ;;  %v918_v4 = vrot.slane %v913_v1, 4 }
 0x661   :  { %v919_v5 = vrot.slane %v913_v1, 5  ;;  %v920_v33 = vrot.slane %v913_v1, 6  ;;  %v921_v39 = vrot.slane %v913_v1, 7  ;;  %v859_v7 = vadd.f32 %v843_v47, %v3993_v48 }
 0x662   :  { %926 = vrot.lane.b32.xlu0 %v916_v25, %s3588_s24  ;;  %v858_v60 = vadd.f32 %v842_v50, %v3996_v53  ;;  %v2935_v45 = vmul.f32 -1.442695, %v857_v13  ;;  %v860_v43 = vadd.f32 %v844_v55, %v3999_v58  ;;  %v861_v44 = vadd.f32 %v845_v26, %v4002_v37 }
 0x663   :  { %v2937_v34 = vmul.f32 -1.442695, %v859_v7  ;;  %v848_v63 = vrot.slane %v837_v20, 7  ;;  %v862_v56 = vadd.f32 %v846_v41, %v4005_v21  ;;  %v863_v36 = vadd.f32 %v847_v38, %v4008_v12 }
 0x664   :  { %924 = vrot.lane.b32.xlu1 %v915_v2, %s3588_s24  ;;  %3224 = vpow2.f32 %v2935_v45  ;;  %v2936_v54 = vmul.f32 -1.442695, %v858_v60  ;;  %v2938_v51 = vmul.f32 -1.442695, %v860_v43  ;;  %v2939_v9 = vmul.f32 -1.442695, %v861_v44 }
 0x665   :  { %3226 = vpow2.f32 %v2937_v34  ;;  %v864_v11 = vadd.f32 %v848_v63, %v4011_v6  ;;  %v2940_v14 = vmul.f32 -1.442695, %v862_v56  ;;  %v2941_v18 = vmul.f32 -1.442695, %v863_v36 }
 0x666   :  { %928 = vrot.lane.b32.xlu0 %v917_v31, %s3588_s24  ;;  %3228 = vpow2.f32 %v2936_v54 }
 0x667   :  { %3230 = vpow2.f32 %v2938_v51  ;;  %v2942_v19 = vmul.f32 -1.442695, %v864_v11 }
 0x668   :  { %930 = vrot.lane.b32.xlu1 %v918_v4, %s3588_s24  ;;  %3232 = vpow2.f32 %v2939_v9 }
 0x669   :  { %3234 = vpow2.f32 %v2940_v14 }
 0x66a   :  { %932 = vrot.lane.b32.xlu0 %v919_v5, %s3588_s24  ;;  %3236 = vpow2.f32 %v2941_v18 }
 0x66b   :  { %3238 = vpow2.f32 %v2942_v19 }
 0x66c   :  { %934 = vrot.lane.b32.xlu1 %v920_v33, %s3588_s24 }
 0x66e   :  { %936 = vrot.lane.b32.xlu0 %v921_v39, %s3588_s24 }
 0x671   :  { %v3225_v15 = vpop.eup %3224 }
 0x672   :  { %v3227_v35 = vpop.eup %3226  ;;  %v889_v16 = vadd.f32 1.0, %v3225_v15 }
 0x673   :  { %v3229_v40 = vpop.eup %3228  ;;  %v891_v46 = vadd.f32 1.0, %v3227_v35 }
 0x674   :  { %v3231_v23 = vpop.eup %3230  ;;  %v890_v28 = vadd.f32 1.0, %v3229_v40  ;;  %3240 = vrcp.f32 %v889_v16 }
 0x675   :  { %v3233_v22 = vpop.eup %3232  ;;  %v892_v52 = vadd.f32 1.0, %v3231_v23  ;;  %3242 = vrcp.f32 %v891_v46 }
 0x676   :  { %v3235_v57 = vpop.eup %3234  ;;  %v893_v30 = vadd.f32 1.0, %v3233_v22  ;;  %3244 = vrcp.f32 %v890_v28 }
 0x677   :  { %v3237_v20 = vpop.eup %3236  ;;  %v894_v24 = vadd.f32 1.0, %v3235_v57  ;;  %3246 = vrcp.f32 %v892_v52 }
 0x678   :  { %v3239_v1 = vpop.eup %3238  ;;  %v895_v25 = vadd.f32 1.0, %v3237_v20  ;;  %3248 = vrcp.f32 %v893_v30 }
 0x679   :  { %v896_v2 = vadd.f32 1.0, %v3239_v1  ;;  %3250 = vrcp.f32 %v894_v24 }
 0x67a   :  { %3252 = vrcp.f32 %v895_v25 }
 0x67b   :  { %3254 = vrcp.f32 %v896_v2 }
 0x681   :  { %v4015_v31 = vpop.eup %3240 }
 0x682   :  { %v4018_v33 = vpop.eup %3242  ;;  %v1002_v2 = vsub.f32 1.0, %v4015_v31 }
 0x683   :  { %v4022_v50 = vpop.eup %3244  ;;  %v1004_v1 = vsub.f32 1.0, %v4018_v33 }
 0x684   :  { %v4026_v7 = vpop.eup %3246 }
 0x685   :  { %v4030_v45 = vpop.eup %3248 }
 0x686   :  { %v4034_v34 = vpop.eup %3250 }
 0x687   :  { %v4038_v54 = vpop.eup %3252 }
 0x688   :  { %v4042_v51 = vpop.eup %3254 }
 0x6d2   :  { %v923_v4 = vpop.permute.xlu1 %922 }
 0x6d3   :  { %v946_v5 = vmul.f32 %v4015_v31, %v923_v4 }
 0x6d4   :  { %v927_v39 = vpop.permute.xlu0 %926 }
 0x6d5   :  { %v948_v47 = vmul.f32 %v4018_v33, %v927_v39  ;;  %962 = vrot.lane.b32.xlu1 %v946_v5, %s3588_s24  ;;  %v1003_v5 = vsub.f32 1.0, %v4022_v50  ;;  %v1052_v39 = vmul.f32 %v4018_v33, %v3922_v59  ;;  %v1006_v33 = vsub.f32 1.0, %v4030_v45 }
 0x6d6   :  { %v925_v13 = vpop.permute.xlu1 %924 }
 0x6d7   :  { %v947_v55 = vmul.f32 %v4022_v50, %v925_v13  ;;  %966 = vrot.lane.b32.xlu0 %v948_v47, %s3588_s24 }
 0x6d8   :  { %v929_v26 = vpop.permute.xlu0 %928 }
 0x6d9   :  { %v949_v60 = vmul.f32 %v4026_v7, %v929_v26  ;;  %964 = vrot.lane.b32.xlu1 %v947_v55, %s3588_s24  ;;  %v1051_v55 = vmul.f32 %v4022_v50, %v3924_v29  ;;  %v1054_v29 = vmul.f32 %v4030_v45, %v3944_v3 }
 0x6da   :  { %v931_v41 = vpop.permute.xlu1 %930 }
 0x6db   :  { %v950_v43 = vmul.f32 %v4030_v45, %v931_v41  ;;  %968 = vrot.lane.b32.xlu0 %v949_v60, %s3588_s24  ;;  %v1005_v60 = vsub.f32 1.0, %v4026_v7  ;;  %v1050_v41 = vmul.f32 %v4015_v31, %v3932_v61 }
 0x6dc   :  { %v933_v38 = vpop.permute.xlu0 %932 }
 0x6dd   :  { %v951_v44 = vmul.f32 %v4034_v34, %v933_v38  ;;  %970 = vrot.lane.b32.xlu1 %v950_v43, %s3588_s24 }
 0x6de   :  { %v935_v63 = vpop.permute.xlu1 %934 }
 0x6df   :  { %v952_v56 = vmul.f32 %v4038_v54, %v935_v63  ;;  %972 = vrot.lane.b32.xlu0 %v951_v44, %s3588_s24  ;;  %v1053_v63 = vmul.f32 %v4026_v7, %v3935_v27  ;;  %v1055_v27 = vmul.f32 %v4034_v34, %v3952_v32 }
 0x6e0   :  { %v937_v36 = vpop.permute.xlu0 %936 }
 0x6e1   :  { %v953_v9 = vmul.f32 %v4042_v51, %v937_v36  ;;  %974 = vrot.lane.b32.xlu1 %v952_v56, %s3588_s24  ;;  %v1007_v56 = vsub.f32 1.0, %v4034_v34 }
 0x6e3   :  { %976 = vrot.lane.b32.xlu0 %v953_v9, %s3588_s24 }
 0x747   :  { %v963_v11 = vpop.permute.xlu1 %962 }
 0x748   :  { %v986_v14 = vadd.f32 %v963_v11, %v3991_v42 }
 0x749   :  { %v967_v18 = vpop.permute.xlu0 %966 }
 0x74a   :  { %3256 = vtanh.f32 %v986_v14  ;;  %v988_v19 = vadd.f32 %v967_v18, %v3993_v48  ;;  %v1008_v14 = vsub.f32 1.0, %v4038_v54 }
 0x74b   :  { %v965_v15 = vpop.permute.xlu1 %964 }
 0x74c   :  { %3258 = vtanh.f32 %v988_v19  ;;  %v987_v35 = vadd.f32 %v965_v15, %v3996_v53 }
 0x74d   :  { %v969_v16 = vpop.permute.xlu0 %968 }
 0x74e   :  { %3260 = vtanh.f32 %v987_v35  ;;  %v989_v40 = vadd.f32 %v969_v16, %v3999_v58  ;;  %v1056_v35 = vmul.f32 %v4038_v54, %v3957_v17 }
 0x74f   :  { %v971_v46 = vpop.permute.xlu1 %970 }
 0x750   :  { %3262 = vtanh.f32 %v989_v40  ;;  %v990_v23 = vadd.f32 %v971_v46, %v4002_v37  ;;  %v1009_v40 = vsub.f32 1.0, %v4042_v51 }
 0x751   :  { %v973_v28 = vpop.permute.xlu0 %972 }
 0x752   :  { %3264 = vtanh.f32 %v990_v23  ;;  %v991_v42 = vadd.f32 %v973_v28, %v4005_v21  ;;  %v1057_v28 = vmul.f32 %v4042_v51, %v3961_v49 }
 0x753   :  { %v975_v22 = vpop.permute.xlu1 %974 }
 0x754   :  { %3266 = vtanh.f32 %v991_v42  ;;  %v992_v48 = vadd.f32 %v975_v22, %v4008_v12 }
 0x755   :  { %v977_v52 = vpop.permute.xlu0 %976 }
 0x756   :  { %3268 = vtanh.f32 %v992_v48  ;;  %v993_v53 = vadd.f32 %v977_v52, %v4011_v6 }
 0x757   :  { %v3257_v57 = vpop.eup %3256 }
 0x758   :  { %3270 = vtanh.f32 %v993_v53  ;;  %1018 = vrot.lane.b32.xlu1 %v3257_v57, %s3590_s25 }
 0x759   :  { %v3259_v58 = vpop.eup %3258 }
 0x75a   :  { %1022 = vrot.lane.b32.xlu0 %v3259_v58, %s3590_s25 }
 0x75b   :  { %v3261_v37 = vpop.eup %3260 }
 0x75c   :  { %1020 = vrot.lane.b32.xlu1 %v3261_v37, %s3590_s25 }
 0x75d   :  { %v3263_v30 = vpop.eup %3262 }
 0x75e   :  { %1024 = vrot.lane.b32.xlu0 %v3263_v30, %s3590_s25  ;;  %v4123_v30 = vld [vmem:[#allocation6 + $0x18] sm:$0xff] }
 0x75f   :  { %v3265_v21 = vpop.eup %3264 }
 0x760   :  { %1026 = vrot.lane.b32.xlu1 %v3265_v21, %s3590_s25  ;;  %v4129_v21 = vld [vmem:[#allocation6 + $0x10] sm:$0xff] }
 0x761   :  { %v3267_v12 = vpop.eup %3266 }
 0x762   :  { %1028 = vrot.lane.b32.xlu0 %v3267_v12, %s3590_s25  ;;  %v4133_v12 = vld [vmem:[#allocation6 + $0x8] sm:$0xff] }
 0x763   :  { %v3269_v6 = vpop.eup %3268 }
 0x764   :  { %1030 = vrot.lane.b32.xlu1 %v3269_v6, %s3590_s25  ;;  %v4137_v6 = vld [vmem:[#allocation6] sm:$0xff] }
 0x765   :  { %v3271_v20 = vpop.eup %3270 }
 0x766   :  { %1032 = vrot.lane.b32.xlu0 %v3271_v20, %s3590_s25 }
 0x7ca   :  { %v1019_v24 = vpop.permute.xlu1 %1018 }
 0x7cb   :  { %v1042_v13 = vmul.f32 %v1019_v24, %v1002_v2 }
 0x7cc   :  { %v1023_v25 = vpop.permute.xlu0 %1022 }
 0x7cd   :  { %v1044_v4 = vmul.f32 %v1023_v25, %v1004_v1  ;;  %v4083_v36 = vadd.f32 %v1050_v41, %v1042_v13 }
 0x7ce   :  { %v1021_v47 = vpop.permute.xlu1 %1020 }
 0x7cf   :  { %v1043_v26 = vmul.f32 %v1021_v47, %v1003_v5  ;;  %v4073_v43 = vadd.f32 %v1052_v39, %v1044_v4 }
 0x7d0   :  { %v1025_v38 = vpop.permute.xlu0 %1024 }
 0x7d1   :  { %v4075_v44 = vadd.f32 %v1051_v55, %v1043_v26  ;;  %v1045_v59 = vmul.f32 %v1025_v38, %v1005_v60  ;;  %v1084_v11 = vrot.slane %v4073_v43, 6  ;;  %v4150_v55 = vld [vmem:[#allocation3 + $0x3] sm:$0x1]  ;;  %v4152_v60 = vld [vmem:[#allocation3 + $0x13] sm:$0x1] }
 0x7d2   :  { %v1027_v50 = vpop.permute.xlu1 %1026 }
 0x7d3   :  { %v1082_v61 = vrot.slane %v4075_v44, 7  ;;  %v4086_v31 = vadd.f32 %v1053_v63, %v1045_v59  ;;  %v1046_v9 = vmul.f32 %v1027_v50, %v1006_v33  ;;  %v4155_v63 = vld [vmem:[#allocation3 + $0xb] sm:$0x1] }
 0x7d4   :  { %v1029_v7 = vpop.permute.xlu0 %1028 }
 0x7d5   :  { %v1083_v3 = vsel %vm418_vm2, %v1082_v61, %v4083_v36  ;;  %v1086_v45 = vrot.slane %v4086_v31, 5  ;;  %v4095_v18 = vadd.f32 %v1054_v29, %v1046_v9  ;;  %v1047_v19 = vmul.f32 %v1029_v7, %v1007_v56  ;;  %v4158_v29 = vld [vmem:[#allocation3 + $0x1b] sm:$0x1]  ;;  %v4161_v9 = vld [vmem:[#allocation3 + $0x23] sm:$0x1] }
 0x7d6   :  { %v1085_v15 = vsel %vm421_vm3, %v1084_v11, %v1083_v3  ;;  %v1031_v16 = vpop.permute.xlu1 %1030 }
 0x7d7   :  { %v1087_v32 = vsel %vm424_vm4, %v1086_v45, %v1085_v15  ;;  %v1088_v34 = vrot.slane %v4095_v18, 4  ;;  %v4103_v46 = vadd.f32 %v1055_v27, %v1047_v19  ;;  %v1048_v23 = vmul.f32 %v1031_v16, %v1008_v14  ;;  %v4164_v14 = vld [vmem:[#allocation3 + $0x2b] sm:$0x1]  ;;  %v4167_v15 = vld [vmem:[#allocation3 + $0x33] sm:$0x1] }
 0x7d8   :  { %v1033_v42 = vpop.permute.xlu0 %1032 }
 0x7d9   :  { %v1090_v22 = vrot.slane %v4103_v46, 3  ;;  %v4108_v48 = vadd.f32 %v1056_v35, %v1048_v23  ;;  %v1049_v52 = vmul.f32 %v1033_v42, %v1009_v40  ;;  %v1089_v17 = vsel %vm427_vm5, %v1088_v34, %v1087_v32  ;;  %v4170_v32 = vld [vmem:[#allocation3 + $0x3b] sm:$0x1] }
 0x7db   :  { %v1092_v54 = vrot.slane %v4108_v48, 2  ;;  %v4112_v53 = vadd.f32 %v1057_v28, %v1049_v52  ;;  %v1091_v57 = vsel %vm430_vm6, %v1090_v22, %v1089_v17 }
 0x7dd   :  { %v1094_v58 = vrot.slane %v4112_v53, 1  ;;  %v1093_v37 = vsel %vm433_vm7, %v1092_v54, %v1091_v57 }
 0x7df   :  { %v4118_v49 = vsel %vm436_vm8, %v1094_v58, %v1093_v37 }
 0x7e0   :  { %1096 = vrot.lane.b32.xlu1 %v4118_v49, %s3590_s25 }
 0x852   :  { %v1097_v51 = vpop.permute.xlu1 %1096 }
 0x853   :  { %3070 = vmatmul.mubr.msk.f32.vlgmr.msra.gmra.mxu1 %vm47_vm0, %v1097_v51 }
 0x854   :  { %3084 = vmatpush3.msra.mxu1 %v4123_v30  ;;  %3091 = vmatprep.mubr.msk.f32.mxu1 %vm3587_vm1, %v3586_v0 }
 0x855   :  { %3085 = vmatprep.subr.mxu1 %v3586_v0 }
 0x856   :  { %3086 = vmatpush3.msra.mxu1 %v4129_v21 }
 0x857   :  { %3087 = vmatprep.subr.mxu1 %v3586_v0 }
 0x858   :  { %3088 = vmatpush3.msra.mxu1 %v4133_v12 }
 0x859   :  { %3089 = vmatprep.subr.mxu1 %v3586_v0 }
 0x85a   :  { %3090 = vmatpush3.msra.mxu1 %v4137_v6 }
 0x85b   :  { %3105 = vmatprep.subr.mxu1 %v3586_v0 }
 0x913   :  { %v1166_v20 = vpop.f32.mrf.mxu1 }
 0x914   :  { %v1242_v1 = vadd.f32 %v1166_v20, %v3670_v8  ;;  %v1172_v26 = vrot.slane %v1166_v20, 2  ;;  %v1171_v41 = vrot.slane %v1166_v20, 1  ;;  %v1186_v38 = vadd.f32 %v1166_v20, %v4150_v55 }
 0x915   :  { %v3071_v24 = vpop.f32.mrf.mxu1  ;;  %v1173_v59 = vrot.slane %v1166_v20, 3  ;;  %v1174_v50 = vrot.slane %v1166_v20, 4  ;;  %v1175_v11 = vrot.slane %v1166_v20, 5  ;;  %v1176_v3 = vrot.slane %v1166_v20, 6 }
 0x916   :  { %1251 = vrot.lane.b32.xlu0 %v1242_v1, %s3588_s24  ;;  %v1245_v25 = vrot.slane %v1242_v1, 2  ;;  %v1244_v2 = vrot.slane %v1242_v1, 1  ;;  %v1246_v4 = vrot.slane %v1242_v1, 3  ;;  %v1247_v5 = vrot.slane %v1242_v1, 4 }
 0x917   :  { %v1248_v39 = vrot.slane %v1242_v1, 5  ;;  %v1249_v47 = vrot.slane %v1242_v1, 6  ;;  %v1250_v13 = vrot.slane %v1242_v1, 7  ;;  %v1188_v33 = vadd.f32 %v1172_v26, %v4152_v60 }
 0x918   :  { %1255 = vrot.lane.b32.xlu1 %v1245_v25, %s3588_s24  ;;  %v1187_v56 = vadd.f32 %v1171_v41, %v4155_v63  ;;  %v2944_v61 = vmul.f32 -1.442695, %v1186_v38  ;;  %v1189_v27 = vadd.f32 %v1173_v59, %v4158_v29  ;;  %v1190_v45 = vadd.f32 %v1174_v50, %v4161_v9 }
 0x919   :  { %v2946_v7 = vmul.f32 -1.442695, %v1188_v33  ;;  %v1177_v35 = vrot.slane %v1166_v20, 7  ;;  %v1191_v16 = vadd.f32 %v1175_v11, %v4164_v14  ;;  %v1192_v34 = vadd.f32 %v1176_v3, %v4167_v15 }
 0x91a   :  { %1253 = vrot.lane.b32.xlu0 %v1244_v2, %s3588_s24  ;;  %3272 = vpow2.f32 %v2944_v61  ;;  %v2945_v19 = vmul.f32 -1.442695, %v1187_v56  ;;  %v2947_v40 = vmul.f32 -1.442695, %v1189_v27  ;;  %v2948_v23 = vmul.f32 -1.442695, %v1190_v45 }
 0x91b   :  { %3274 = vpow2.f32 %v2946_v7  ;;  %v1193_v28 = vadd.f32 %v1177_v35, %v4170_v32  ;;  %v2949_v42 = vmul.f32 -1.442695, %v1191_v16  ;;  %v2950_v22 = vmul.f32 -1.442695, %v1192_v34 }
 0x91c   :  { %1257 = vrot.lane.b32.xlu1 %v1246_v4, %s3588_s24  ;;  %3276 = vpow2.f32 %v2945_v19 }
 0x91d   :  { %3278 = vpow2.f32 %v2947_v40  ;;  %v2951_v52 = vmul.f32 -1.442695, %v1193_v28 }
 0x91e   :  { %1259 = vrot.lane.b32.xlu0 %v1247_v5, %s3588_s24  ;;  %3280 = vpow2.f32 %v2948_v23 }
 0x91f   :  { %3282 = vpow2.f32 %v2949_v42 }
 0x920   :  { %1261 = vrot.lane.b32.xlu1 %v1248_v39, %s3588_s24  ;;  %3284 = vpow2.f32 %v2950_v22 }
 0x921   :  { %3286 = vpow2.f32 %v2951_v52 }
 0x922   :  { %1263 = vrot.lane.b32.xlu0 %v1249_v47, %s3588_s24 }
 0x924   :  { %1265 = vrot.lane.b32.xlu1 %v1250_v13, %s3588_s24 }
 0x927   :  { %v3273_v17 = vpop.eup %3272 }
 0x928   :  { %v3275_v54 = vpop.eup %3274  ;;  %v1218_v57 = vadd.f32 1.0, %v3273_v17 }
 0x929   :  { %v3277_v58 = vpop.eup %3276  ;;  %v1220_v37 = vadd.f32 1.0, %v3275_v54 }
 0x92a   :  { %v3279_v51 = vpop.eup %3278  ;;  %v1219_v20 = vadd.f32 1.0, %v3277_v58  ;;  %3288 = vrcp.f32 %v1218_v57 }
 0x92b   :  { %v3281_v24 = vpop.eup %3280  ;;  %v1221_v1 = vadd.f32 1.0, %v3279_v51  ;;  %3290 = vrcp.f32 %v1220_v37 }
 0x92c   :  { %v3283_v25 = vpop.eup %3282  ;;  %v1222_v2 = vadd.f32 1.0, %v3281_v24  ;;  %3292 = vrcp.f32 %v1219_v20 }
 0x92d   :  { %v3285_v4 = vpop.eup %3284  ;;  %v1223_v5 = vadd.f32 1.0, %v3283_v25  ;;  %3294 = vrcp.f32 %v1221_v1 }
 0x92e   :  { %v3287_v39 = vpop.eup %3286  ;;  %v1224_v47 = vadd.f32 1.0, %v3285_v4  ;;  %3296 = vrcp.f32 %v1222_v2 }
 0x92f   :  { %v1225_v13 = vadd.f32 1.0, %v3287_v39  ;;  %3298 = vrcp.f32 %v1223_v5 }
 0x930   :  { %3300 = vrcp.f32 %v1224_v47 }
 0x931   :  { %3302 = vrcp.f32 %v1225_v13 }
 0x937   :  { %v4174_v26 = vpop.eup %3288 }
 0x938   :  { %v4177_v59 = vpop.eup %3290 }
 0x939   :  { %v4181_v56 = vpop.eup %3292 }
 0x93a   :  { %v4185_v27 = vpop.eup %3294 }
 0x93b   :  { %v4189_v45 = vpop.eup %3296 }
 0x93c   :  { %v4193_v16 = vpop.eup %3298 }
 0x93d   :  { %v4197_v23 = vpop.eup %3300 }
 0x93e   :  { %v4201_v22 = vpop.eup %3302 }
 0x988   :  { %v1252_v41 = vpop.permute.xlu0 %1251 }
 0x989   :  { %v1275_v38 = vmul.f32 %v4174_v26, %v1252_v41 }
 0x98a   :  { %v1256_v33 = vpop.permute.xlu1 %1255 }
 0x98b   :  { %v1277_v50 = vmul.f32 %v4177_v59, %v1256_v33  ;;  %1291 = vrot.lane.b32.xlu0 %v1275_v38, %s3588_s24  ;;  %v1333_v33 = vsub.f32 1.0, %v4177_v59 }
 0x98c   :  { %v1254_v61 = vpop.permute.xlu0 %1253 }
 0x98d   :  { %v1276_v11 = vmul.f32 %v4181_v56, %v1254_v61  ;;  %1295 = vrot.lane.b32.xlu1 %v1277_v50, %s3588_s24  ;;  %v1331_v61 = vsub.f32 1.0, %v4174_v26 }
 0x98e   :  { %v1258_v7 = vpop.permute.xlu1 %1257 }
 0x98f   :  { %v1278_v3 = vmul.f32 %v4185_v27, %v1258_v7  ;;  %1293 = vrot.lane.b32.xlu0 %v1276_v11, %s3588_s24  ;;  %v1332_v7 = vsub.f32 1.0, %v4181_v56 }
 0x990   :  { %v1260_v19 = vpop.permute.xlu0 %1259 }
 0x991   :  { %v1279_v35 = vmul.f32 %v4189_v45, %v1260_v19  ;;  %1297 = vrot.lane.b32.xlu1 %v1278_v3, %s3588_s24  ;;  %v1381_v3 = vmul.f32 %v4177_v59, %v4073_v43  ;;  %v1335_v59 = vsub.f32 1.0, %v4189_v45 }
 0x992   :  { %v1262_v40 = vpop.permute.xlu1 %1261 }
 0x993   :  { %v1280_v34 = vmul.f32 %v4193_v16, %v1262_v40  ;;  %1299 = vrot.lane.b32.xlu0 %v1279_v35, %s3588_s24  ;;  %v1380_v40 = vmul.f32 %v4181_v56, %v4075_v44  ;;  %v1383_v44 = vmul.f32 %v4189_v45, %v4095_v18 }
 0x994   :  { %v1264_v28 = vpop.permute.xlu0 %1263 }
 0x995   :  { %v1281_v42 = vmul.f32 %v4197_v23, %v1264_v28  ;;  %1301 = vrot.lane.b32.xlu1 %v1280_v34, %s3588_s24  ;;  %v1334_v28 = vsub.f32 1.0, %v4185_v27 }
 0x996   :  { %v1266_v52 = vpop.permute.xlu1 %1265 }
 0x997   :  { %v1282_v17 = vmul.f32 %v4201_v22, %v1266_v52  ;;  %1303 = vrot.lane.b32.xlu0 %v1281_v42, %s3588_s24  ;;  %v1379_v42 = vmul.f32 %v4174_v26, %v4083_v36 }
 0x999   :  { %1305 = vrot.lane.b32.xlu1 %v1282_v17, %s3588_s24 }
 0x9fd   :  { %v1292_v54 = vpop.permute.xlu0 %1291 }
 0x9fe   :  { %v1315_v57 = vadd.f32 %v1292_v54, %v4150_v55 }
 0x9ff   :  { %v1296_v58 = vpop.permute.xlu1 %1295 }
 0xa00   :  { %3304 = vtanh.f32 %v1315_v57  ;;  %v1317_v37 = vadd.f32 %v1296_v58, %v4152_v60  ;;  %v1382_v57 = vmul.f32 %v4185_v27, %v4086_v31  ;;  %v1336_v58 = vsub.f32 1.0, %v4193_v16 }
 0xa01   :  { %v1294_v51 = vpop.permute.xlu0 %1293  ;;  %v1384_v31 = vmul.f32 %v4193_v16, %v4103_v46 }
 0xa02   :  { %3306 = vtanh.f32 %v1317_v37  ;;  %v1316_v20 = vadd.f32 %v1294_v51, %v4155_v63 }
 0xa03   :  { %v1298_v24 = vpop.permute.xlu1 %1297 }
 0xa04   :  { %3308 = vtanh.f32 %v1316_v20  ;;  %v1318_v1 = vadd.f32 %v1298_v24, %v4158_v29  ;;  %v1337_v24 = vsub.f32 1.0, %v4197_v23 }
 0xa05   :  { %v1300_v25 = vpop.permute.xlu0 %1299 }
 0xa06   :  { %3310 = vtanh.f32 %v1318_v1  ;;  %v1319_v2 = vadd.f32 %v1300_v25, %v4161_v9 }
 0xa07   :  { %v1302_v4 = vpop.permute.xlu1 %1301 }
 0xa08   :  { %3312 = vtanh.f32 %v1319_v2  ;;  %v1320_v55 = vadd.f32 %v1302_v4, %v4164_v14  ;;  %v1385_v4 = vmul.f32 %v4197_v23, %v4108_v48 }
 0xa09   :  { %v1304_v5 = vpop.permute.xlu0 %1303 }
 0xa0a   :  { %3314 = vtanh.f32 %v1320_v55  ;;  %v1321_v60 = vadd.f32 %v1304_v5, %v4167_v15  ;;  %v1338_v5 = vsub.f32 1.0, %v4201_v22 }
 0xa0b   :  { %v1306_v39 = vpop.permute.xlu1 %1305 }
 0xa0c   :  { %3316 = vtanh.f32 %v1321_v60  ;;  %v1322_v63 = vadd.f32 %v1306_v39, %v4170_v32 }
 0xa0d   :  { %v3305_v47 = vpop.eup %3304 }
 0xa0e   :  { %3318 = vtanh.f32 %v1322_v63  ;;  %1347 = vrot.lane.b32.xlu0 %v3305_v47, %s3590_s25  ;;  %v1386_v63 = vmul.f32 %v4201_v22, %v4112_v53 }
 0xa0f   :  { %v3307_v29 = vpop.eup %3306 }
 0xa10   :  { %1351 = vrot.lane.b32.xlu1 %v3307_v29, %s3590_s25 }
 0xa11   :  { %v3309_v9 = vpop.eup %3308 }
 0xa12   :  { %1349 = vrot.lane.b32.xlu0 %v3309_v9, %s3590_s25 }
 0xa13   :  { %v3311_v13 = vpop.eup %3310 }
 0xa14   :  { %1353 = vrot.lane.b32.xlu1 %v3311_v13, %s3590_s25 }
 0xa15   :  { %v3313_v14 = vpop.eup %3312 }
 0xa16   :  { %1355 = vrot.lane.b32.xlu0 %v3313_v14, %s3590_s25 }
 0xa17   :  { %v3315_v15 = vpop.eup %3314 }
 0xa18   :  { %1357 = vrot.lane.b32.xlu1 %v3315_v15, %s3590_s25 }
 0xa19   :  { %v3317_v32 = vpop.eup %3316 }
 0xa1a   :  { %1359 = vrot.lane.b32.xlu0 %v3317_v32, %s3590_s25 }
 0xa1b   :  { %v3319_v41 = vpop.eup %3318 }
 0xa1c   :  { %1361 = vrot.lane.b32.xlu1 %v3319_v41, %s3590_s25 }
 0xa80   :  { %v1348_v38 = vpop.permute.xlu0 %1347 }
 0xa81   :  { %v1371_v35 = vmul.f32 %v1348_v38, %v1331_v61 }
 0xa82   :  { %v1352_v50 = vpop.permute.xlu1 %1351 }
 0xa83   :  { %v1373_v11 = vmul.f32 %v1352_v50, %v1333_v33  ;;  %v4242_v37 = vadd.f32 %v1379_v42, %v1371_v35  ;;  %v4302_v42 = vld [vmem:[#allocation3 + $0x14] sm:$0x1] }
 0xa84   :  { %v1350_v19 = vpop.permute.xlu0 %1349 }
 0xa85   :  { %v1372_v34 = vmul.f32 %v1350_v19, %v1332_v7  ;;  %v4232_v52 = vadd.f32 %v1381_v3, %v1373_v11 }
 0xa86   :  { %v1354_v17 = vpop.permute.xlu1 %1353 }
 0xa87   :  { %v4234_v54 = vadd.f32 %v1380_v40, %v1372_v34  ;;  %v1374_v43 = vmul.f32 %v1354_v17, %v1334_v28  ;;  %v1410_v20 = vrot.slane %v4232_v52, 6  ;;  %v4300_v34 = vld [vmem:[#allocation3 + $0x4] sm:$0x1] }
 0xa88   :  { %v1356_v56 = vpop.permute.xlu0 %1355 }
 0xa89   :  { %v1408_v36 = vrot.slane %v4234_v54, 7  ;;  %v4245_v26 = vadd.f32 %v1382_v57, %v1374_v43  ;;  %v1375_v51 = vmul.f32 %v1356_v56, %v1335_v59  ;;  %v4305_v43 = vld [vmem:[#allocation3 + $0xc] sm:$0x1]  ;;  %v4308_v56 = vld [vmem:[#allocation3 + $0x1c] sm:$0x1] }
 0xa8a   :  { %v1358_v27 = vpop.permute.xlu1 %1357 }
 0xa8b   :  { %v1409_v18 = vsel %vm418_vm2, %v1408_v36, %v4242_v37  ;;  %v1412_v45 = vrot.slane %v4245_v26, 5  ;;  %v4254_v1 = vadd.f32 %v1383_v44, %v1375_v51  ;;  %v1376_v25 = vmul.f32 %v1358_v27, %v1336_v58 }
 0xa8c   :  { %v1411_v2 = vsel %vm421_vm3, %v1410_v20, %v1409_v18  ;;  %v1360_v55 = vpop.permute.xlu0 %1359  ;;  %v4311_v20 = vld [vmem:[#allocation3 + $0x24] sm:$0x1]  ;;  %v4314_v18 = vld [vmem:[#allocation3 + $0x2c] sm:$0x1] }
 0xa8d   :  { %v1413_v46 = vsel %vm424_vm4, %v1412_v45, %v1411_v2  ;;  %v1414_v16 = vrot.slane %v4254_v1, 4  ;;  %v4262_v60 = vadd.f32 %v1384_v31, %v1376_v25  ;;  %v1377_v39 = vmul.f32 %v1360_v55, %v1337_v24 }
 0xa8e   :  { %v1362_v47 = vpop.permute.xlu1 %1361 }
 0xa8f   :  { %v1416_v29 = vrot.slane %v4262_v60, 3  ;;  %v4267_v9 = vadd.f32 %v1385_v4, %v1377_v39  ;;  %v1378_v13 = vmul.f32 %v1362_v47, %v1338_v5  ;;  %v1415_v48 = vsel %vm427_vm5, %v1414_v16, %v1413_v46  ;;  %v4317_v4 = vld [vmem:[#allocation3 + $0x34] sm:$0x1]  ;;  %v4320_v16 = vld [vmem:[#allocation3 + $0x3c] sm:$0x1] }
 0xa91   :  { %v1418_v23 = vrot.slane %v4267_v9, 2  ;;  %v4271_v14 = vadd.f32 %v1386_v63, %v1378_v13  ;;  %v1417_v15 = vsel %vm430_vm6, %v1416_v29, %v1415_v48 }
 0xa93   :  { %v1420_v32 = vrot.slane %v4271_v14, 1  ;;  %v1419_v41 = vsel %vm433_vm7, %v1418_v23, %v1417_v15 }
 0xa95   :  { %v4277_v53 = vsel %vm436_vm8, %v1420_v32, %v1419_v41 }
 0xa96   :  { %1508 = vrot.lane.b32.xlu0 %v4277_v53, %s3590_s25 }
 0xb08   :  { %v1509_v22 = vpop.permute.xlu0 %1508 }
 0xb09   :  { %3081 = vmatmul.mubr.msk.f32.vlgmr.msra.gmra.mxu0 %vm47_vm0, %v1509_v22 }
 0xb0a   :  { %3095 = vmatpush3.msra.mxu0 %v4123_v30  ;;  %3102 = vmatprep.mubr.msk.f32.mxu0 %vm3587_vm1, %v3586_v0 }
 0xb0b   :  { %3096 = vmatprep.subr.mxu0 %v3586_v0 }
 0xb0c   :  { %3097 = vmatpush3.msra.mxu0 %v4129_v21 }
 0xb0d   :  { %3098 = vmatprep.subr.mxu0 %v3586_v0 }
 0xb0e   :  { %3099 = vmatpush3.msra.mxu0 %v4133_v12 }
 0xb0f   :  { %3100 = vmatprep.subr.mxu0 %v3586_v0 }
 0xb10   :  { %3101 = vmatpush3.msra.mxu0 %v4137_v6 }
 0xbc9   :  { %v1578_v38 = vpop.f32.mrf.mxu0 }
 0xbca   :  { %v1654_v50 = vadd.f32 %v1578_v38, %v3670_v8  ;;  %v1584_v28 = vrot.slane %v1578_v38, 2  ;;  %v1583_v17 = vrot.slane %v1578_v38, 1  ;;  %v1598_v57 = vadd.f32 %v1578_v38, %v4300_v34 }
 0xbcb   :  { %v3082_v33 = vpop.f32.mrf.mxu0  ;;  %v1585_v59 = vrot.slane %v1578_v38, 3  ;;  %v1586_v58 = vrot.slane %v1578_v38, 4  ;;  %v1587_v31 = vrot.slane %v1578_v38, 5  ;;  %v1588_v45 = vrot.slane %v1578_v38, 6 }
 0xbcc   :  { %1663 = vrot.lane.b32.xlu1 %v1654_v50, %s3588_s24  ;;  %v1657_v61 = vrot.slane %v1654_v50, 2  ;;  %v1656_v11 = vrot.slane %v1654_v50, 1  ;;  %v1658_v7 = vrot.slane %v1654_v50, 3  ;;  %v1659_v3 = vrot.slane %v1654_v50, 4 }
 0xbcd   :  { %v1660_v19 = vrot.slane %v1654_v50, 5  ;;  %v1661_v35 = vrot.slane %v1654_v50, 6  ;;  %v1662_v40 = vrot.slane %v1654_v50, 7  ;;  %v1600_v44 = vadd.f32 %v1584_v28, %v4302_v42 }
 0xbce   :  { %1667 = vrot.lane.b32.xlu0 %v1657_v61, %s3588_s24  ;;  %v1599_v36 = vadd.f32 %v1583_v17, %v4305_v43  ;;  %v2953_v51 = vmul.f32 -1.442695, %v1598_v57  ;;  %v1601_v27 = vadd.f32 %v1585_v59, %v4308_v56  ;;  %v1602_v25 = vadd.f32 %v1586_v58, %v4311_v20 }
 0xbcf   :  { %v2955_v24 = vmul.f32 -1.442695, %v1600_v44  ;;  %v1589_v55 = vrot.slane %v1578_v38, 7  ;;  %v1603_v5 = vadd.f32 %v1587_v31, %v4314_v18  ;;  %v1604_v39 = vadd.f32 %v1588_v45, %v4317_v4 }
 0xbd0   :  { %1665 = vrot.lane.b32.xlu1 %v1656_v11, %s3588_s24  ;;  %3320 = vpow2.f32 %v2953_v51  ;;  %v2954_v2 = vmul.f32 -1.442695, %v1599_v36  ;;  %v2956_v46 = vmul.f32 -1.442695, %v1601_v27  ;;  %v2957_v63 = vmul.f32 -1.442695, %v1602_v25 }
 0xbd1   :  { %3322 = vpow2.f32 %v2955_v24  ;;  %v1605_v47 = vadd.f32 %v1589_v55, %v4320_v16  ;;  %v2958_v29 = vmul.f32 -1.442695, %v1603_v5  ;;  %v2959_v13 = vmul.f32 -1.442695, %v1604_v39 }
 0xbd2   :  { %1669 = vrot.lane.b32.xlu0 %v1658_v7, %s3588_s24  ;;  %3324 = vpow2.f32 %v2954_v2 }
 0xbd3   :  { %3326 = vpow2.f32 %v2956_v46  ;;  %v2960_v48 = vmul.f32 -1.442695, %v1605_v47 }
 0xbd4   :  { %1671 = vrot.lane.b32.xlu1 %v1659_v3, %s3588_s24  ;;  %3328 = vpow2.f32 %v2957_v63 }
 0xbd5   :  { %3330 = vpow2.f32 %v2958_v29 }
 0xbd6   :  { %1673 = vrot.lane.b32.xlu0 %v1660_v19, %s3588_s24  ;;  %3332 = vpow2.f32 %v2959_v13 }
 0xbd7   :  { %3334 = vpow2.f32 %v2960_v48 }
 0xbd8   :  { %1675 = vrot.lane.b32.xlu1 %v1661_v35, %s3588_s24 }
 0xbda   :  { %1677 = vrot.lane.b32.xlu0 %v1662_v40, %s3588_s24 }
 0xbdd   :  { %v3321_v23 = vpop.eup %3320 }
 0xbde   :  { %v3323_v15 = vpop.eup %3322  ;;  %v1630_v32 = vadd.f32 1.0, %v3321_v23 }
 0xbdf   :  { %v3325_v41 = vpop.eup %3324  ;;  %v1632_v22 = vadd.f32 1.0, %v3323_v15 }
 0xbe0   :  { %v3327_v38 = vpop.eup %3326  ;;  %v1631_v33 = vadd.f32 1.0, %v3325_v41  ;;  %3336 = vrcp.f32 %v1630_v32 }
 0xbe1   :  { %v3329_v50 = vpop.eup %3328  ;;  %v1633_v61 = vadd.f32 1.0, %v3327_v38  ;;  %3338 = vrcp.f32 %v1632_v22 }
 0xbe2   :  { %v3331_v11 = vpop.eup %3330  ;;  %v1634_v7 = vadd.f32 1.0, %v3329_v50  ;;  %3340 = vrcp.f32 %v1631_v33 }
 0xbe3   :  { %v3333_v3 = vpop.eup %3332  ;;  %v1635_v19 = vadd.f32 1.0, %v3331_v11  ;;  %3342 = vrcp.f32 %v1633_v61 }
 0xbe4   :  { %v3335_v35 = vpop.eup %3334  ;;  %v1636_v40 = vadd.f32 1.0, %v3333_v3  ;;  %3344 = vrcp.f32 %v1634_v7 }
 0xbe5   :  { %v1637_v28 = vadd.f32 1.0, %v3335_v35  ;;  %3346 = vrcp.f32 %v1635_v19 }
 0xbe6   :  { %3348 = vrcp.f32 %v1636_v40 }
 0xbe7   :  { %3350 = vrcp.f32 %v1637_v28 }
 0xbed   :  { %v4324_v17 = vpop.eup %3336 }
 0xbee   :  { %v4327_v44 = vpop.eup %3338 }
 0xbef   :  { %v4331_v51 = vpop.eup %3340 }
 0xbf0   :  { %v4335_v24 = vpop.eup %3342 }
 0xbf1   :  { %v4339_v2 = vpop.eup %3344 }
 0xbf2   :  { %v4343_v46 = vpop.eup %3346 }
 0xbf3   :  { %v4347_v47 = vpop.eup %3348 }
 0xbf4   :  { %v4351_v48 = vpop.eup %3350 }
 0xc3e   :  { %v1664_v57 = vpop.permute.xlu1 %1663 }
 0xc3f   :  { %v1687_v59 = vmul.f32 %v4324_v17, %v1664_v57 }
 0xc40   :  { %v1668_v58 = vpop.permute.xlu0 %1667 }
 0xc41   :  { %v1689_v36 = vmul.f32 %v4327_v44, %v1668_v58  ;;  %1703 = vrot.lane.b32.xlu1 %v1687_v59, %s3588_s24 }
 0xc42   :  { %v1666_v31 = vpop.permute.xlu1 %1665 }
 0xc43   :  { %v1688_v27 = vmul.f32 %v4331_v51, %v1666_v31  ;;  %1707 = vrot.lane.b32.xlu0 %v1689_v36, %s3588_s24  ;;  %v1745_v36 = vsub.f32 1.0, %v4327_v44 }
 0xc44   :  { %v1670_v45 = vpop.permute.xlu0 %1669 }
 0xc45   :  { %v1690_v25 = vmul.f32 %v4335_v24, %v1670_v45  ;;  %1705 = vrot.lane.b32.xlu1 %v1688_v27, %s3588_s24  ;;  %v1743_v27 = vsub.f32 1.0, %v4324_v17 }
 0xc46   :  { %v1672_v55 = vpop.permute.xlu1 %1671 }
 0xc47   :  { %v1691_v5 = vmul.f32 %v4339_v2, %v1672_v55  ;;  %1709 = vrot.lane.b32.xlu0 %v1690_v25, %s3588_s24  ;;  %v1744_v25 = vsub.f32 1.0, %v4331_v51  ;;  %v1793_v55 = vmul.f32 %v4327_v44, %v4232_v52  ;;  %v1747_v44 = vsub.f32 1.0, %v4339_v2 }
 0xc48   :  { %v1674_v39 = vpop.permute.xlu0 %1673 }
 0xc49   :  { %v1692_v63 = vmul.f32 %v4343_v46, %v1674_v39  ;;  %1711 = vrot.lane.b32.xlu1 %v1691_v5, %s3588_s24 }
 0xc4a   :  { %v1676_v29 = vpop.permute.xlu1 %1675 }
 0xc4b   :  { %v1693_v13 = vmul.f32 %v4347_v47, %v1676_v29  ;;  %1713 = vrot.lane.b32.xlu0 %v1692_v63, %s3588_s24  ;;  %v1792_v63 = vmul.f32 %v4331_v51, %v4234_v54  ;;  %v1795_v54 = vmul.f32 %v4339_v2, %v4254_v1 }
 0xc4c   :  { %v1678_v23 = vpop.permute.xlu0 %1677 }
 0xc4d   :  { %v1694_v15 = vmul.f32 %v4351_v48, %v1678_v23  ;;  %1715 = vrot.lane.b32.xlu1 %v1693_v13, %s3588_s24  ;;  %v1746_v13 = vsub.f32 1.0, %v4335_v24  ;;  %v1791_v23 = vmul.f32 %v4324_v17, %v4242_v37 }
 0xc4f   :  { %1717 = vrot.lane.b32.xlu0 %v1694_v15, %s3588_s24 }
 0xcb3   :  { %v1704_v32 = vpop.permute.xlu1 %1703 }
 0xcb4   :  { %v1727_v41 = vadd.f32 %v1704_v32, %v4300_v34 }
 0xcb5   :  { %v1708_v22 = vpop.permute.xlu0 %1707 }
 0xcb6   :  { %3352 = vtanh.f32 %v1727_v41  ;;  %v1729_v38 = vadd.f32 %v1708_v22, %v4302_v42  ;;  %v1794_v22 = vmul.f32 %v4335_v24, %v4245_v26  ;;  %v1796_v26 = vmul.f32 %v4343_v46, %v4262_v60 }
 0xcb7   :  { %v1706_v33 = vpop.permute.xlu1 %1705 }
 0xcb8   :  { %3354 = vtanh.f32 %v1729_v38  ;;  %v1728_v50 = vadd.f32 %v1706_v33, %v4305_v43  ;;  %v1748_v38 = vsub.f32 1.0, %v4343_v46 }
 0xcb9   :  { %v1710_v61 = vpop.permute.xlu0 %1709 }
 0xcba   :  { %3356 = vtanh.f32 %v1728_v50  ;;  %v1730_v11 = vadd.f32 %v1710_v61, %v4308_v56 }
 0xcbb   :  { %v1712_v7 = vpop.permute.xlu1 %1711 }
 0xcbc   :  { %3358 = vtanh.f32 %v1730_v11  ;;  %v1731_v3 = vadd.f32 %v1712_v7, %v4311_v20  ;;  %v1749_v11 = vsub.f32 1.0, %v4347_v47 }
 0xcbd   :  { %v1714_v19 = vpop.permute.xlu0 %1713 }
 0xcbe   :  { %3360 = vtanh.f32 %v1731_v3  ;;  %v1732_v34 = vadd.f32 %v1714_v19, %v4314_v18 }
 0xcbf   :  { %v1716_v35 = vpop.permute.xlu1 %1715 }
 0xcc0   :  { %3362 = vtanh.f32 %v1732_v34  ;;  %v1733_v42 = vadd.f32 %v1716_v35, %v4317_v4  ;;  %v1797_v34 = vmul.f32 %v4347_v47, %v4267_v9 }
 0xcc1   :  { %v1718_v40 = vpop.permute.xlu0 %1717 }
 0xcc2   :  { %3364 = vtanh.f32 %v1733_v42  ;;  %v1734_v43 = vadd.f32 %v1718_v40, %v4320_v16  ;;  %v1750_v42 = vsub.f32 1.0, %v4351_v48 }
 0xcc3   :  { %v3353_v28 = vpop.eup %3352 }
 0xcc4   :  { %3366 = vtanh.f32 %v1734_v43  ;;  %1759 = vrot.lane.b32.xlu1 %v3353_v28, %s3590_s25  ;;  %v1798_v28 = vmul.f32 %v4351_v48, %v4271_v14 }
 0xcc5   :  { %v3355_v56 = vpop.eup %3354 }
 0xcc6   :  { %1763 = vrot.lane.b32.xlu0 %v3355_v56, %s3590_s25 }
 0xcc7   :  { %v3357_v20 = vpop.eup %3356 }
 0xcc8   :  { %1761 = vrot.lane.b32.xlu1 %v3357_v20, %s3590_s25 }
 0xcc9   :  { %v3359_v57 = vpop.eup %3358 }
 0xcca   :  { %1765 = vrot.lane.b32.xlu0 %v3359_v57, %s3590_s25 }
 0xccb   :  { %v3361_v18 = vpop.eup %3360 }
 0xccc   :  { %1767 = vrot.lane.b32.xlu1 %v3361_v18, %s3590_s25 }
 0xccd   :  { %v3363_v4 = vpop.eup %3362 }
 0xcce   :  { %1769 = vrot.lane.b32.xlu0 %v3363_v4, %s3590_s25 }
 0xccf   :  { %v3365_v16 = vpop.eup %3364 }
 0xcd0   :  { %1771 = vrot.lane.b32.xlu1 %v3365_v16, %s3590_s25 }
 0xcd1   :  { %v3367_v59 = vpop.eup %3366 }
 0xcd2   :  { %1773 = vrot.lane.b32.xlu0 %v3367_v59, %s3590_s25 }
 0xd36   :  { %v1760_v58 = vpop.permute.xlu1 %1759 }
 0xd37   :  { %v1783_v39 = vmul.f32 %v1760_v58, %v1743_v27 }
 0xd38   :  { %v1764_v31 = vpop.permute.xlu0 %1763 }
 0xd39   :  { %v1785_v45 = vmul.f32 %v1764_v31, %v1745_v36  ;;  %v4392_v33 = vadd.f32 %v1791_v23, %v1783_v39  ;;  %v4452_v39 = vld [vmem:[#allocation3 + $0x15] sm:$0x1] }
 0xd3a   :  { %v1762_v5 = vpop.permute.xlu1 %1761 }
 0xd3b   :  { %v1784_v29 = vmul.f32 %v1762_v5, %v1744_v25  ;;  %v4382_v15 = vadd.f32 %v1793_v55, %v1785_v45  ;;  %v4450_v55 = vld [vmem:[#allocation3 + $0x5] sm:$0x1] }
 0xd3c   :  { %v1766_v32 = vpop.permute.xlu0 %1765 }
 0xd3d   :  { %v4384_v41 = vadd.f32 %v1792_v63, %v1784_v29  ;;  %v1786_v52 = vmul.f32 %v1766_v32, %v1746_v13  ;;  %v1825_v61 = vrot.slane %v4382_v15, 6  ;;  %v4455_v13 = vld [vmem:[#allocation3 + $0xd] sm:$0x1] }
 0xd3e   :  { %v1768_v51 = vpop.permute.xlu1 %1767 }
 0xd3f   :  { %v1823_v37 = vrot.slane %v4384_v41, 7  ;;  %v4395_v17 = vadd.f32 %v1794_v22, %v1786_v52  ;;  %v1787_v50 = vmul.f32 %v1768_v51, %v1747_v44  ;;  %v4458_v22 = vld [vmem:[#allocation3 + $0x1d] sm:$0x1]  ;;  %v4461_v51 = vld [vmem:[#allocation3 + $0x25] sm:$0x1] }
 0xd40   :  { %v1770_v24 = vpop.permute.xlu0 %1769 }
 0xd41   :  { %v1824_v1 = vsel %vm418_vm2, %v1823_v37, %v4392_v33  ;;  %v1827_v2 = vrot.slane %v4395_v17, 5  ;;  %v4404_v7 = vadd.f32 %v1795_v54, %v1787_v50  ;;  %v1788_v3 = vmul.f32 %v1770_v24, %v1748_v38 }
 0xd42   :  { %v1826_v19 = vsel %vm421_vm3, %v1825_v61, %v1824_v1  ;;  %v1772_v35 = vpop.permute.xlu1 %1771  ;;  %v4464_v61 = vld [vmem:[#allocation3 + $0x2d] sm:$0x1]  ;;  %v4467_v1 = vld [vmem:[#allocation3 + $0x35] sm:$0x1] }
 0xd43   :  { %v1828_v60 = vsel %vm424_vm4, %v1827_v2, %v1826_v19  ;;  %v1829_v46 = vrot.slane %v4404_v7, 4  ;;  %v4412_v40 = vadd.f32 %v1796_v26, %v1788_v3  ;;  %v1789_v43 = vmul.f32 %v1772_v35, %v1749_v11 }
 0xd44   :  { %v1774_v56 = vpop.permute.xlu0 %1773 }
 0xd45   :  { %v1830_v20 = vsel %vm427_vm5, %v1829_v46, %v1828_v60  ;;  %v1831_v57 = vrot.slane %v4412_v40, 3  ;;  %v4418_v18 = vadd.f32 %v1797_v34, %v1789_v43  ;;  %v1790_v9 = vmul.f32 %v1774_v56, %v1750_v42  ;;  %v4470_v34 = vld [vmem:[#allocation3 + $0x3d] sm:$0x1] }
 0xd47   :  { %v1833_v47 = vrot.slane %v4418_v18, 2  ;;  %v4421_v4 = vadd.f32 %v1798_v28, %v1790_v9  ;;  %v1832_v16 = vsel %vm430_vm6, %v1831_v57, %v1830_v20 }
 0xd49   :  { %v1835_v59 = vrot.slane %v4421_v4, 1  ;;  %v1834_v58 = vsel %vm433_vm7, %v1833_v47, %v1832_v16 }
 0xd4b   :  { %v1836_v14 = vsel %vm436_vm8, %v1835_v59, %v1834_v58 }
 0xd4c   :  { %1837 = vrot.lane.b32.xlu1 %v1836_v14, %s3590_s25 }
 0xdbe   :  { %v4428_v48 = vpop.permute.xlu1 %1837 }
 0xdbf   :  { %3092 = vmatmul.mubr.msk.f32.vlgmr.msra.gmra.mxu1 %vm47_vm0, %v4428_v48 }
 0xdc0   :  { %3106 = vmatpush3.msra.mxu1 %v4123_v30  ;;  %3113 = vmatprep.mubr.msk.f32.mxu1 %vm3587_vm1, %v3586_v0 }
 0xdc1   :  { %3107 = vmatprep.subr.mxu1 %v3586_v0 }
 0xdc2   :  { %3108 = vmatpush3.msra.mxu1 %v4129_v21 }
 0xdc3   :  { %3109 = vmatprep.subr.mxu1 %v3586_v0 }
 0xdc4   :  { %3110 = vmatpush3.msra.mxu1 %v4133_v12 }
 0xdc5   :  { %3111 = vmatprep.subr.mxu1 %v3586_v0 }
 0xdc6   :  { %3112 = vmatpush3.msra.mxu1 %v4137_v6 }
 0xe7f   :  { %v1907_v36 = vpop.f32.mrf.mxu1 }
 0xe80   :  { %v1983_v27 = vadd.f32 %v1907_v36, %v3670_v8  ;;  %v1913_v5 = vrot.slane %v1907_v36, 2  ;;  %v1912_v63 = vrot.slane %v1907_v36, 1  ;;  %v1927_v29 = vadd.f32 %v1907_v36, %v4450_v55 }
 0xe81   :  { %v3093_v31 = vpop.f32.mrf.mxu1  ;;  %v1914_v23 = vrot.slane %v1907_v36, 3  ;;  %v1915_v52 = vrot.slane %v1907_v36, 4  ;;  %v1916_v38 = vrot.slane %v1907_v36, 5  ;;  %v1917_v26 = vrot.slane %v1907_v36, 6 }
 0xe82   :  { %1992 = vrot.lane.b32.xlu0 %v1983_v27, %s3588_s24  ;;  %v1986_v30 = vrot.slane %v1983_v27, 2  ;;  %v1985_v45 = vrot.slane %v1983_v27, 1  ;;  %v1987_v21 = vrot.slane %v1983_v27, 3  ;;  %v1988_v12 = vrot.slane %v1983_v27, 4 }
 0xe83   :  { %v1989_v0 = vrot.slane %v1983_v27, 5  ;;  %v1990_v6 = vrot.slane %v1983_v27, 6  ;;  %v1991_v25 = vrot.slane %v1983_v27, 7  ;;  %v1929_v32 = vadd.f32 %v1913_v5, %v4452_v39 }
 0xe84   :  { %1996 = vrot.lane.b32.xlu1 %v1986_v30, %s3588_s24  ;;  %v1928_v44 = vadd.f32 %v1912_v63, %v4455_v13  ;;  %v2962_v54 = vmul.f32 -1.442695, %v1927_v29  ;;  %v1930_v37 = vadd.f32 %v1914_v23, %v4458_v22  ;;  %v1931_v24 = vadd.f32 %v1915_v52, %v4461_v51 }
 0xe85   :  { %v2964_v50 = vmul.f32 -1.442695, %v1929_v32  ;;  %v1918_v2 = vrot.slane %v1907_v36, 7  ;;  %v1932_v3 = vadd.f32 %v1916_v38, %v4464_v61  ;;  %v1933_v35 = vadd.f32 %v1917_v26, %v4467_v1 }
 0xe86   :  { %1994 = vrot.lane.b32.xlu0 %v1985_v45, %s3588_s24  ;;  %3368 = vpow2.f32 %v2962_v54  ;;  %v2963_v11 = vmul.f32 -1.442695, %v1928_v44  ;;  %v2965_v19 = vmul.f32 -1.442695, %v1930_v37  ;;  %v2966_v42 = vmul.f32 -1.442695, %v1931_v24 }
 0xe87   :  { %3370 = vpow2.f32 %v2964_v50  ;;  %v1934_v60 = vadd.f32 %v1918_v2, %v4470_v34  ;;  %v2967_v46 = vmul.f32 -1.442695, %v1932_v3  ;;  %v2968_v43 = vmul.f32 -1.442695, %v1933_v35 }
 0xe88   :  { %1998 = vrot.lane.b32.xlu1 %v1987_v21, %s3588_s24  ;;  %3372 = vpow2.f32 %v2963_v11 }
 0xe89   :  { %3374 = vpow2.f32 %v2965_v19  ;;  %v2969_v28 = vmul.f32 -1.442695, %v1934_v60 }
 0xe8a   :  { %2000 = vrot.lane.b32.xlu0 %v1988_v12, %s3588_s24  ;;  %3376 = vpow2.f32 %v2966_v42 }
 0xe8b   :  { %3378 = vpow2.f32 %v2967_v46 }
 0xe8c   :  { %2002 = vrot.lane.b32.xlu1 %v1989_v0, %s3588_s24  ;;  %3380 = vpow2.f32 %v2968_v43 }
 0xe8d   :  { %3382 = vpow2.f32 %v2969_v28 }
 0xe8e   :  { %2004 = vrot.lane.b32.xlu0 %v1990_v6, %s3588_s24 }
 0xe90   :  { %2006 = vrot.lane.b32.xlu1 %v1991_v25, %s3588_s24 }
 0xe93   :  { %v3369_v56 = vpop.eup %3368 }
 0xe94   :  { %v3371_v20 = vpop.eup %3370  ;;  %v1959_v57 = vadd.f32 1.0, %v3369_v56 }
 0xe95   :  { %v3373_v9 = vpop.eup %3372  ;;  %v1961_v47 = vadd.f32 1.0, %v3371_v20 }
 0xe96   :  { %v3375_v16 = vpop.eup %3374  ;;  %v1960_v59 = vadd.f32 1.0, %v3373_v9  ;;  %3384 = vrcp.f32 %v1959_v57 }
 0xe97   :  { %v3377_v58 = vpop.eup %3376  ;;  %v1962_v14 = vadd.f32 1.0, %v3375_v16  ;;  %3386 = vrcp.f32 %v1961_v47 }
 0xe98   :  { %v3379_v36 = vpop.eup %3378  ;;  %v1963_v31 = vadd.f32 1.0, %v3377_v58  ;;  %3388 = vrcp.f32 %v1960_v59 }
 0xe99   :  { %v3381_v27 = vpop.eup %3380  ;;  %v1964_v30 = vadd.f32 1.0, %v3379_v36  ;;  %3390 = vrcp.f32 %v1962_v14 }
 0xe9a   :  { %v3383_v45 = vpop.eup %3382  ;;  %v1965_v21 = vadd.f32 1.0, %v3381_v27  ;;  %3392 = vrcp.f32 %v1963_v31 }
 0xe9b   :  { %v1966_v12 = vadd.f32 1.0, %v3383_v45  ;;  %3394 = vrcp.f32 %v1964_v30 }
 0xe9c   :  { %3396 = vrcp.f32 %v1965_v21 }
 0xe9d   :  { %3398 = vrcp.f32 %v1966_v12 }
 0xea3   :  { %v4474_v0 = vpop.eup %3384 }
 0xea4   :  { %v4477_v5 = vpop.eup %3386 }
 0xea5   :  { %v4481_v23 = vpop.eup %3388  ;;  %v2074_v12 = vsub.f32 1.0, %v4477_v5 }
 0xea6   :  { %v4485_v44 = vpop.eup %3390 }
 0xea7   :  { %v4489_v37 = vpop.eup %3392 }
 0xea8   :  { %v4493_v24 = vpop.eup %3394 }
 0xea9   :  { %v4497_v3 = vpop.eup %3396 }
 0xeaa   :  { %v4501_v42 = vpop.eup %3398 }
 0xef4   :  { %v1993_v6 = vpop.permute.xlu0 %1992 }
 0xef5   :  { %v2016_v25 = vmul.f32 %v4474_v0, %v1993_v6 }
 0xef6   :  { %v1997_v63 = vpop.permute.xlu1 %1996 }
 0xef7   :  { %v2018_v29 = vmul.f32 %v4477_v5, %v1997_v63  ;;  %2032 = vrot.lane.b32.xlu0 %v2016_v25, %s3588_s24  ;;  %v2072_v25 = vsub.f32 1.0, %v4474_v0 }
 0xef8   :  { %v1995_v32 = vpop.permute.xlu0 %1994 }
 0xef9   :  { %v2017_v52 = vmul.f32 %v4481_v23, %v1995_v32  ;;  %2036 = vrot.lane.b32.xlu1 %v2018_v29, %s3588_s24  ;;  %v2073_v29 = vsub.f32 1.0, %v4481_v23  ;;  %v2122_v32 = vmul.f32 %v4477_v5, %v4382_v15  ;;  %v2076_v5 = vsub.f32 1.0, %v4489_v37 }
 0xefa   :  { %v1999_v54 = vpop.permute.xlu1 %1998 }
 0xefb   :  { %v2019_v38 = vmul.f32 %v4485_v44, %v1999_v54  ;;  %2034 = vrot.lane.b32.xlu0 %v2017_v52, %s3588_s24 }
 0xefc   :  { %v2001_v50 = vpop.permute.xlu0 %2000 }
 0xefd   :  { %v2020_v26 = vmul.f32 %v4489_v37, %v2001_v50  ;;  %2038 = vrot.lane.b32.xlu1 %v2019_v38, %s3588_s24  ;;  %v2121_v38 = vmul.f32 %v4481_v23, %v4384_v41  ;;  %v2124_v41 = vmul.f32 %v4489_v37, %v4404_v7 }
 0xefe   :  { %v2003_v11 = vpop.permute.xlu1 %2002 }
 0xeff   :  { %v2021_v2 = vmul.f32 %v4493_v24, %v2003_v11  ;;  %2040 = vrot.lane.b32.xlu0 %v2020_v26, %s3588_s24  ;;  %v2075_v26 = vsub.f32 1.0, %v4485_v44  ;;  %v2120_v11 = vmul.f32 %v4474_v0, %v4392_v33 }
 0xf00   :  { %v2005_v19 = vpop.permute.xlu0 %2004 }
 0xf01   :  { %v2022_v35 = vmul.f32 %v4497_v3, %v2005_v19  ;;  %2042 = vrot.lane.b32.xlu1 %v2021_v2, %s3588_s24 }
 0xf02   :  { %v2007_v60 = vpop.permute.xlu1 %2006 }
 0xf03   :  { %v2023_v46 = vmul.f32 %v4501_v42, %v2007_v60  ;;  %2044 = vrot.lane.b32.xlu0 %v2022_v35, %s3588_s24  ;;  %v2123_v60 = vmul.f32 %v4485_v44, %v4395_v17  ;;  %v2125_v17 = vmul.f32 %v4493_v24, %v4412_v40 }
 0xf05   :  { %2046 = vrot.lane.b32.xlu1 %v2023_v46, %s3588_s24  ;;  %v2077_v46 = vsub.f32 1.0, %v4493_v24 }
 0xf69   :  { %v2033_v43 = vpop.permute.xlu0 %2032 }
 0xf6a   :  { %v2056_v28 = vadd.f32 %v2033_v43, %v4450_v55 }
 0xf6b   :  { %v2037_v56 = vpop.permute.xlu1 %2036 }
 0xf6c   :  { %3400 = vtanh.f32 %v2056_v28  ;;  %v2058_v20 = vadd.f32 %v2037_v56, %v4452_v39 }
 0xf6d   :  { %v2035_v57 = vpop.permute.xlu0 %2034 }
 0xf6e   :  { %3402 = vtanh.f32 %v2058_v20  ;;  %v2057_v9 = vadd.f32 %v2035_v57, %v4455_v13  ;;  %v2078_v20 = vsub.f32 1.0, %v4497_v3 }
 0xf6f   :  { %v2039_v47 = vpop.permute.xlu1 %2038 }
 0xf70   :  { %3404 = vtanh.f32 %v2057_v9  ;;  %v2059_v16 = vadd.f32 %v2039_v47, %v4458_v22 }
 0xf71   :  { %v2041_v59 = vpop.permute.xlu0 %2040 }
 0xf72   :  { %3406 = vtanh.f32 %v2059_v16  ;;  %v2060_v58 = vadd.f32 %v2041_v59, %v4461_v51  ;;  %v2126_v16 = vmul.f32 %v4497_v3, %v4418_v18 }
 0xf73   :  { %v2043_v14 = vpop.permute.xlu1 %2042 }
 0xf74   :  { %3408 = vtanh.f32 %v2060_v58  ;;  %v2061_v55 = vadd.f32 %v2043_v14, %v4464_v61  ;;  %v2079_v58 = vsub.f32 1.0, %v4501_v42 }
 0xf75   :  { %v2045_v36 = vpop.permute.xlu0 %2044 }
 0xf76   :  { %3410 = vtanh.f32 %v2061_v55  ;;  %v2062_v39 = vadd.f32 %v2045_v36, %v4467_v1  ;;  %v2127_v36 = vmul.f32 %v4501_v42, %v4421_v4 }
 0xf77   :  { %v2047_v31 = vpop.permute.xlu1 %2046 }
 0xf78   :  { %3412 = vtanh.f32 %v2062_v39  ;;  %v2063_v13 = vadd.f32 %v2047_v31, %v4470_v34 }
 0xf79   :  { %v3401_v27 = vpop.eup %3400 }
 0xf7a   :  { %3414 = vtanh.f32 %v2063_v13  ;;  %2088 = vrot.lane.b32.xlu0 %v3401_v27, %s3590_s25 }
 0xf7b   :  { %v3403_v22 = vpop.eup %3402 }
 0xf7c   :  { %2092 = vrot.lane.b32.xlu1 %v3403_v22, %s3590_s25 }
 0xf7d   :  { %v3405_v51 = vpop.eup %3404 }
 0xf7e   :  { %2090 = vrot.lane.b32.xlu0 %v3405_v51, %s3590_s25 }
 0xf7f   :  { %v3407_v30 = vpop.eup %3406 }
 0xf80   :  { %2094 = vrot.lane.b32.xlu1 %v3407_v30, %s3590_s25 }
 0xf81   :  { %v3409_v61 = vpop.eup %3408 }
 0xf82   :  { %2096 = vrot.lane.b32.xlu0 %v3409_v61, %s3590_s25 }
 0xf83   :  { %v3411_v1 = vpop.eup %3410 }
 0xf84   :  { %2098 = vrot.lane.b32.xlu1 %v3411_v1, %s3590_s25 }
 0xf85   :  { %v3413_v34 = vpop.eup %3412 }
 0xf86   :  { %2100 = vrot.lane.b32.xlu0 %v3413_v34, %s3590_s25 }
 0xf87   :  { %v3415_v45 = vpop.eup %3414 }
 0xf88   :  { %2102 = vrot.lane.b32.xlu1 %v3415_v45, %s3590_s25 }
 0xfec   :  { %v2089_v21 = vpop.permute.xlu0 %2088 }
 0xfed   :  { %v2112_v54 = vmul.f32 %v2089_v21, %v2072_v25 }
 0xfee   :  { %v2093_v6 = vpop.permute.xlu1 %2092 }
 0xfef   :  { %v2114_v63 = vmul.f32 %v2093_v6, %v2074_v12  ;;  %v4542_v43 = vadd.f32 %v2120_v11, %v2112_v54  ;;  %v4596_v11 = vld [vmem:[#allocation3 + $0xe] sm:$0x1] }
 0xff0   :  { %v2091_v52 = vpop.permute.xlu0 %2090 }
 0xff1   :  { %v2113_v50 = vmul.f32 %v2091_v52, %v2073_v29  ;;  %v4532_v2 = vadd.f32 %v2122_v32, %v2114_v63  ;;  %v4591_v52 = vld [vmem:[#allocation3 + $0x6] sm:$0x1] }
 0xff2   :  { %v2095_v19 = vpop.permute.xlu1 %2094 }
 0xff3   :  { %v4534_v35 = vadd.f32 %v2121_v38, %v2113_v50  ;;  %v2115_v15 = vmul.f32 %v2095_v19, %v2075_v26  ;;  %v2154_v56 = vrot.slane %v4532_v2, 6  ;;  %v4593_v38 = vld [vmem:[#allocation3 + $0x16] sm:$0x1] }
 0xff4   :  { %v2097_v23 = vpop.permute.xlu0 %2096 }
 0xff5   :  { %v2152_v33 = vrot.slane %v4534_v35, 7  ;;  %v4545_v0 = vadd.f32 %v2123_v60, %v2115_v15  ;;  %v2116_v28 = vmul.f32 %v2097_v23, %v2076_v5  ;;  %v4599_v15 = vld [vmem:[#allocation3 + $0x1e] sm:$0x1] }
 0xff6   :  { %v2099_v44 = vpop.permute.xlu1 %2098 }
 0xff7   :  { %v2153_v7 = vsel %vm418_vm2, %v2152_v33, %v4542_v43  ;;  %v2156_v37 = vrot.slane %v4545_v0, 5  ;;  %v4554_v57 = vadd.f32 %v2124_v41, %v2116_v28  ;;  %v2117_v9 = vmul.f32 %v2099_v44, %v2077_v46  ;;  %v4602_v46 = vld [vmem:[#allocation3 + $0x26] sm:$0x1] }
 0xff8   :  { %v2155_v47 = vsel %vm421_vm3, %v2154_v56, %v2153_v7  ;;  %v2101_v59 = vpop.permute.xlu0 %2100 }
 0xff9   :  { %v2157_v40 = vsel %vm424_vm4, %v2156_v37, %v2155_v47  ;;  %v2158_v24 = vrot.slane %v4554_v57, 4  ;;  %v4562_v14 = vadd.f32 %v2125_v17, %v2117_v9  ;;  %v2118_v55 = vmul.f32 %v2101_v59, %v2078_v20  ;;  %v4605_v17 = vld [vmem:[#allocation3 + $0x2e] sm:$0x1]  ;;  %v4608_v37 = vld [vmem:[#allocation3 + $0x36] sm:$0x1] }
 0xffa   :  { %v2103_v39 = vpop.permute.xlu1 %2102  ;;  %v4611_v59 = vld [vmem:[#allocation3 + $0x3e] sm:$0x1] }
 0xffb   :  { %v2159_v31 = vsel %vm427_vm5, %v2158_v24, %v2157_v40  ;;  %v2160_v13 = vrot.slane %v4562_v14, 3  ;;  %v4568_v27 = vadd.f32 %v2126_v16, %v2118_v55  ;;  %v2119_v18 = vmul.f32 %v2103_v39, %v2079_v58 }
 0xffd   :  { %v2162_v3 = vrot.slane %v4568_v27, 2  ;;  %v4571_v22 = vadd.f32 %v2127_v36, %v2119_v18  ;;  %v2161_v51 = vsel %vm430_vm6, %v2160_v13, %v2159_v31 }
 0xfff   :  { %v2164_v30 = vrot.slane %v4571_v22, 1  ;;  %v2163_v61 = vsel %vm433_vm7, %v2162_v3, %v2161_v51 }
0x1001   :  { %v4577_v4 = vsel %vm436_vm8, %v2164_v30, %v2163_v61 }
0x1002   :  { %2166 = vrot.lane.b32.xlu0 %v4577_v4, %s3590_s25 }
0x1074   :  { %v2167_v42 = vpop.permute.xlu0 %2166 }
0x1075   :  { %3103 = vmatmul.mubr.msk.f32.vlgmr.msra.gmra.mxu0 %vm47_vm0, %v2167_v42 }
0x1135   :  { %v2236_v1 = vpop.f32.mrf.mxu0 }
0x1136   :  { %v2312_v45 = vadd.f32 %v2236_v1, %v3670_v8  ;;  %v2242_v54 = vrot.slane %v2236_v1, 2  ;;  %v2241_v50 = vrot.slane %v2236_v1, 1  ;;  %v2256_v26 = vadd.f32 %v2236_v1, %v4591_v52 }
0x1137   :  { %v3104_v34 = vpop.f32.mrf.mxu0  ;;  %v2243_v19 = vrot.slane %v2236_v1, 3  ;;  %v2244_v5 = vrot.slane %v2236_v1, 4  ;;  %v2245_v33 = vrot.slane %v2236_v1, 5  ;;  %v2246_v44 = vrot.slane %v2236_v1, 6 }
0x1138   :  { %2321 = vrot.lane.b32.xlu1 %v2312_v45, %s3588_s24  ;;  %v2315_v21 = vrot.slane %v2312_v45, 2  ;;  %v2314_v12 = vrot.slane %v2312_v45, 1  ;;  %v2316_v6 = vrot.slane %v2312_v45, 3  ;;  %v2317_v25 = vrot.slane %v2312_v45, 4 }
0x1139   :  { %v2318_v63 = vrot.slane %v2312_v45, 5  ;;  %v2319_v29 = vrot.slane %v2312_v45, 6  ;;  %v2320_v32 = vrot.slane %v2312_v45, 7  ;;  %v2258_v60 = vadd.f32 %v2242_v54, %v4593_v38 }
0x113a   :  { %2325 = vrot.lane.b32.xlu0 %v2315_v21, %s3588_s24  ;;  %v2257_v41 = vadd.f32 %v2241_v50, %v4596_v11  ;;  %v2971_v23 = vmul.f32 -1.442695, %v2256_v26  ;;  %v2259_v28 = vadd.f32 %v2243_v19, %v4599_v15  ;;  %v2260_v20 = vadd.f32 %v2244_v5, %v4602_v46 }
0x113b   :  { %v2973_v56 = vmul.f32 -1.442695, %v2258_v60  ;;  %v2247_v9 = vrot.slane %v2236_v1, 7  ;;  %v2261_v47 = vadd.f32 %v2245_v33, %v4605_v17  ;;  %v2262_v58 = vadd.f32 %v2246_v44, %v4608_v37 }
0x113c   :  { %2323 = vrot.lane.b32.xlu1 %v2314_v12, %s3588_s24  ;;  %3416 = vpow2.f32 %v2971_v23  ;;  %v2972_v7 = vmul.f32 -1.442695, %v2257_v41  ;;  %v2974_v16 = vmul.f32 -1.442695, %v2259_v28  ;;  %v2975_v40 = vmul.f32 -1.442695, %v2260_v20 }
0x113d   :  { %3418 = vpow2.f32 %v2973_v56  ;;  %v2263_v24 = vadd.f32 %v2247_v9, %v4611_v59  ;;  %v2976_v55 = vmul.f32 -1.442695, %v2261_v47  ;;  %v2977_v36 = vmul.f32 -1.442695, %v2262_v58 }
0x113e   :  { %2327 = vrot.lane.b32.xlu0 %v2316_v6, %s3588_s24  ;;  %3420 = vpow2.f32 %v2972_v7 }
0x113f   :  { %3422 = vpow2.f32 %v2974_v16  ;;  %v2978_v39 = vmul.f32 -1.442695, %v2263_v24 }
0x1140   :  { %2329 = vrot.lane.b32.xlu1 %v2317_v25, %s3588_s24  ;;  %3424 = vpow2.f32 %v2975_v40 }
0x1141   :  { %3426 = vpow2.f32 %v2976_v55 }
0x1142   :  { %2331 = vrot.lane.b32.xlu0 %v2318_v63, %s3588_s24  ;;  %3428 = vpow2.f32 %v2977_v36 }
0x1143   :  { %3430 = vpow2.f32 %v2978_v39 }
0x1144   :  { %2333 = vrot.lane.b32.xlu1 %v2319_v29, %s3588_s24 }
0x1146   :  { %2335 = vrot.lane.b32.xlu0 %v2320_v32, %s3588_s24 }
0x1149   :  { %v3417_v31 = vpop.eup %3416 }
0x114a   :  { %v3419_v13 = vpop.eup %3418  ;;  %v2288_v18 = vadd.f32 1.0, %v3417_v31 }
0x114b   :  { %v3421_v3 = vpop.eup %3420  ;;  %v2290_v51 = vadd.f32 1.0, %v3419_v13 }
0x114c   :  { %v3423_v30 = vpop.eup %3422  ;;  %v2289_v61 = vadd.f32 1.0, %v3421_v3  ;;  %3432 = vrcp.f32 %v2288_v18 }
0x114d   :  { %v3425_v42 = vpop.eup %3424  ;;  %v2291_v1 = vadd.f32 1.0, %v3423_v30  ;;  %3434 = vrcp.f32 %v2290_v51 }
0x114e   :  { %v3427_v34 = vpop.eup %3426  ;;  %v2292_v45 = vadd.f32 1.0, %v3425_v42  ;;  %3436 = vrcp.f32 %v2289_v61 }
0x114f   :  { %v3429_v21 = vpop.eup %3428  ;;  %v2293_v12 = vadd.f32 1.0, %v3427_v34  ;;  %3438 = vrcp.f32 %v2291_v1 }
0x1150   :  { %v3431_v6 = vpop.eup %3430  ;;  %v2294_v25 = vadd.f32 1.0, %v3429_v21  ;;  %3440 = vrcp.f32 %v2292_v45 }
0x1151   :  { %v2295_v63 = vadd.f32 1.0, %v3431_v6  ;;  %3442 = vrcp.f32 %v2293_v12 }
0x1152   :  { %3444 = vrcp.f32 %v2294_v25 }
0x1153   :  { %3446 = vrcp.f32 %v2295_v63 }
0x1159   :  { %v4615_v29 = vpop.eup %3432 }
0x115a   :  { %v4618_v50 = vpop.eup %3434 }
0x115b   :  { %v4622_v60 = vpop.eup %3436 }
0x115c   :  { %v4626_v23 = vpop.eup %3438 }
0x115d   :  { %v4630_v56 = vpop.eup %3440 }
0x115e   :  { %v4634_v7 = vpop.eup %3442 }
0x115f   :  { %v4638_v16 = vpop.eup %3444 }
0x1160   :  { %v4642_v24 = vpop.eup %3446 }
0x11aa   :  { %v2322_v32 = vpop.permute.xlu1 %2321 }
0x11ab   :  { %v2345_v54 = vmul.f32 %v4615_v29, %v2322_v32  ;;  %v2403_v32 = vsub.f32 1.0, %v4618_v50 }
0x11ac   :  { %v2326_v26 = vpop.permute.xlu0 %2325 }
0x11ad   :  { %v2347_v19 = vmul.f32 %v4618_v50, %v2326_v26  ;;  %2361 = vrot.lane.b32.xlu1 %v2345_v54, %s3588_s24  ;;  %v2401_v26 = vsub.f32 1.0, %v4615_v29 }
0x11ae   :  { %v2324_v5 = vpop.permute.xlu1 %2323 }
0x11af   :  { %v2346_v41 = vmul.f32 %v4622_v60, %v2324_v5  ;;  %2365 = vrot.lane.b32.xlu0 %v2347_v19, %s3588_s24  ;;  %v2402_v5 = vsub.f32 1.0, %v4622_v60 }
0x11b0   :  { %v2328_v33 = vpop.permute.xlu0 %2327 }
0x11b1   :  { %v2348_v28 = vmul.f32 %v4626_v23, %v2328_v33  ;;  %2363 = vrot.lane.b32.xlu1 %v2346_v41, %s3588_s24  ;;  %v2451_v41 = vmul.f32 %v4618_v50, %v4532_v2  ;;  %v2405_v50 = vsub.f32 1.0, %v4630_v56 }
0x11b2   :  { %v2330_v44 = vpop.permute.xlu1 %2329 }
0x11b3   :  { %v2349_v20 = vmul.f32 %v4630_v56, %v2330_v44  ;;  %2367 = vrot.lane.b32.xlu0 %v2348_v28, %s3588_s24  ;;  %v2450_v44 = vmul.f32 %v4622_v60, %v4534_v35  ;;  %v2453_v35 = vmul.f32 %v4630_v56, %v4554_v57 }
0x11b4   :  { %v2332_v9 = vpop.permute.xlu0 %2331 }
0x11b5   :  { %v2350_v47 = vmul.f32 %v4634_v7, %v2332_v9  ;;  %2369 = vrot.lane.b32.xlu1 %v2349_v20, %s3588_s24  ;;  %v2404_v9 = vsub.f32 1.0, %v4626_v23 }
0x11b6   :  { %v2334_v58 = vpop.permute.xlu1 %2333 }
0x11b7   :  { %v2351_v40 = vmul.f32 %v4638_v16, %v2334_v58  ;;  %2371 = vrot.lane.b32.xlu0 %v2350_v47, %s3588_s24  ;;  %v2449_v47 = vmul.f32 %v4615_v29, %v4542_v43 }
0x11b8   :  { %v2336_v55 = vpop.permute.xlu0 %2335 }
0x11b9   :  { %v2352_v36 = vmul.f32 %v4642_v24, %v2336_v55  ;;  %2373 = vrot.lane.b32.xlu1 %v2351_v40, %s3588_s24 }
0x11bb   :  { %2375 = vrot.lane.b32.xlu0 %v2352_v36, %s3588_s24  ;;  %v2452_v36 = vmul.f32 %v4626_v23, %v4545_v0  ;;  %v2454_v0 = vmul.f32 %v4634_v7, %v4562_v14 }
0x121f   :  { %v2362_v39 = vpop.permute.xlu1 %2361 }
0x1220   :  { %v2385_v31 = vadd.f32 %v2362_v39, %v4591_v52  ;;  %v2406_v39 = vsub.f32 1.0, %v4634_v7 }
0x1221   :  { %v2366_v13 = vpop.permute.xlu0 %2365 }
0x1222   :  { %3448 = vtanh.f32 %v2385_v31  ;;  %v2387_v18 = vadd.f32 %v2366_v13, %v4593_v38 }
0x1223   :  { %v2364_v3 = vpop.permute.xlu1 %2363 }
0x1224   :  { %3450 = vtanh.f32 %v2387_v18  ;;  %v2386_v51 = vadd.f32 %v2364_v3, %v4596_v11  ;;  %v2407_v3 = vsub.f32 1.0, %v4638_v16 }
0x1225   :  { %v2368_v30 = vpop.permute.xlu0 %2367 }
0x1226   :  { %3452 = vtanh.f32 %v2386_v51  ;;  %v2388_v61 = vadd.f32 %v2368_v30, %v4599_v15 }
0x1227   :  { %v2370_v42 = vpop.permute.xlu1 %2369 }
0x1228   :  { %3454 = vtanh.f32 %v2388_v61  ;;  %v2389_v1 = vadd.f32 %v2370_v42, %v4602_v46  ;;  %v2455_v42 = vmul.f32 %v4638_v16, %v4568_v27 }
0x1229   :  { %v2372_v34 = vpop.permute.xlu0 %2371 }
0x122a   :  { %3456 = vtanh.f32 %v2389_v1  ;;  %v2390_v52 = vadd.f32 %v2372_v34, %v4605_v17  ;;  %v2408_v34 = vsub.f32 1.0, %v4642_v24 }
0x122b   :  { %v2374_v45 = vpop.permute.xlu1 %2373 }
0x122c   :  { %3458 = vtanh.f32 %v2390_v52  ;;  %v2391_v38 = vadd.f32 %v2374_v45, %v4608_v37 }
0x122d   :  { %v2376_v21 = vpop.permute.xlu0 %2375 }
0x122e   :  { %3460 = vtanh.f32 %v2391_v38  ;;  %v2392_v11 = vadd.f32 %v2376_v21, %v4611_v59  ;;  %v2456_v38 = vmul.f32 %v4642_v24, %v4571_v22 }
0x122f   :  { %v3449_v12 = vpop.eup %3448 }
0x1230   :  { %3462 = vtanh.f32 %v2392_v11  ;;  %2417 = vrot.lane.b32.xlu1 %v3449_v12, %s3590_s25 }
0x1231   :  { %v3451_v15 = vpop.eup %3450 }
0x1232   :  { %2421 = vrot.lane.b32.xlu0 %v3451_v15, %s3590_s25 }
0x1233   :  { %v3453_v46 = vpop.eup %3452 }
0x1234   :  { %2419 = vrot.lane.b32.xlu1 %v3453_v46, %s3590_s25 }
0x1235   :  { %v3455_v6 = vpop.eup %3454 }
0x1236   :  { %2423 = vrot.lane.b32.xlu0 %v3455_v6, %s3590_s25 }
0x1237   :  { %v3457_v17 = vpop.eup %3456 }
0x1238   :  { %2425 = vrot.lane.b32.xlu1 %v3457_v17, %s3590_s25 }
0x1239   :  { %v3459_v37 = vpop.eup %3458 }
0x123a   :  { %2427 = vrot.lane.b32.xlu0 %v3459_v37, %s3590_s25 }
0x123b   :  { %v3461_v59 = vpop.eup %3460 }
0x123c   :  { %2429 = vrot.lane.b32.xlu1 %v3461_v59, %s3590_s25 }
0x123d   :  { %v3463_v25 = vpop.eup %3462 }
0x123e   :  { %2431 = vrot.lane.b32.xlu0 %v3463_v25, %s3590_s25 }
0x12a2   :  { %v2418_v63 = vpop.permute.xlu1 %2417 }
0x12a3   :  { %v2441_v28 = vmul.f32 %v2418_v63, %v2401_v26 }
0x12a4   :  { %v2422_v54 = vpop.permute.xlu0 %2421 }
0x12a5   :  { %v2443_v19 = vmul.f32 %v2422_v54, %v2403_v32  ;;  %v4683_v31 = vadd.f32 %v2449_v47, %v2441_v28  ;;  %v4737_v47 = vld [vmem:[#allocation3 + $0xf] sm:$0x1] }
0x12a6   :  { %v2420_v33 = vpop.permute.xlu1 %2419 }
0x12a7   :  { %v2442_v20 = vmul.f32 %v2420_v33, %v2402_v5  ;;  %v4673_v58 = vadd.f32 %v2451_v41, %v2443_v19  ;;  %v4732_v33 = vld [vmem:[#allocation3 + $0x7] sm:$0x1] }
0x12a8   :  { %v2424_v40 = vpop.permute.xlu0 %2423 }
0x12a9   :  { %v4675_v55 = vadd.f32 %v2450_v44, %v2442_v20  ;;  %v2444_v2 = vmul.f32 %v2424_v40, %v2404_v9  ;;  %v2483_v18 = vrot.slane %v4673_v58, 6  ;;  %v4734_v44 = vld [vmem:[#allocation3 + $0x17] sm:$0x1] }
0x12aa   :  { %v2426_v60 = vpop.permute.xlu1 %2425 }
0x12ab   :  { %v2481_v43 = vrot.slane %v4675_v55, 7  ;;  %v4686_v29 = vadd.f32 %v2452_v36, %v2444_v2  ;;  %v2445_v13 = vmul.f32 %v2426_v60, %v2405_v50  ;;  %v4740_v2 = vld [vmem:[#allocation3 + $0x1f] sm:$0x1] }
0x12ac   :  { %v2428_v23 = vpop.permute.xlu0 %2427 }
0x12ad   :  { %v2482_v57 = vsel %vm418_vm2, %v2481_v43, %v4683_v31  ;;  %v2485_v56 = vrot.slane %v4686_v29, 5  ;;  %v4695_v51 = vadd.f32 %v2453_v35, %v2445_v13  ;;  %v2446_v30 = vmul.f32 %v2428_v23, %v2406_v39  ;;  %v4743_v39 = vld [vmem:[#allocation3 + $0x27] sm:$0x1] }
0x12ae   :  { %v2484_v61 = vsel %vm421_vm3, %v2483_v18, %v2482_v57  ;;  %v2430_v1 = vpop.permute.xlu1 %2429 }
0x12af   :  { %v2486_v14 = vsel %vm424_vm4, %v2485_v56, %v2484_v61  ;;  %v2487_v7 = vrot.slane %v4695_v51, 4  ;;  %v4703_v52 = vadd.f32 %v2454_v0, %v2446_v30  ;;  %v2447_v45 = vmul.f32 %v2430_v1, %v2407_v3  ;;  %v4746_v0 = vld [vmem:[#allocation3 + $0x2f] sm:$0x1]  ;;  %v4749_v56 = vld [vmem:[#allocation3 + $0x37] sm:$0x1] }
0x12b0   :  { %v2432_v21 = vpop.permute.xlu0 %2431  ;;  %v4752_v1 = vld [vmem:[#allocation3 + $0x3f] sm:$0x1] }
0x12b1   :  { %v2488_v11 = vsel %vm427_vm5, %v2487_v7, %v2486_v14  ;;  %v2489_v12 = vrot.slane %v4703_v52, 3  ;;  %v4709_v15 = vadd.f32 %v2455_v42, %v2447_v45  ;;  %v2448_v27 = vmul.f32 %v2432_v21, %v2408_v34 }
0x12b3   :  { %v2491_v16 = vrot.slane %v4709_v15, 2  ;;  %v4712_v46 = vadd.f32 %v2456_v38, %v2448_v27  ;;  %v2490_v6 = vsel %vm430_vm6, %v2489_v12, %v2488_v11 }
0x12b5   :  { %v2493_v17 = vrot.slane %v4712_v46, 1  ;;  %v2492_v37 = vsel %vm433_vm7, %v2491_v16, %v2490_v6 }
0x12b7   :  { %v4718_v22 = vsel %vm436_vm8, %v2493_v17, %v2492_v37 }
0x12b8   :  { %2495 = vrot.lane.b32.xlu1 %v4718_v22, %s3590_s25 }
0x132a   :  { %v2496_v24 = vpop.permute.xlu1 %2495 }
0x132b   :  { %3114 = vmatmul.mubr.msk.f32.vlgmr.msra.gmra.mxu1 %vm47_vm0, %v2496_v24 }
0x13eb   :  { %v2565_v59 = vpop.f32.mrf.mxu1 }
0x13ec   :  { %v2641_v63 = vadd.f32 %v2565_v59, %v3670_v8  ;;  %v2571_v28 = vrot.slane %v2565_v59, 2  ;;  %v2570_v20 = vrot.slane %v2565_v59, 1  ;;  %v2585_v9 = vadd.f32 %v2565_v59, %v4732_v33 }
0x13ed   :  { %v3115_v25 = vpop.f32.mrf.mxu1  ;;  %v2572_v40 = vrot.slane %v2565_v59, 3  ;;  %v2573_v50 = vrot.slane %v2565_v59, 4  ;;  %v2574_v43 = vrot.slane %v2565_v59, 5  ;;  %v2575_v23 = vrot.slane %v2565_v59, 6 }
0x13ee   :  { %2650 = vrot.lane.b32.xlu0 %v2641_v63, %s3588_s24  ;;  %v2644_v32 = vrot.slane %v2641_v63, 2  ;;  %v2643_v54 = vrot.slane %v2641_v63, 1  ;;  %v2645_v26 = vrot.slane %v2641_v63, 3  ;;  %v2646_v19 = vrot.slane %v2641_v63, 4 }
0x13ef   :  { %v2647_v5 = vrot.slane %v2641_v63, 5  ;;  %v2648_v41 = vrot.slane %v2641_v63, 6  ;;  %v2649_v8 = vrot.slane %v2641_v63, 7  ;;  %v2587_v36 = vadd.f32 %v2571_v28, %v4734_v44 }
0x13f0   :  { %2654 = vrot.lane.b32.xlu1 %v2644_v32, %s3588_s24  ;;  %v2586_v35 = vadd.f32 %v2570_v20, %v4737_v47  ;;  %v2980_v60 = vmul.f32 -1.442695, %v2585_v9  ;;  %v2588_v13 = vadd.f32 %v2572_v40, %v4740_v2  ;;  %v2589_v3 = vadd.f32 %v2573_v50, %v4743_v39 }
0x13f1   :  { %v2982_v18 = vmul.f32 -1.442695, %v2587_v36  ;;  %v2576_v30 = vrot.slane %v2565_v59, 7  ;;  %v2590_v61 = vadd.f32 %v2574_v43, %v4746_v0  ;;  %v2591_v34 = vadd.f32 %v2575_v23, %v4749_v56 }
0x13f2   :  { %2652 = vrot.lane.b32.xlu0 %v2643_v54, %s3588_s24  ;;  %3464 = vpow2.f32 %v2980_v60  ;;  %v2981_v57 = vmul.f32 -1.442695, %v2586_v35  ;;  %v2983_v42 = vmul.f32 -1.442695, %v2588_v13  ;;  %v2984_v14 = vmul.f32 -1.442695, %v2589_v3 }
0x13f3   :  { %3466 = vpow2.f32 %v2982_v18  ;;  %v2592_v7 = vadd.f32 %v2576_v30, %v4752_v1  ;;  %v2985_v45 = vmul.f32 -1.442695, %v2590_v61  ;;  %v2986_v38 = vmul.f32 -1.442695, %v2591_v34 }
0x13f4   :  { %2656 = vrot.lane.b32.xlu1 %v2645_v26, %s3588_s24  ;;  %3468 = vpow2.f32 %v2981_v57 }
0x13f5   :  { %3470 = vpow2.f32 %v2983_v42  ;;  %v2987_v21 = vmul.f32 -1.442695, %v2592_v7 }
0x13f6   :  { %2658 = vrot.lane.b32.xlu0 %v2646_v19, %s3588_s24  ;;  %3472 = vpow2.f32 %v2984_v14 }
0x13f7   :  { %3474 = vpow2.f32 %v2985_v45 }
0x13f8   :  { %2660 = vrot.lane.b32.xlu1 %v2647_v5, %s3588_s24  ;;  %3476 = vpow2.f32 %v2986_v38 }
0x13f9   :  { %3478 = vpow2.f32 %v2987_v21 }
0x13fa   :  { %2662 = vrot.lane.b32.xlu0 %v2648_v41, %s3588_s24 }
0x13fc   :  { %2664 = vrot.lane.b32.xlu1 %v2649_v8, %s3588_s24 }
0x13ff   :  { %v3465_v11 = vpop.eup %3464 }
0x1400   :  { %v3467_v12 = vpop.eup %3466  ;;  %v2617_v27 = vadd.f32 1.0, %v3465_v11 }
0x1401   :  { %v3469_v16 = vpop.eup %3468  ;;  %v2619_v6 = vadd.f32 1.0, %v3467_v12 }
0x1402   :  { %v3471_v17 = vpop.eup %3470  ;;  %v2618_v37 = vadd.f32 1.0, %v3469_v16  ;;  %3480 = vrcp.f32 %v2617_v27 }
0x1403   :  { %v3473_v24 = vpop.eup %3472  ;;  %v2620_v59 = vadd.f32 1.0, %v3471_v17  ;;  %3482 = vrcp.f32 %v2619_v6 }
0x1404   :  { %v3475_v25 = vpop.eup %3474  ;;  %v2621_v63 = vadd.f32 1.0, %v3473_v24  ;;  %3484 = vrcp.f32 %v2618_v37 }
0x1405   :  { %v3477_v32 = vpop.eup %3476  ;;  %v2622_v54 = vadd.f32 1.0, %v3475_v25  ;;  %3486 = vrcp.f32 %v2620_v59 }
0x1406   :  { %v3479_v26 = vpop.eup %3478  ;;  %v2623_v19 = vadd.f32 1.0, %v3477_v32  ;;  %3488 = vrcp.f32 %v2621_v63 }
0x1407   :  { %v2624_v5 = vadd.f32 1.0, %v3479_v26  ;;  %3490 = vrcp.f32 %v2622_v54 }
0x1408   :  { %3492 = vrcp.f32 %v2623_v19 }
0x1409   :  { %3494 = vrcp.f32 %v2624_v5 }
0x140f   :  { %v4756_v41 = vpop.eup %3480 }
0x1410   :  { %v4759_v20 = vpop.eup %3482 }
0x1411   :  { %v4763_v36 = vpop.eup %3484 }
0x1412   :  { %v4767_v60 = vpop.eup %3486 }
0x1413   :  { %v4771_v18 = vpop.eup %3488 }
0x1414   :  { %v4775_v57 = vpop.eup %3490 }
0x1415   :  { %v4779_v42 = vpop.eup %3492 }
0x1416   :  { %v4783_v7 = vpop.eup %3494 }
0x1460   :  { %v2651_v8 = vpop.permute.xlu0 %2650 }
0x1461   :  { %v2674_v28 = vmul.f32 %v4756_v41, %v2651_v8  ;;  %v2732_v8 = vsub.f32 1.0, %v4759_v20 }
0x1462   :  { %v2655_v9 = vpop.permute.xlu1 %2654 }
0x1463   :  { %v2676_v40 = vmul.f32 %v4759_v20, %v2655_v9  ;;  %2690 = vrot.lane.b32.xlu0 %v2674_v28, %s3588_s24  ;;  %v2730_v9 = vsub.f32 1.0, %v4756_v41 }
0x1464   :  { %v2653_v50 = vpop.permute.xlu0 %2652 }
0x1465   :  { %v2675_v35 = vmul.f32 %v4763_v36, %v2653_v50  ;;  %2694 = vrot.lane.b32.xlu1 %v2676_v40, %s3588_s24  ;;  %v2731_v50 = vsub.f32 1.0, %v4763_v36 }
0x1466   :  { %v2657_v43 = vpop.permute.xlu1 %2656 }
0x1467   :  { %v2677_v13 = vmul.f32 %v4767_v60, %v2657_v43  ;;  %2692 = vrot.lane.b32.xlu0 %v2675_v35, %s3588_s24  ;;  %v2780_v35 = vmul.f32 %v4759_v20, %v4673_v58  ;;  %v2734_v58 = vsub.f32 1.0, %v4771_v18  ;;  %v2782_v20 = vmul.f32 %v4771_v18, %v4695_v51 }
0x1468   :  { %v2659_v23 = vpop.permute.xlu0 %2658 }
0x1469   :  { %v2678_v3 = vmul.f32 %v4771_v18, %v2659_v23  ;;  %2696 = vrot.lane.b32.xlu1 %v2677_v13, %s3588_s24  ;;  %v2778_v23 = vmul.f32 %v4756_v41, %v4683_v31 }
0x146a   :  { %v2661_v30 = vpop.permute.xlu1 %2660 }
0x146b   :  { %v2679_v61 = vmul.f32 %v4775_v57, %v2661_v30  ;;  %2698 = vrot.lane.b32.xlu0 %v2678_v3, %s3588_s24  ;;  %v2781_v30 = vmul.f32 %v4767_v60, %v4686_v29 }
0x146c   :  { %v2663_v34 = vpop.permute.xlu0 %2662 }
0x146d   :  { %v2680_v14 = vmul.f32 %v4779_v42, %v2663_v34  ;;  %2700 = vrot.lane.b32.xlu1 %v2679_v61, %s3588_s24 }
0x146e   :  { %v2665_v45 = vpop.permute.xlu1 %2664 }
0x146f   :  { %v2681_v38 = vmul.f32 %v4783_v7, %v2665_v45  ;;  %2702 = vrot.lane.b32.xlu0 %v2680_v14, %s3588_s24 }
0x1471   :  { %2704 = vrot.lane.b32.xlu1 %v2681_v38, %s3588_s24 }
0x14d5   :  { %v2691_v21 = vpop.permute.xlu0 %2690 }
0x14d6   :  { %v2714_v11 = vadd.f32 %v2691_v21, %v4732_v33 }
0x14d7   :  { %v2695_v12 = vpop.permute.xlu1 %2694 }
0x14d8   :  { %3496 = vtanh.f32 %v2714_v11  ;;  %v2716_v27 = vadd.f32 %v2695_v12, %v4734_v44  ;;  %v3591_v12 = vmov 1966171168  }
0x14d9   :  { %v2693_v16 = vpop.permute.xlu0 %2692 }
0x14da   :  { %3498 = vtanh.f32 %v2716_v27  ;;  %v2715_v6 = vadd.f32 %v2693_v16, %v4737_v47  ;;  %v1433_v27 = vunpack.c.l.s4 %v3591_v12  ;;  %v1435_v16 = vlaneseq }
0x14db   :  { %v2697_v17 = vpop.permute.xlu1 %2696 }
0x14dc   :  { %3500 = vtanh.f32 %v2715_v6  ;;  %v2717_v37 = vadd.f32 %v2697_v17, %v4740_v2  ;;  %vm4850_vm11 = vcmp.lt.s32.totalorder %v1435_v16, 128 }
0x14dd   :  { %v2699_v24 = vpop.permute.xlu0 %2698 }
0x14de   :  { %3502 = vtanh.f32 %v2717_v37  ;;  %v2718_v59 = vadd.f32 %v2699_v24, %v4743_v39  ;;  %v2737_v24 = vsub.f32 1.0, %v4783_v7 }
0x14df   :  { %v2701_v25 = vpop.permute.xlu1 %2700 }
0x14e0   :  { %3504 = vtanh.f32 %v2718_v59  ;;  %v2719_v33 = vadd.f32 %v2701_v25, %v4746_v0 }
0x14e1   :  { %v2703_v63 = vpop.permute.xlu0 %2702 }
0x14e2   :  { %3506 = vtanh.f32 %v2719_v33  ;;  %v2720_v44 = vadd.f32 %v2703_v63, %v4749_v56 }
0x14e3   :  { %v2705_v32 = vpop.permute.xlu1 %2704 }
0x14e4   :  { %3508 = vtanh.f32 %v2720_v44  ;;  %v2721_v47 = vadd.f32 %v2705_v32, %v4752_v1  ;;  %v2785_v44 = vmul.f32 %v4783_v7, %v4712_v46 }
0x14e5   :  { %v3497_v54 = vpop.eup %3496 }
0x14e6   :  { %3510 = vtanh.f32 %v2721_v47  ;;  %2746 = vrot.lane.b32.xlu0 %v3497_v54, %s3590_s25  ;;  %v1434_v47 = vunpack.c.0.s8 %v1433_v27  ;;  %v1436_v54 = vshrl.u32 %v1435_v16, 7 }
0x14e7   :  { %v3499_v2 = vpop.eup %3498 }
0x14e8   :  { %2750 = vrot.lane.b32.xlu1 %v3499_v2, %s3590_s25  ;;  %v1437_v46 = vsub.s32 %v1434_v47, %v1436_v54 }
0x14e9   :  { %v3501_v39 = vpop.eup %3500 }
0x14ea   :  { %2748 = vrot.lane.b32.xlu0 %v3501_v39, %s3590_s25 }
0x14eb   :  { %v3503_v26 = vpop.eup %3502 }
0x14ec   :  { %2752 = vrot.lane.b32.xlu1 %v3503_v26, %s3590_s25 }
0x14ed   :  { %v3505_v0 = vpop.eup %3504 }
0x14ee   :  { %2754 = vrot.lane.b32.xlu0 %v3505_v0, %s3590_s25 }
0x14ef   :  { %v3507_v56 = vpop.eup %3506 }
0x14f0   :  { %2756 = vrot.lane.b32.xlu1 %v3507_v56, %s3590_s25 }
0x14f1   :  { %v3509_v1 = vpop.eup %3508 }
0x14f2   :  { %2758 = vrot.lane.b32.xlu0 %v3509_v1, %s3590_s25 }
0x14f3   :  { %v3511_v19 = vpop.eup %3510 }
0x14f4   :  { %2760 = vrot.lane.b32.xlu1 %v3511_v19, %s3590_s25  ;;  %v2824_v19 = vsel %vm47_vm0, %v4428_v48, %v4577_v4 }
0x14f6   :  { %1397 = vrot.lane.b32.xlu0 %v4118_v49, %s3589_s2 }
0x14f8   :  { %2796 = vrot.lane.b32.xlu1 %v4718_v22, %s3589_s2  ;;  %v2779_v22 = vmul.f32 %v4763_v36, %v4675_v55  ;;  %v2735_v55 = vsub.f32 1.0, %v4775_v57  ;;  %v2783_v36 = vmul.f32 %v4775_v57, %v4703_v52  ;;  %v2784_v52 = vmul.f32 %v4779_v42, %v4709_v15 }
0x14fa   :  { %1422 = vrot.lane.b32.xlu0 %v4277_v53, %s3588_s24  ;;  %v2733_v53 = vsub.f32 1.0, %v4767_v60  ;;  %v2736_v60 = vsub.f32 1.0, %v4779_v42 }
0x1558   :  { %v2747_v5 = vpop.permute.xlu0 %2746 }
0x1559   :  { %v2770_v49 = vmul.f32 %v2747_v5, %v2730_v9 }
0x155a   :  { %v2751_v28 = vpop.permute.xlu1 %2750 }
0x155b   :  { %v2772_v40 = vmul.f32 %v2751_v28, %v2732_v8  ;;  %v2786_v38 = vadd.f32 %v2778_v23, %v2770_v49  ;;  %v1425_v8 = vsel %vm47_vm0, %v3817_v10, %v3967_v62 }
0x155c   :  { %v2749_v43 = vpop.permute.xlu0 %2748 }
0x155d   :  { %v2771_v13 = vmul.f32 %v2749_v43, %v2731_v50  ;;  %v2788_v3 = vadd.f32 %v2780_v35, %v2772_v40 }
0x155e   :  { %v2753_v61 = vpop.permute.xlu1 %2752 }
0x155f   :  { %v2787_v34 = vadd.f32 %v2779_v22, %v2771_v13  ;;  %v2773_v14 = vmul.f32 %v2753_v61, %v2733_v53  ;;  %v2809_v11 = vrot.slane %v2788_v3, 6 }
0x1560   :  { %v2755_v45 = vpop.permute.xlu0 %2754 }
0x1561   :  { %v2807_v31 = vrot.slane %v2787_v34, 7  ;;  %v2789_v41 = vadd.f32 %v2781_v30, %v2773_v14  ;;  %v2774_v21 = vmul.f32 %v2755_v45, %v2734_v58 }
0x1562   :  { %v2757_v29 = vpop.permute.xlu1 %2756 }
0x1563   :  { %v2808_v6 = vsel %vm418_vm2, %v2807_v31, %v2786_v38  ;;  %v2811_v51 = vrot.slane %v2789_v41, 5  ;;  %v2790_v18 = vadd.f32 %v2782_v20, %v2774_v21  ;;  %v2775_v17 = vmul.f32 %v2757_v29, %v2735_v55 }
0x1564   :  { %v2810_v37 = vsel %vm421_vm3, %v2809_v11, %v2808_v6  ;;  %v2759_v57 = vpop.permute.xlu0 %2758 }
0x1565   :  { %v2812_v59 = vsel %vm424_vm4, %v2811_v51, %v2810_v37  ;;  %v2813_v25 = vrot.slane %v2790_v18, 4  ;;  %v2791_v33 = vadd.f32 %v2783_v36, %v2775_v17  ;;  %v2776_v63 = vmul.f32 %v2759_v57, %v2736_v60 }
0x1566   :  { %v2761_v32 = vpop.permute.xlu1 %2760 }
0x1567   :  { %v2814_v2 = vsel %vm427_vm5, %v2813_v25, %v2812_v59  ;;  %v2815_v39 = vrot.slane %v2791_v33, 3  ;;  %v2792_v26 = vadd.f32 %v2784_v52, %v2776_v63  ;;  %v2777_v0 = vmul.f32 %v2761_v32, %v2737_v24 }
0x1568   :  { %v1398_v15 = vpop.permute.xlu0 %1397 }
0x1569   :  { %v2816_v42 = vsel %vm430_vm6, %v2815_v39, %v2814_v2  ;;  %v2817_v56 = vrot.slane %v2792_v26, 2  ;;  %v2793_v1 = vadd.f32 %v2785_v44, %v2777_v0  ;;  %v1427_v40 = vsel %vm1426_vm9, %v1425_v8, %v1398_v15 }
0x156a   :  { %v2797_v5 = vpop.permute.xlu1 %2796 }
0x156b   :  { %v2819_v7 = vrot.slane %v2793_v1, 1  ;;  %v2825_v28 = vsel %vm1426_vm9, %v2824_v19, %v2797_v5  ;;  %v2818_v9 = vsel %vm433_vm7, %v2817_v56, %v2816_v42 }
0x156c   :  { %v1423_v50 = vpop.permute.xlu0 %1422 }
0x156d   :  { %v1429_v35 = vsel %vm1428_vm10, %v1427_v40, %v1423_v50  ;;  %v2820_v43 = vsel %vm436_vm8, %v2819_v7, %v2818_v9 }
0x156e   :  { %v1431_v49 = vcombine.high %v1429_v35, %v1429_v35  ;;  %v1438_v22 = vrot.slane %v1429_v35, %v1437_v46  ;;  %2893 = vrot.lane.b32.xlu0 %v2820_v43, %s3590_s25  ;;  %2821 = vrot.lane.b32.xlu1 %v2820_v43, %s3588_s24 }
0x1570   :  { %v1445_v10 = vrot.slane %v1431_v49, %v1437_v46  ;;  %v1446_v62 = vcombine.high %v1438_v22, %v1438_v22  ;;  %v1454_v4 = vrot.slane %v1438_v22, %v1437_v46 }
0x1572   :  { %v1447_v13 = vcombine.high %v1445_v10, %v1445_v10  ;;  %v1461_v53 = vrot.slane %v1445_v10, %v1437_v46  ;;  %v1468_v23 = vrot.slane %v1446_v62, %v1437_v46  ;;  %v1476_v3 = vcombine.high %v1454_v4, %v1454_v4  ;;  %1492 = vst.msk [vmem:[#allocation8] sm:$0x1] %vm4850_vm11, %v1454_v4 }
0x1574   :  { %v1475_v30 = vrot.slane %v1447_v13, %v1437_v46  ;;  %v1477_v61 = vcombine.high %v1461_v53, %v1461_v53  ;;  %v1478_v34 = vcombine.high %v1468_v23, %v1468_v23  ;;  %1493 = vst.msk [vmem:[#allocation8 + $0x2] sm:$0x1] %vm4850_vm11, %v1468_v23  ;;  %1494 = vst.msk [vmem:[#allocation8 + $0x4] sm:$0x1] %vm4850_vm11, %v1476_v3 }
0x1575   :  { %1496 = vst.msk [vmem:[#allocation8 + $0x8] sm:$0x1] %vm4850_vm11, %v1461_v53 }
0x1576   :  { %v1479_v14 = vcombine.high %v1475_v30, %v1475_v30  ;;  %1495 = vst.msk [vmem:[#allocation8 + $0x6] sm:$0x1] %vm4850_vm11, %v1478_v34  ;;  %1497 = vst.msk [vmem:[#allocation8 + $0xa] sm:$0x1] %vm4850_vm11, %v1475_v30 }
0x1577   :  { %1498 = vst.msk [vmem:[#allocation8 + $0xc] sm:$0x1] %vm4850_vm11, %v1477_v61 }
0x1578   :  { %1499 = vst.msk [vmem:[#allocation8 + $0xe] sm:$0x1] %vm4850_vm11, %v1479_v14 }
0x15e0   :  { %v2822_v58 = vpop.permute.xlu1 %2821  ;;  %v2894_v20 = vpop.permute.xlu0 %2893 }
0x15e1   :  { %v2826_v45 = vsel %vm1428_vm10, %v2825_v28, %v2822_v58  ;;  %2896 = vst.msk [vmem:[#allocation2] sm:$0xff] %vm47_vm0, %v2894_v20 }
0x15e2   :  { %v2828_v55 = vcombine.high %v2826_v45, %v2826_v45  ;;  %v2835_v36 = vrot.slane %v2826_v45, %v1437_v46 }
0x15e4   :  { %v2842_v38 = vrot.slane %v2828_v55, %v1437_v46  ;;  %v2843_v31 = vcombine.high %v2835_v36, %v2835_v36  ;;  %v2851_v41 = vrot.slane %v2835_v36, %v1437_v46 }
0x15e6   :  { %v2844_v21 = vcombine.high %v2842_v38, %v2842_v38  ;;  %v2858_v11 = vrot.slane %v2842_v38, %v1437_v46  ;;  %v2865_v29 = vrot.slane %v2843_v31, %v1437_v46  ;;  %v2873_v60 = vcombine.high %v2851_v41, %v2851_v41  ;;  %2885 = vst.msk [vmem:[#allocation8 + $0x1] sm:$0x1] %vm4850_vm11, %v2851_v41 }
0x15e8   :  { %v2872_v12 = vrot.slane %v2844_v21, %v1437_v46  ;;  %v2874_v27 = vcombine.high %v2858_v11, %v2858_v11  ;;  %v2875_v16 = vcombine.high %v2865_v29, %v2865_v29  ;;  %2886 = vst.msk [vmem:[#allocation8 + $0x3] sm:$0x1] %vm4850_vm11, %v2865_v29  ;;  %2887 = vst.msk [vmem:[#allocation8 + $0x5] sm:$0x1] %vm4850_vm11, %v2873_v60 }
0x15e9   :  { %2889 = vst.msk [vmem:[#allocation8 + $0x9] sm:$0x1] %vm4850_vm11, %v2858_v11 }
0x15ea   :  { %v2876_v6 = vcombine.high %v2872_v12, %v2872_v12  ;;  %2888 = vst.msk [vmem:[#allocation8 + $0x7] sm:$0x1] %vm4850_vm11, %v2875_v16  ;;  %2890 = vst.msk [vmem:[#allocation8 + $0xb] sm:$0x1] %vm4850_vm11, %v2872_v12 }
0x15eb   :  { %2891 = vst.msk [vmem:[#allocation8 + $0xd] sm:$0x1] %vm4850_vm11, %v2874_v27 }
0x15ec   :  { %2892 = vst.msk [vmem:[#allocation8 + $0xf] sm:$0x1] %vm4850_vm11, %v2876_v6 }
0x15ed   :  { %3567 = shalt.err (!%p3564_p0)
}
0x15ee   :  { %s3593_s29 = smov 2  }
0x15ef   :  { %2908 = dma.vmem_to_hbm [thread:$0]  %s2903_s27, 256, %s4896_s3, [#allocation5], %s3589_s2, %s3589_s2, %s3593_s29  }
0x15f0   :  { %3580 = dma.done.wait [#allocation5], 256  }
0x15f1   :  { %3581 = vsyncadd [#allocation5], 4294967040 }
0x15f2   :  { %2912 = vsyncpa [#allocation4], 1 }
0x15f3   :  { %2913 = vsyncpa [#allocation7], 1 }
0x15f4   :  { %2914 = vsyncpa [#allocation5], 1 }

</bundles_post_ra>
